<compile_context>
chip_gen: v5e
topology: v5e:2x2
jax: 0.10.0
libtpu: 0.0.40
codegen_flags: <defaults>
</compile_context>

<pallas_src>
import jax
import jax.numpy as jnp
from jax import lax
from jax.experimental import pallas as pl
from jax.experimental.pallas import tpu as pltpu


def resblock_kernel(xp_hbm, w1_ref, s1_ref, t1_ref, w2_ref, s2_ref, t2_ref,
                    o_ref, xbuf, dma_sem, imc, h1p):
    """One (image, row-tile) step of the fused ResBlock.

    xp_hbm : (N, H+4, W+2, C) f32 padded input, left in HBM (pl.ANY)
    w1/w2  : (9*C, C)   conv weights, tap-major (dh*3+dw), compute dtype
    s*/t*  : (1, C)     folded BN scale / shift (f32, conv bias included)
    o_ref  : (1, TH, W, C) output row tile
    xbuf   : (2, TH+4, W+2, C) f32 VMEM double buffer for the input slab
    dma_sem: (2,) DMA semaphores
    imc    : (2, (TH+2)*W, 3*C) im2col chunk double buffer (compute dtype),
             shared by conv1 (M1 rows) and conv2 (first M2 rows)
    h1p    : (TH+2, W+2, C) zero-halo conv2 input scratch (compute dtype)
    """
    n = pl.program_id(0)
    r = pl.program_id(1)
    num_r = pl.num_programs(1)

    _, slab_h, wp, C = xbuf.shape
    TH = slab_h - 4
    W = wp - 2
    M1 = (TH + 2) * W
    M2 = TH * W
    K3 = 3 * C
    cd = imc.dtype

    def _row_start(row_tile):
        start = row_tile * TH
        if TH % 8 == 0:                      # keep slab starts sublane-aligned
            start = pl.multiple_of(start, 8)
        return start

    # ---- manual double-buffered fetch of the haloed input row slab ---------
    slot = r & 1

    def _fetch(row_tile, sl):
        pltpu.make_async_copy(
            xp_hbm.at[n, pl.ds(_row_start(row_tile), TH + 4)],
            xbuf.at[sl],
            dma_sem.at[sl],
        ).start()

    @pl.when(r == 0)                       # prime the pipeline for this image
    def _():
        _fetch(0, 0)

    pltpu.make_async_copy(                 # wait for the current slab
        xp_hbm.at[n, pl.ds(_row_start(r), TH + 4)],
        xbuf.at[slot],
        dma_sem.at[slot],
    ).wait()

    @pl.when(r + 1 < num_r)                # prefetch next slab of this image
    def _():
        _fetch(r + 1, 1 - slot)

    x_slab = xbuf[slot]                    # (TH+4, W+2, C) f32

    # ---- conv1: 3 accumulating MXU matmuls (K = 3*C), one per kernel row ----
    h1 = jnp.zeros((M1, C), jnp.float32)
    for dh in range(3):
        b = dh & 1                         # chunk double buffer -> fill/matmul
        for dw in range(3):                #   of adjacent chunks can overlap
            patch = x_slab[dh:dh + TH + 2, dw:dw + W, :]
            imc[b, :, dw * C:(dw + 1) * C] = patch.reshape(M1, C).astype(cd)
        h1 = h1 + jnp.dot(imc[b, :, :],
                          w1_ref[dh * K3:(dh + 1) * K3, :],
                          preferred_element_type=jnp.float32)
    h1 = jnp.maximum(h1 * s1_ref[...] + t1_ref[...], 0.0)   # folded BN + ReLU

    # ---- conv2 input with a 1-px zero halo ring -----------------------------
    h1p[:, 1:1 + W, :] = h1.reshape(TH + 2, W, C).astype(h1p.dtype)
    zc = jnp.zeros((TH + 2, 1, C), h1p.dtype)
    h1p[:, 0:1, :] = zc                    # side columns: every iteration (no
    h1p[:, W + 1:W + 2, :] = zc            # cross-iteration scratch state)

    @pl.when(r == 0)                       # top image boundary
    def _():
        h1p[0:1, :, :] = jnp.zeros((1, wp, C), h1p.dtype)

    @pl.when(r == num_r - 1)               # bottom image boundary
    def _():
        h1p[TH + 1:TH + 2, :, :] = jnp.zeros((1, wp, C), h1p.dtype)

    # ---- conv2: 3 accumulating matmuls, reusing the same im2col chunk buf ---
    h2 = jnp.zeros((M2, C), jnp.float32)
    for dh in range(3):
        b = dh & 1
        for dw in range(3):
            patch = h1p[dh:dh + TH, dw:dw + W, :]
            imc[b, 0:M2, dw * C:(dw + 1) * C] = patch.reshape(M2, C).astype(cd)
        h2 = h2 + jnp.dot(imc[b, 0:M2, :],
                          w2_ref[dh * K3:(dh + 1) * K3, :],
                          preferred_element_type=jnp.float32)
    h2 = h2 * s2_ref[...] + t2_ref[...]                      # folded BN

    # ---- residual add (exact f32 input) + ReLU, lane-dense store ------------
    res = x_slab[2:2 + TH, 1:1 + W, :].reshape(M2, C)
    out = jnp.maximum(res + h2, 0.0)
    o_ref[...] = out.reshape(1, TH, W, C).astype(o_ref.dtype)


def _round_up(x, m):
    return ((x + m - 1) // m) * m


def _fold_bn(gamma, beta, mean, var, conv_bias, c_pad, eps=1e-5):
    scale = gamma / jnp.sqrt(var + eps)
    shift = beta + scale * (conv_bias - mean)
    pad = (0, c_pad - scale.shape[0])
    return (jnp.pad(scale, pad).reshape(1, c_pad).astype(jnp.float32),
            jnp.pad(shift, pad).reshape(1, c_pad).astype(jnp.float32))


def _prep_weight(w_oihw, c_pad, dtype):
    c_out, c_in, kh, kw = w_oihw.shape
    w = jnp.transpose(w_oihw, (2, 3, 1, 0))               # (kh, kw, Cin, Cout)
    w = jnp.pad(w, ((0, 0), (0, 0), (0, c_pad - c_in), (0, c_pad - c_out)))
    return w.reshape(kh * kw * c_pad, c_pad).astype(dtype)


def _scratch_bytes(tile_h, W, c_pad, cd_bytes, out_bytes):
    m1 = (tile_h + 2) * W
    return (2 * (tile_h + 4) * (W + 2) * c_pad * 4         # xbuf (f32, x2)
            + 2 * m1 * 3 * c_pad * cd_bytes                # im2col chunks (x2)
            + (tile_h + 2) * (W + 2) * c_pad * cd_bytes    # h1p
            + 2 * tile_h * W * c_pad * out_bytes           # out double buffer
            + 2 * m1 * c_pad * 4                           # f32 conv accums
            + 2 * 2 * 9 * c_pad * c_pad * cd_bytes         # weights (x2 bufs)
            + 8 * c_pad * 4)                               # scale / shift


def _vmem_capacity_bytes():
    try:
        info = pltpu.get_tpu_info()
        return int(getattr(info, "vmem_capacity_bytes", 64 * 2**20))
    except Exception:
        return 64 * 2**20                   # conservative: fits every gen


def _pick_tile_h(H, W, c_pad, cd_bytes, out_bytes, budget):
    divisors = [d for d in range(1, H + 1) if H % d == 0 and d <= 64]
    feasible = [d for d in divisors
                if _scratch_bytes(d, W, c_pad, cd_bytes, out_bytes) <= budget]
    if not feasible:
        feasible = [min(divisors)]
    mult8 = [d for d in feasible if d % 8 == 0]
    return max(mult8) if mult8 else max(feasible)


def resblock_forward(x_nchw, params, *, compute_dtype=jnp.bfloat16,
                     out_dtype=jnp.float32, tile_h=None):
    x = jnp.transpose(x_nchw, (0, 2, 3, 1)).astype(jnp.float32)   # -> NHWC
    N, H, W, C = x.shape
    C_pad = _round_up(C, 128)               # lane-dense channels
    # (review note) for C > 128, rounding C_pad up to 256 better fills the
    # 256-wide MXU on v6e/v7x; kept at 128 here to avoid wasted MXU work on v5e.

    cd_bytes = jnp.dtype(compute_dtype).itemsize
    out_bytes = jnp.dtype(out_dtype).itemsize
    vmem_cap = _vmem_capacity_bytes()

    if tile_h is None:                      # per-generation VMEM-budget tiling
        tile_h = _pick_tile_h(H, W, C_pad, cd_bytes, out_bytes,
                              budget=(vmem_cap * 45) // 100)
    assert H % tile_h == 0, (H, tile_h)
    num_r = H // tile_h

    # rows padded by 2 (slab halo incl. conv pad), cols by 1, channels to
    # C_pad.  Single materialization fused with the NCHW->NHWC transpose.
    xp = jnp.pad(x, ((0, 0), (2, 2), (1, 1), (0, C_pad - C)))

    w1 = _prep_weight(params["w1"], C_pad, compute_dtype)
    w2 = _prep_weight(params["w2"], C_pad, compute_dtype)
    s1, t1 = _fold_bn(params["g1"], params["be1"], params["m1"], params["v1"],
                      params["b1"], C_pad)
    s2, t2 = _fold_bn(params["g2"], params["be2"], params["m2"], params["v2"],
                      params["b2"], C_pad)

    M1 = (tile_h + 2) * W
    scratch_est = _scratch_bytes(tile_h, W, C_pad, cd_bytes, out_bytes)
    vmem_limit = int(min(vmem_cap, max(32 * 2**20, 2 * scratch_est)))

    flops = 2 * 2 * N * H * W * 9 * C_pad * C_pad
    bytes_accessed = int(xp.size * 4 + N * H * W * C_pad * out_bytes
                         + 2 * 9 * C_pad * C_pad * cd_bytes + 4 * C_pad * 4)

    out = pl.pallas_call(
        resblock_kernel,
        out_shape=jax.ShapeDtypeStruct((N, H, W, C_pad), out_dtype),
        grid=(N, num_r),
        in_specs=[
            pl.BlockSpec(memory_space=pl.ANY),                      # x in HBM
            pl.BlockSpec((9 * C_pad, C_pad), lambda n, r: (0, 0)),  # w1
            pl.BlockSpec((1, C_pad), lambda n, r: (0, 0)),          # s1
            pl.BlockSpec((1, C_pad), lambda n, r: (0, 0)),          # t1
            pl.BlockSpec((9 * C_pad, C_pad), lambda n, r: (0, 0)),  # w2
            pl.BlockSpec((1, C_pad), lambda n, r: (0, 0)),          # s2
            pl.BlockSpec((1, C_pad), lambda n, r: (0, 0)),          # t2
        ],
        out_specs=pl.BlockSpec((1, tile_h, W, C_pad),
                               lambda n, r: (n, r, 0, 0)),
        scratch_shapes=[
            pltpu.VMEM((2, tile_h + 4, W + 2, C_pad), jnp.float32),  # xbuf
            pltpu.SemaphoreType.DMA((2,)),
            pltpu.VMEM((2, M1, 3 * C_pad), compute_dtype),           # imc
            pltpu.VMEM((tile_h + 2, W + 2, C_pad), compute_dtype),   # h1p
        ],
        compiler_params=pltpu.CompilerParams(
            dimension_semantics=("parallel", "arbitrary"),
            vmem_limit_bytes=vmem_limit),
        cost_estimate=pl.CostEstimate(flops=flops, transcendentals=0,
                                      bytes_accessed=bytes_accessed),
    )(xp, w1, s1, t1, w2, s2, t2)

    return jnp.transpose(out[:, :, :, :C], (0, 3, 1, 2))   # back to NCHW


def resblock_reference(x_nchw, params):
    """Pure-JAX reference (NHWC convs, f32) for correctness checking."""
    x = jnp.transpose(x_nchw, (0, 2, 3, 1)).astype(jnp.float32)
    w1 = jnp.transpose(params["w1"], (2, 3, 1, 0))
    w2 = jnp.transpose(params["w2"], (2, 3, 1, 0))

    def fold(g, be, m, v, b, eps=1e-5):
        s = g / jnp.sqrt(v + eps)
        return s, be + s * (b - m)

    s1, t1 = fold(params["g1"], params["be1"], params["m1"], params["v1"],
                  params["b1"])
    s2, t2 = fold(params["g2"], params["be2"], params["m2"], params["v2"],
                  params["b2"])
    dn = lax.conv_dimension_numbers(x.shape, w1.shape, ("NHWC", "HWIO", "NHWC"))
    c1 = lax.conv_general_dilated(x, w1, (1, 1), "SAME", dimension_numbers=dn)
    h1 = jnp.maximum(c1 * s1 + t1, 0.0)
    c2 = lax.conv_general_dilated(h1, w2, (1, 1), "SAME", dimension_numbers=dn)
    out = jnp.maximum(x + c2 * s2 + t2, 0.0)
    return jnp.transpose(out, (0, 3, 1, 2))


if __name__ == "__main__":
    N, C, H, W = 2, 4, 16, 16
    key = jax.random.PRNGKey(0)
    ks = jax.random.split(key, 13)

    params = {
        "w1": 0.1 * jax.random.normal(ks[0], (C, C, 3, 3), jnp.float32),
        "b1": 0.1 * jax.random.normal(ks[1], (C,), jnp.float32),
        "g1": 1.0 + 0.1 * jax.random.normal(ks[2], (C,), jnp.float32),
        "be1": 0.1 * jax.random.normal(ks[3], (C,), jnp.float32),
        "m1": 0.1 * jax.random.normal(ks[4], (C,), jnp.float32),
        "v1": 0.5 + jax.random.uniform(ks[5], (C,), jnp.float32),
        "w2": 0.1 * jax.random.normal(ks[6], (C, C, 3, 3), jnp.float32),
        "b2": 0.1 * jax.random.normal(ks[7], (C,), jnp.float32),
        "g2": 1.0 + 0.1 * jax.random.normal(ks[8], (C,), jnp.float32),
        "be2": 0.1 * jax.random.normal(ks[9], (C,), jnp.float32),
        "m2": 0.1 * jax.random.normal(ks[10], (C,), jnp.float32),
        "v2": 0.5 + jax.random.uniform(ks[11], (C,), jnp.float32),
    }
    x = jax.random.normal(ks[12], (N, C, H, W), jnp.float32)

    y_ref = jax.block_until_ready(resblock_reference(x, params))

    # f32 MXU path, 2 row tiles per image (exercises halo + chunk reuse logic).
    y32 = jax.block_until_ready(
        resblock_forward(x, params, compute_dtype=jnp.float32, tile_h=8))
    assert y32.shape == (N, C, H, W)
    err32 = float(jnp.max(jnp.abs(y32 - y_ref)))
    assert jnp.allclose(y32, y_ref, atol=2e-4, rtol=2e-4), err32

    # f32 MXU path, auto tile_h from the VMEM budget (R == 1 edge case here).
    y32b = jax.block_until_ready(
        resblock_forward(x, params, compute_dtype=jnp.float32, tile_h=None))
    err32b = float(jnp.max(jnp.abs(y32b - y_ref)))
    assert jnp.allclose(y32b, y_ref, atol=2e-4, rtol=2e-4), err32b

    # bf16 MXU path (default / fast path), looser tolerance for bf16 matmuls.
    ybf = jax.block_until_ready(
        resblock_forward(x, params, compute_dtype=jnp.bfloat16, tile_h=8))
    errbf = float(jnp.max(jnp.abs(ybf - y_ref)))
    assert jnp.allclose(ybf, y_ref, atol=6e-2, rtol=6e-2), errbf

    print("KERNEL_OK")
</pallas_src>

<mosaic_0001>
module attributes {stable_mosaic.version = 11 : i64} {
  func.func @resblock_kernel(%arg0: i32, %arg1: i32, %arg2: memref<2x20x18x128xf32, #tpu.memory_space<any>>, %arg3: memref<1152x128xf32, #tpu.memory_space<vmem>>, %arg4: memref<1x128xf32, #tpu.memory_space<vmem>>, %arg5: memref<1x128xf32, #tpu.memory_space<vmem>>, %arg6: memref<1152x128xf32, #tpu.memory_space<vmem>>, %arg7: memref<1x128xf32, #tpu.memory_space<vmem>>, %arg8: memref<1x128xf32, #tpu.memory_space<vmem>>, %arg9: memref<1x8x16x128xf32, #tpu.memory_space<vmem>>, %arg10: memref<2x12x18x128xf32, #tpu.memory_space<vmem>>, %arg11: memref<2x!tpu.dma_semaphore, #tpu.memory_space<semaphore_mem>>, %arg12: memref<2x160x384xf32, #tpu.memory_space<vmem>>, %arg13: memref<10x18x128xf32, #tpu.memory_space<vmem>>) attributes {dimension_semantics = [#tpu.dimension_semantics<parallel>, #tpu.dimension_semantics<arbitrary>], iteration_bounds = array<i64: 2, 2>, scalar_prefetch = 0 : i64, scratch_operands = 4 : i64, tpu.core_type = #tpu.core_type<tc>, window_params = [{}, {pipeline_mode = #tpu.pipeline_mode<synchronous>, transform_indices = @transform_1, window_bounds = array<i64: 1152, 128>}, {pipeline_mode = #tpu.pipeline_mode<synchronous>, transform_indices = @transform_2, window_bounds = array<i64: 1, 128>}, {pipeline_mode = #tpu.pipeline_mode<synchronous>, transform_indices = @transform_3, window_bounds = array<i64: 1, 128>}, {pipeline_mode = #tpu.pipeline_mode<synchronous>, transform_indices = @transform_4, window_bounds = array<i64: 1152, 128>}, {pipeline_mode = #tpu.pipeline_mode<synchronous>, transform_indices = @transform_5, window_bounds = array<i64: 1, 128>}, {pipeline_mode = #tpu.pipeline_mode<synchronous>, transform_indices = @transform_6, window_bounds = array<i64: 1, 128>}, {transform_indices = @transform_7, window_bounds = array<i64: 1, 8, 16, 128>}]} {
    %c1_i32 = arith.constant 1 : i32
    %0 = arith.andi %arg1, %c1_i32 : i32
    %c0_i32 = arith.constant 0 : i32
    %1 = arith.cmpi eq, %arg1, %c0_i32 : i32
    %2 = arith.extui %1 : i1 to i32
    %c0_i32_0 = arith.constant 0 : i32
    %3 = arith.cmpi ne, %2, %c0_i32_0 : i32
    scf.if %3 {
      %c0_i32_149 = arith.constant 0 : i32
      %173 = tpu.assume_multiple %c0_i32_149, 8 : i32
      %c0_i32_150 = arith.constant 0 : i32
      %c0_i32_151 = arith.constant 0 : i32
      %c0_i32_152 = arith.constant 0 : i32
      %c0_i32_153 = arith.constant 0 : i32
      %174 = tpu.memref_slice %arg2[%arg0, %173, %c0_i32_152, %c0_i32_153] : memref<2x20x18x128xf32, #tpu.memory_space<any>> -> memref<1x12x18x128xf32, #tpu.memory_space<any>>
      %175 = tpu.memref_squeeze %174 : memref<1x12x18x128xf32, #tpu.memory_space<any>> -> memref<12x18x128xf32, #tpu.memory_space<any>>
      %c0_i32_154 = arith.constant 0 : i32
      %c0_i32_155 = arith.constant 0 : i32
      %c0_i32_156 = arith.constant 0 : i32
      %176 = tpu.memref_slice %arg10[%c0_i32_150, %c0_i32_154, %c0_i32_155, %c0_i32_156] : memref<2x12x18x128xf32, #tpu.memory_space<vmem>> -> memref<1x12x18x128xf32, #tpu.memory_space<vmem>>
      %177 = tpu.memref_squeeze %176 : memref<1x12x18x128xf32, #tpu.memory_space<vmem>> -> memref<12x18x128xf32, #tpu.memory_space<vmem>>
      %178 = tpu.memref_slice %arg11[%c0_i32_151] : memref<2x!tpu.dma_semaphore, #tpu.memory_space<semaphore_mem>> -> memref<1x!tpu.dma_semaphore, #tpu.memory_space<semaphore_mem>>
      %179 = tpu.memref_squeeze %178 : memref<1x!tpu.dma_semaphore, #tpu.memory_space<semaphore_mem>> -> memref<!tpu.dma_semaphore, #tpu.memory_space<semaphore_mem>>
      tpu.enqueue_dma source(%175 : memref<12x18x128xf32, #tpu.memory_space<any>>) target(%177 : memref<12x18x128xf32, #tpu.memory_space<vmem>>) target_semaphore(%179 : memref<!tpu.dma_semaphore, #tpu.memory_space<semaphore_mem>>)
    } else {
    }
    %c8_i32 = arith.constant 8 : i32
    %4 = arith.muli %arg1, %c8_i32 : i32
    %5 = tpu.assume_multiple %4, 8 : i32
    %c0_i32_1 = arith.constant 0 : i32
    %c0_i32_2 = arith.constant 0 : i32
    %6 = tpu.memref_slice %arg2[%arg0, %5, %c0_i32_1, %c0_i32_2] : memref<2x20x18x128xf32, #tpu.memory_space<any>> -> memref<1x12x18x128xf32, #tpu.memory_space<any>>
    %7 = tpu.memref_squeeze %6 : memref<1x12x18x128xf32, #tpu.memory_space<any>> -> memref<12x18x128xf32, #tpu.memory_space<any>>
    %c0_i32_3 = arith.constant 0 : i32
    %c0_i32_4 = arith.constant 0 : i32
    %c0_i32_5 = arith.constant 0 : i32
    %8 = tpu.memref_slice %arg10[%0, %c0_i32_3, %c0_i32_4, %c0_i32_5] : memref<2x12x18x128xf32, #tpu.memory_space<vmem>> -> memref<1x12x18x128xf32, #tpu.memory_space<vmem>>
    %9 = tpu.memref_squeeze %8 : memref<1x12x18x128xf32, #tpu.memory_space<vmem>> -> memref<12x18x128xf32, #tpu.memory_space<vmem>>
    %10 = tpu.memref_slice %arg11[%0] : memref<2x!tpu.dma_semaphore, #tpu.memory_space<semaphore_mem>> -> memref<1x!tpu.dma_semaphore, #tpu.memory_space<semaphore_mem>>
    %11 = tpu.memref_squeeze %10 : memref<1x!tpu.dma_semaphore, #tpu.memory_space<semaphore_mem>> -> memref<!tpu.dma_semaphore, #tpu.memory_space<semaphore_mem>>
    tpu.wait_dma2 semaphore(%11 : memref<!tpu.dma_semaphore, #tpu.memory_space<semaphore_mem>>) src(%7 : memref<12x18x128xf32, #tpu.memory_space<any>>) dst(%9 : memref<12x18x128xf32, #tpu.memory_space<vmem>>)
    %c1_i32_6 = arith.constant 1 : i32
    %12 = arith.addi %arg1, %c1_i32_6 : i32
    %c2_i32 = arith.constant 2 : i32
    %13 = arith.cmpi slt, %12, %c2_i32 : i32
    %14 = arith.extui %13 : i1 to i32
    %c0_i32_7 = arith.constant 0 : i32
    %15 = arith.cmpi ne, %14, %c0_i32_7 : i32
    scf.if %15 {
      %c1_i32_149 = arith.constant 1 : i32
      %173 = arith.addi %arg1, %c1_i32_149 : i32
      %c1_i32_150 = arith.constant 1 : i32
      %174 = arith.subi %c1_i32_150, %0 : i32
      %c8_i32_151 = arith.constant 8 : i32
      %175 = arith.muli %173, %c8_i32_151 : i32
      %176 = tpu.assume_multiple %175, 8 : i32
      %c0_i32_152 = arith.constant 0 : i32
      %c0_i32_153 = arith.constant 0 : i32
      %177 = tpu.memref_slice %arg2[%arg0, %176, %c0_i32_152, %c0_i32_153] : memref<2x20x18x128xf32, #tpu.memory_space<any>> -> memref<1x12x18x128xf32, #tpu.memory_space<any>>
      %178 = tpu.memref_squeeze %177 : memref<1x12x18x128xf32, #tpu.memory_space<any>> -> memref<12x18x128xf32, #tpu.memory_space<any>>
      %c0_i32_154 = arith.constant 0 : i32
      %c0_i32_155 = arith.constant 0 : i32
      %c0_i32_156 = arith.constant 0 : i32
      %179 = tpu.memref_slice %arg10[%174, %c0_i32_154, %c0_i32_155, %c0_i32_156] : memref<2x12x18x128xf32, #tpu.memory_space<vmem>> -> memref<1x12x18x128xf32, #tpu.memory_space<vmem>>
      %180 = tpu.memref_squeeze %179 : memref<1x12x18x128xf32, #tpu.memory_space<vmem>> -> memref<12x18x128xf32, #tpu.memory_space<vmem>>
      %181 = tpu.memref_slice %arg11[%174] : memref<2x!tpu.dma_semaphore, #tpu.memory_space<semaphore_mem>> -> memref<1x!tpu.dma_semaphore, #tpu.memory_space<semaphore_mem>>
      %182 = tpu.memref_squeeze %181 : memref<1x!tpu.dma_semaphore, #tpu.memory_space<semaphore_mem>> -> memref<!tpu.dma_semaphore, #tpu.memory_space<semaphore_mem>>
      tpu.enqueue_dma source(%178 : memref<12x18x128xf32, #tpu.memory_space<any>>) target(%180 : memref<12x18x128xf32, #tpu.memory_space<vmem>>) target_semaphore(%182 : memref<!tpu.dma_semaphore, #tpu.memory_space<semaphore_mem>>)
    } else {
    }
    %16 = arith.index_cast %0 : i32 to index
    %c0 = arith.constant 0 : index
    %c0_8 = arith.constant 0 : index
    %c0_9 = arith.constant 0 : index
    %17 = vector.load %arg10[%16, %c0, %c0_8, %c0_9] : memref<2x12x18x128xf32, #tpu.memory_space<vmem>>, vector<1x12x18x128xf32>
    %18 = vector.shape_cast %17 : vector<1x12x18x128xf32> to vector<12x18x128xf32>
    %cst = arith.constant 0.000000e+00 : f32
    %19 = vector.broadcast %cst : f32 to vector<160x128xf32>
    %20 = vector.extract_strided_slice %18 {offsets = [0, 0, 0], sizes = [10, 16, 128], strides = [1, 1, 1]} : vector<12x18x128xf32> to vector<10x16x128xf32>
    %21 = vector.shape_cast %20 : vector<10x16x128xf32> to vector<160x128xf32>
    %c0_10 = arith.constant 0 : index
    %c0_11 = arith.constant 0 : index
    %c0_12 = arith.constant 0 : index
    %22 = vector.load %arg12[%c0_10, %c0_11, %c0_12] : memref<2x160x384xf32, #tpu.memory_space<vmem>>, vector<1x160x128xf32>
    %23 = vector.shape_cast %22 : vector<1x160x128xf32> to vector<160x128xf32>
    %24 = vector.shape_cast %21 : vector<160x128xf32> to vector<1x160x128xf32>
    tpu.vector_store %arg12[%c0_10, %c0_11, %c0_12], %24 {strides = array<i32>} : memref<2x160x384xf32, #tpu.memory_space<vmem>>, vector<1x160x128xf32>,
    %25 = vector.extract_strided_slice %18 {offsets = [0, 1, 0], sizes = [10, 16, 128], strides = [1, 1, 1]} : vector<12x18x128xf32> to vector<10x16x128xf32>
    %26 = vector.shape_cast %25 : vector<10x16x128xf32> to vector<160x128xf32>
    %c0_13 = arith.constant 0 : index
    %c0_14 = arith.constant 0 : index
    %c128 = arith.constant 128 : index
    %27 = vector.load %arg12[%c0_13, %c0_14, %c128] : memref<2x160x384xf32, #tpu.memory_space<vmem>>, vector<1x160x128xf32>
    %28 = vector.shape_cast %27 : vector<1x160x128xf32> to vector<160x128xf32>
    %29 = vector.shape_cast %26 : vector<160x128xf32> to vector<1x160x128xf32>
    tpu.vector_store %arg12[%c0_13, %c0_14, %c128], %29 {strides = array<i32>} : memref<2x160x384xf32, #tpu.memory_space<vmem>>, vector<1x160x128xf32>,
    %30 = vector.extract_strided_slice %18 {offsets = [0, 2, 0], sizes = [10, 16, 128], strides = [1, 1, 1]} : vector<12x18x128xf32> to vector<10x16x128xf32>
    %31 = vector.shape_cast %30 : vector<10x16x128xf32> to vector<160x128xf32>
    %c0_15 = arith.constant 0 : index
    %c0_16 = arith.constant 0 : index
    %c256 = arith.constant 256 : index
    %32 = vector.load %arg12[%c0_15, %c0_16, %c256] : memref<2x160x384xf32, #tpu.memory_space<vmem>>, vector<1x160x128xf32>
    %33 = vector.shape_cast %32 : vector<1x160x128xf32> to vector<160x128xf32>
    %34 = vector.shape_cast %31 : vector<160x128xf32> to vector<1x160x128xf32>
    tpu.vector_store %arg12[%c0_15, %c0_16, %c256], %34 {strides = array<i32>} : memref<2x160x384xf32, #tpu.memory_space<vmem>>, vector<1x160x128xf32>,
    %c0_17 = arith.constant 0 : index
    %c0_18 = arith.constant 0 : index
    %c0_19 = arith.constant 0 : index
    %35 = vector.load %arg12[%c0_17, %c0_18, %c0_19] : memref<2x160x384xf32, #tpu.memory_space<vmem>>, vector<1x160x384xf32>
    %36 = vector.shape_cast %35 : vector<1x160x384xf32> to vector<160x384xf32>
    %c0_20 = arith.constant 0 : index
    %c0_21 = arith.constant 0 : index
    %37 = vector.load %arg3[%c0_20, %c0_21] : memref<1152x128xf32, #tpu.memory_space<vmem>>, vector<384x128xf32>
    %cst_22 = arith.constant dense<0.000000e+00> : vector<160x128xf32>
    %38 = tpu.matmul %36, %37, %cst_22 {dimension_numbers = #tpu.dot_dimension_numbers<[1], [0], [0], [1], [0, 0, 1, 1], [], []>} : vector<160x384xf32>, vector<384x128xf32>, vector<160x128xf32> -> vector<160x128xf32>
    %39 = arith.addf %19, %38 : vector<160x128xf32>
    %40 = vector.extract_strided_slice %18 {offsets = [1, 0, 0], sizes = [10, 16, 128], strides = [1, 1, 1]} : vector<12x18x128xf32> to vector<10x16x128xf32>
    %41 = vector.shape_cast %40 : vector<10x16x128xf32> to vector<160x128xf32>
    %c1 = arith.constant 1 : index
    %c0_23 = arith.constant 0 : index
    %c0_24 = arith.constant 0 : index
    %42 = vector.load %arg12[%c1, %c0_23, %c0_24] : memref<2x160x384xf32, #tpu.memory_space<vmem>>, vector<1x160x128xf32>
    %43 = vector.shape_cast %42 : vector<1x160x128xf32> to vector<160x128xf32>
    %44 = vector.shape_cast %41 : vector<160x128xf32> to vector<1x160x128xf32>
    tpu.vector_store %arg12[%c1, %c0_23, %c0_24], %44 {strides = array<i32>} : memref<2x160x384xf32, #tpu.memory_space<vmem>>, vector<1x160x128xf32>,
    %45 = vector.extract_strided_slice %18 {offsets = [1, 1, 0], sizes = [10, 16, 128], strides = [1, 1, 1]} : vector<12x18x128xf32> to vector<10x16x128xf32>
    %46 = vector.shape_cast %45 : vector<10x16x128xf32> to vector<160x128xf32>
    %c1_25 = arith.constant 1 : index
    %c0_26 = arith.constant 0 : index
    %c128_27 = arith.constant 128 : index
    %47 = vector.load %arg12[%c1_25, %c0_26, %c128_27] : memref<2x160x384xf32, #tpu.memory_space<vmem>>, vector<1x160x128xf32>
    %48 = vector.shape_cast %47 : vector<1x160x128xf32> to vector<160x128xf32>
    %49 = vector.shape_cast %46 : vector<160x128xf32> to vector<1x160x128xf32>
    tpu.vector_store %arg12[%c1_25, %c0_26, %c128_27], %49 {strides = array<i32>} : memref<2x160x384xf32, #tpu.memory_space<vmem>>, vector<1x160x128xf32>,
    %50 = vector.extract_strided_slice %18 {offsets = [1, 2, 0], sizes = [10, 16, 128], strides = [1, 1, 1]} : vector<12x18x128xf32> to vector<10x16x128xf32>
    %51 = vector.shape_cast %50 : vector<10x16x128xf32> to vector<160x128xf32>
    %c1_28 = arith.constant 1 : index
    %c0_29 = arith.constant 0 : index
    %c256_30 = arith.constant 256 : index
    %52 = vector.load %arg12[%c1_28, %c0_29, %c256_30] : memref<2x160x384xf32, #tpu.memory_space<vmem>>, vector<1x160x128xf32>
    %53 = vector.shape_cast %52 : vector<1x160x128xf32> to vector<160x128xf32>
    %54 = vector.shape_cast %51 : vector<160x128xf32> to vector<1x160x128xf32>
    tpu.vector_store %arg12[%c1_28, %c0_29, %c256_30], %54 {strides = array<i32>} : memref<2x160x384xf32, #tpu.memory_space<vmem>>, vector<1x160x128xf32>,
    %c1_31 = arith.constant 1 : index
    %c0_32 = arith.constant 0 : index
    %c0_33 = arith.constant 0 : index
    %55 = vector.load %arg12[%c1_31, %c0_32, %c0_33] : memref<2x160x384xf32, #tpu.memory_space<vmem>>, vector<1x160x384xf32>
    %56 = vector.shape_cast %55 : vector<1x160x384xf32> to vector<160x384xf32>
    %c384 = arith.constant 384 : index
    %c0_34 = arith.constant 0 : index
    %57 = vector.load %arg3[%c384, %c0_34] : memref<1152x128xf32, #tpu.memory_space<vmem>>, vector<384x128xf32>
    %cst_35 = arith.constant dense<0.000000e+00> : vector<160x128xf32>
    %58 = tpu.matmul %56, %57, %cst_35 {dimension_numbers = #tpu.dot_dimension_numbers<[1], [0], [0], [1], [0, 0, 1, 1], [], []>} : vector<160x384xf32>, vector<384x128xf32>, vector<160x128xf32> -> vector<160x128xf32>
    %59 = arith.addf %39, %58 : vector<160x128xf32>
    %60 = vector.extract_strided_slice %18 {offsets = [2, 0, 0], sizes = [10, 16, 128], strides = [1, 1, 1]} : vector<12x18x128xf32> to vector<10x16x128xf32>
    %61 = vector.shape_cast %60 : vector<10x16x128xf32> to vector<160x128xf32>
    %c0_36 = arith.constant 0 : index
    %c0_37 = arith.constant 0 : index
    %c0_38 = arith.constant 0 : index
    %62 = vector.load %arg12[%c0_36, %c0_37, %c0_38] : memref<2x160x384xf32, #tpu.memory_space<vmem>>, vector<1x160x128xf32>
    %63 = vector.shape_cast %62 : vector<1x160x128xf32> to vector<160x128xf32>
    %64 = vector.shape_cast %61 : vector<160x128xf32> to vector<1x160x128xf32>
    tpu.vector_store %arg12[%c0_36, %c0_37, %c0_38], %64 {strides = array<i32>} : memref<2x160x384xf32, #tpu.memory_space<vmem>>, vector<1x160x128xf32>,
    %65 = vector.extract_strided_slice %18 {offsets = [2, 1, 0], sizes = [10, 16, 128], strides = [1, 1, 1]} : vector<12x18x128xf32> to vector<10x16x128xf32>
    %66 = vector.shape_cast %65 : vector<10x16x128xf32> to vector<160x128xf32>
    %c0_39 = arith.constant 0 : index
    %c0_40 = arith.constant 0 : index
    %c128_41 = arith.constant 128 : index
    %67 = vector.load %arg12[%c0_39, %c0_40, %c128_41] : memref<2x160x384xf32, #tpu.memory_space<vmem>>, vector<1x160x128xf32>
    %68 = vector.shape_cast %67 : vector<1x160x128xf32> to vector<160x128xf32>
    %69 = vector.shape_cast %66 : vector<160x128xf32> to vector<1x160x128xf32>
    tpu.vector_store %arg12[%c0_39, %c0_40, %c128_41], %69 {strides = array<i32>} : memref<2x160x384xf32, #tpu.memory_space<vmem>>, vector<1x160x128xf32>,
    %70 = vector.extract_strided_slice %18 {offsets = [2, 2, 0], sizes = [10, 16, 128], strides = [1, 1, 1]} : vector<12x18x128xf32> to vector<10x16x128xf32>
    %71 = vector.shape_cast %70 : vector<10x16x128xf32> to vector<160x128xf32>
    %c0_42 = arith.constant 0 : index
    %c0_43 = arith.constant 0 : index
    %c256_44 = arith.constant 256 : index
    %72 = vector.load %arg12[%c0_42, %c0_43, %c256_44] : memref<2x160x384xf32, #tpu.memory_space<vmem>>, vector<1x160x128xf32>
    %73 = vector.shape_cast %72 : vector<1x160x128xf32> to vector<160x128xf32>
    %74 = vector.shape_cast %71 : vector<160x128xf32> to vector<1x160x128xf32>
    tpu.vector_store %arg12[%c0_42, %c0_43, %c256_44], %74 {strides = array<i32>} : memref<2x160x384xf32, #tpu.memory_space<vmem>>, vector<1x160x128xf32>,
    %c0_45 = arith.constant 0 : index
    %c0_46 = arith.constant 0 : index
    %c0_47 = arith.constant 0 : index
    %75 = vector.load %arg12[%c0_45, %c0_46, %c0_47] : memref<2x160x384xf32, #tpu.memory_space<vmem>>, vector<1x160x384xf32>
    %76 = vector.shape_cast %75 : vector<1x160x384xf32> to vector<160x384xf32>
    %c768 = arith.constant 768 : index
    %c0_48 = arith.constant 0 : index
    %77 = vector.load %arg3[%c768, %c0_48] : memref<1152x128xf32, #tpu.memory_space<vmem>>, vector<384x128xf32>
    %cst_49 = arith.constant dense<0.000000e+00> : vector<160x128xf32>
    %78 = tpu.matmul %76, %77, %cst_49 {dimension_numbers = #tpu.dot_dimension_numbers<[1], [0], [0], [1], [0, 0, 1, 1], [], []>} : vector<160x384xf32>, vector<384x128xf32>, vector<160x128xf32> -> vector<160x128xf32>
    %79 = arith.addf %59, %78 : vector<160x128xf32>
    %c0_50 = arith.constant 0 : index
    %c0_51 = arith.constant 0 : index
    %80 = vector.load %arg4[%c0_50, %c0_51] : memref<1x128xf32, #tpu.memory_space<vmem>>, vector<1x128xf32>
    %81 = vector.broadcast %80 : vector<1x128xf32> to vector<160x128xf32>
    %82 = arith.mulf %79, %81 : vector<160x128xf32>
    %c0_52 = arith.constant 0 : index
    %c0_53 = arith.constant 0 : index
    %83 = vector.load %arg5[%c0_52, %c0_53] : memref<1x128xf32, #tpu.memory_space<vmem>>, vector<1x128xf32>
    %84 = vector.broadcast %83 : vector<1x128xf32> to vector<160x128xf32>
    %85 = arith.addf %82, %84 : vector<160x128xf32>
    %cst_54 = arith.constant 0.000000e+00 : f32
    %86 = vector.broadcast %cst_54 : f32 to vector<160x128xf32>
    %87 = arith.maximumf %85, %86 : vector<160x128xf32>
    %88 = vector.shape_cast %87 : vector<160x128xf32> to vector<10x16x128xf32>
    %c0_55 = arith.constant 0 : index
    %c1_56 = arith.constant 1 : index
    %c0_57 = arith.constant 0 : index
    %89 = vector.load %arg13[%c0_55, %c1_56, %c0_57] : memref<10x18x128xf32, #tpu.memory_space<vmem>>, vector<10x16x128xf32>
    tpu.vector_store %arg13[%c0_55, %c1_56, %c0_57], %88 {strides = array<i32>} : memref<10x18x128xf32, #tpu.memory_space<vmem>>, vector<10x16x128xf32>,
    %cst_58 = arith.constant 0.000000e+00 : f32
    %90 = vector.broadcast %cst_58 : f32 to vector<10x1x128xf32>
    %c0_59 = arith.constant 0 : index
    %c0_60 = arith.constant 0 : index
    %c0_61 = arith.constant 0 : index
    %91 = vector.load %arg13[%c0_59, %c0_60, %c0_61] : memref<10x18x128xf32, #tpu.memory_space<vmem>>, vector<10x1x128xf32>
    tpu.vector_store %arg13[%c0_59, %c0_60, %c0_61], %90 {strides = array<i32>} : memref<10x18x128xf32, #tpu.memory_space<vmem>>, vector<10x1x128xf32>,
    %c0_62 = arith.constant 0 : index
    %c17 = arith.constant 17 : index
    %c0_63 = arith.constant 0 : index
    %92 = vector.load %arg13[%c0_62, %c17, %c0_63] : memref<10x18x128xf32, #tpu.memory_space<vmem>>, vector<10x1x128xf32>
    tpu.vector_store %arg13[%c0_62, %c17, %c0_63], %90 {strides = array<i32>} : memref<10x18x128xf32, #tpu.memory_space<vmem>>, vector<10x1x128xf32>,
    %c0_i32_64 = arith.constant 0 : i32
    %93 = arith.cmpi eq, %arg1, %c0_i32_64 : i32
    %94 = arith.extui %93 : i1 to i32
    %c0_i32_65 = arith.constant 0 : i32
    %95 = arith.cmpi ne, %94, %c0_i32_65 : i32
    scf.if %95 {
      %cst_149 = arith.constant 0.000000e+00 : f32
      %173 = vector.broadcast %cst_149 : f32 to vector<1x18x128xf32>
      %c0_150 = arith.constant 0 : index
      %c0_151 = arith.constant 0 : index
      %c0_152 = arith.constant 0 : index
      %174 = vector.load %arg13[%c0_150, %c0_151, %c0_152] : memref<10x18x128xf32, #tpu.memory_space<vmem>>, vector<1x18x128xf32>
      tpu.vector_store %arg13[%c0_150, %c0_151, %c0_152], %173 {strides = array<i32>} : memref<10x18x128xf32, #tpu.memory_space<vmem>>, vector<1x18x128xf32>,
    } else {
    }
    %c1_i32_66 = arith.constant 1 : i32
    %96 = arith.cmpi eq, %arg1, %c1_i32_66 : i32
    %97 = arith.extui %96 : i1 to i32
    %c0_i32_67 = arith.constant 0 : i32
    %98 = arith.cmpi ne, %97, %c0_i32_67 : i32
    scf.if %98 {
      %cst_149 = arith.constant 0.000000e+00 : f32
      %173 = vector.broadcast %cst_149 : f32 to vector<1x18x128xf32>
      %c9 = arith.constant 9 : index
      %c0_150 = arith.constant 0 : index
      %c0_151 = arith.constant 0 : index
      %174 = vector.load %arg13[%c9, %c0_150, %c0_151] : memref<10x18x128xf32, #tpu.memory_space<vmem>>, vector<1x18x128xf32>
      tpu.vector_store %arg13[%c9, %c0_150, %c0_151], %173 {strides = array<i32>} : memref<10x18x128xf32, #tpu.memory_space<vmem>>, vector<1x18x128xf32>,
    } else {
    }
    %cst_68 = arith.constant 0.000000e+00 : f32
    %99 = vector.broadcast %cst_68 : f32 to vector<128x128xf32>
    %c0_69 = arith.constant 0 : index
    %c0_70 = arith.constant 0 : index
    %c0_71 = arith.constant 0 : index
    %100 = vector.load %arg13[%c0_69, %c0_70, %c0_71] : memref<10x18x128xf32, #tpu.memory_space<vmem>>, vector<8x16x128xf32>
    %101 = vector.shape_cast %100 : vector<8x16x128xf32> to vector<128x128xf32>
    %c0_72 = arith.constant 0 : index
    %c0_73 = arith.constant 0 : index
    %c0_74 = arith.constant 0 : index
    %102 = vector.load %arg12[%c0_72, %c0_73, %c0_74] : memref<2x160x384xf32, #tpu.memory_space<vmem>>, vector<1x128x128xf32>
    %103 = vector.shape_cast %102 : vector<1x128x128xf32> to vector<128x128xf32>
    %104 = vector.shape_cast %101 : vector<128x128xf32> to vector<1x128x128xf32>
    tpu.vector_store %arg12[%c0_72, %c0_73, %c0_74], %104 {strides = array<i32>} : memref<2x160x384xf32, #tpu.memory_space<vmem>>, vector<1x128x128xf32>,
    %c0_75 = arith.constant 0 : index
    %c1_76 = arith.constant 1 : index
    %c0_77 = arith.constant 0 : index
    %105 = vector.load %arg13[%c0_75, %c1_76, %c0_77] : memref<10x18x128xf32, #tpu.memory_space<vmem>>, vector<8x16x128xf32>
    %106 = vector.shape_cast %105 : vector<8x16x128xf32> to vector<128x128xf32>
    %c0_78 = arith.constant 0 : index
    %c0_79 = arith.constant 0 : index
    %c128_80 = arith.constant 128 : index
    %107 = vector.load %arg12[%c0_78, %c0_79, %c128_80] : memref<2x160x384xf32, #tpu.memory_space<vmem>>, vector<1x128x128xf32>
    %108 = vector.shape_cast %107 : vector<1x128x128xf32> to vector<128x128xf32>
    %109 = vector.shape_cast %106 : vector<128x128xf32> to vector<1x128x128xf32>
    tpu.vector_store %arg12[%c0_78, %c0_79, %c128_80], %109 {strides = array<i32>} : memref<2x160x384xf32, #tpu.memory_space<vmem>>, vector<1x128x128xf32>,
    %c0_81 = arith.constant 0 : index
    %c2 = arith.constant 2 : index
    %c0_82 = arith.constant 0 : index
    %110 = vector.load %arg13[%c0_81, %c2, %c0_82] : memref<10x18x128xf32, #tpu.memory_space<vmem>>, vector<8x16x128xf32>
    %111 = vector.shape_cast %110 : vector<8x16x128xf32> to vector<128x128xf32>
    %c0_83 = arith.constant 0 : index
    %c0_84 = arith.constant 0 : index
    %c256_85 = arith.constant 256 : index
    %112 = vector.load %arg12[%c0_83, %c0_84, %c256_85] : memref<2x160x384xf32, #tpu.memory_space<vmem>>, vector<1x128x128xf32>
    %113 = vector.shape_cast %112 : vector<1x128x128xf32> to vector<128x128xf32>
    %114 = vector.shape_cast %111 : vector<128x128xf32> to vector<1x128x128xf32>
    tpu.vector_store %arg12[%c0_83, %c0_84, %c256_85], %114 {strides = array<i32>} : memref<2x160x384xf32, #tpu.memory_space<vmem>>, vector<1x128x128xf32>,
    %c0_86 = arith.constant 0 : index
    %c0_87 = arith.constant 0 : index
    %c0_88 = arith.constant 0 : index
    %115 = vector.load %arg12[%c0_86, %c0_87, %c0_88] : memref<2x160x384xf32, #tpu.memory_space<vmem>>, vector<1x128x384xf32>
    %116 = vector.shape_cast %115 : vector<1x128x384xf32> to vector<128x384xf32>
    %c0_89 = arith.constant 0 : index
    %c0_90 = arith.constant 0 : index
    %117 = vector.load %arg6[%c0_89, %c0_90] : memref<1152x128xf32, #tpu.memory_space<vmem>>, vector<384x128xf32>
    %cst_91 = arith.constant dense<0.000000e+00> : vector<128x128xf32>
    %118 = tpu.matmul %116, %117, %cst_91 {dimension_numbers = #tpu.dot_dimension_numbers<[1], [0], [0], [1], [0, 0, 1, 1], [], []>} : vector<128x384xf32>, vector<384x128xf32>, vector<128x128xf32> -> vector<128x128xf32>
    %119 = arith.addf %99, %118 : vector<128x128xf32>
    %c1_92 = arith.constant 1 : index
    %c0_93 = arith.constant 0 : index
    %c0_94 = arith.constant 0 : index
    %120 = vector.load %arg13[%c1_92, %c0_93, %c0_94] : memref<10x18x128xf32, #tpu.memory_space<vmem>>, vector<8x16x128xf32>
    %121 = vector.shape_cast %120 : vector<8x16x128xf32> to vector<128x128xf32>
    %c1_95 = arith.constant 1 : index
    %c0_96 = arith.constant 0 : index
    %c0_97 = arith.constant 0 : index
    %122 = vector.load %arg12[%c1_95, %c0_96, %c0_97] : memref<2x160x384xf32, #tpu.memory_space<vmem>>, vector<1x128x128xf32>
    %123 = vector.shape_cast %122 : vector<1x128x128xf32> to vector<128x128xf32>
    %124 = vector.shape_cast %121 : vector<128x128xf32> to vector<1x128x128xf32>
    tpu.vector_store %arg12[%c1_95, %c0_96, %c0_97], %124 {strides = array<i32>} : memref<2x160x384xf32, #tpu.memory_space<vmem>>, vector<1x128x128xf32>,
    %c1_98 = arith.constant 1 : index
    %c1_99 = arith.constant 1 : index
    %c0_100 = arith.constant 0 : index
    %125 = vector.load %arg13[%c1_98, %c1_99, %c0_100] : memref<10x18x128xf32, #tpu.memory_space<vmem>>, vector<8x16x128xf32>
    %126 = vector.shape_cast %125 : vector<8x16x128xf32> to vector<128x128xf32>
    %c1_101 = arith.constant 1 : index
    %c0_102 = arith.constant 0 : index
    %c128_103 = arith.constant 128 : index
    %127 = vector.load %arg12[%c1_101, %c0_102, %c128_103] : memref<2x160x384xf32, #tpu.memory_space<vmem>>, vector<1x128x128xf32>
    %128 = vector.shape_cast %127 : vector<1x128x128xf32> to vector<128x128xf32>
    %129 = vector.shape_cast %126 : vector<128x128xf32> to vector<1x128x128xf32>
    tpu.vector_store %arg12[%c1_101, %c0_102, %c128_103], %129 {strides = array<i32>} : memref<2x160x384xf32, #tpu.memory_space<vmem>>, vector<1x128x128xf32>,
    %c1_104 = arith.constant 1 : index
    %c2_105 = arith.constant 2 : index
    %c0_106 = arith.constant 0 : index
    %130 = vector.load %arg13[%c1_104, %c2_105, %c0_106] : memref<10x18x128xf32, #tpu.memory_space<vmem>>, vector<8x16x128xf32>
    %131 = vector.shape_cast %130 : vector<8x16x128xf32> to vector<128x128xf32>
    %c1_107 = arith.constant 1 : index
    %c0_108 = arith.constant 0 : index
    %c256_109 = arith.constant 256 : index
    %132 = vector.load %arg12[%c1_107, %c0_108, %c256_109] : memref<2x160x384xf32, #tpu.memory_space<vmem>>, vector<1x128x128xf32>
    %133 = vector.shape_cast %132 : vector<1x128x128xf32> to vector<128x128xf32>
    %134 = vector.shape_cast %131 : vector<128x128xf32> to vector<1x128x128xf32>
    tpu.vector_store %arg12[%c1_107, %c0_108, %c256_109], %134 {strides = array<i32>} : memref<2x160x384xf32, #tpu.memory_space<vmem>>, vector<1x128x128xf32>,
    %c1_110 = arith.constant 1 : index
    %c0_111 = arith.constant 0 : index
    %c0_112 = arith.constant 0 : index
    %135 = vector.load %arg12[%c1_110, %c0_111, %c0_112] : memref<2x160x384xf32, #tpu.memory_space<vmem>>, vector<1x128x384xf32>
    %136 = vector.shape_cast %135 : vector<1x128x384xf32> to vector<128x384xf32>
    %c384_113 = arith.constant 384 : index
    %c0_114 = arith.constant 0 : index
    %137 = vector.load %arg6[%c384_113, %c0_114] : memref<1152x128xf32, #tpu.memory_space<vmem>>, vector<384x128xf32>
    %cst_115 = arith.constant dense<0.000000e+00> : vector<128x128xf32>
    %138 = tpu.matmul %136, %137, %cst_115 {dimension_numbers = #tpu.dot_dimension_numbers<[1], [0], [0], [1], [0, 0, 1, 1], [], []>} : vector<128x384xf32>, vector<384x128xf32>, vector<128x128xf32> -> vector<128x128xf32>
    %139 = arith.addf %119, %138 : vector<128x128xf32>
    %c2_116 = arith.constant 2 : index
    %c0_117 = arith.constant 0 : index
    %c0_118 = arith.constant 0 : index
    %140 = vector.load %arg13[%c2_116, %c0_117, %c0_118] : memref<10x18x128xf32, #tpu.memory_space<vmem>>, vector<8x16x128xf32>
    %141 = vector.shape_cast %140 : vector<8x16x128xf32> to vector<128x128xf32>
    %c0_119 = arith.constant 0 : index
    %c0_120 = arith.constant 0 : index
    %c0_121 = arith.constant 0 : index
    %142 = vector.load %arg12[%c0_119, %c0_120, %c0_121] : memref<2x160x384xf32, #tpu.memory_space<vmem>>, vector<1x128x128xf32>
    %143 = vector.shape_cast %142 : vector<1x128x128xf32> to vector<128x128xf32>
    %144 = vector.shape_cast %141 : vector<128x128xf32> to vector<1x128x128xf32>
    tpu.vector_store %arg12[%c0_119, %c0_120, %c0_121], %144 {strides = array<i32>} : memref<2x160x384xf32, #tpu.memory_space<vmem>>, vector<1x128x128xf32>,
    %c2_122 = arith.constant 2 : index
    %c1_123 = arith.constant 1 : index
    %c0_124 = arith.constant 0 : index
    %145 = vector.load %arg13[%c2_122, %c1_123, %c0_124] : memref<10x18x128xf32, #tpu.memory_space<vmem>>, vector<8x16x128xf32>
    %146 = vector.shape_cast %145 : vector<8x16x128xf32> to vector<128x128xf32>
    %c0_125 = arith.constant 0 : index
    %c0_126 = arith.constant 0 : index
    %c128_127 = arith.constant 128 : index
    %147 = vector.load %arg12[%c0_125, %c0_126, %c128_127] : memref<2x160x384xf32, #tpu.memory_space<vmem>>, vector<1x128x128xf32>
    %148 = vector.shape_cast %147 : vector<1x128x128xf32> to vector<128x128xf32>
    %149 = vector.shape_cast %146 : vector<128x128xf32> to vector<1x128x128xf32>
    tpu.vector_store %arg12[%c0_125, %c0_126, %c128_127], %149 {strides = array<i32>} : memref<2x160x384xf32, #tpu.memory_space<vmem>>, vector<1x128x128xf32>,
    %c2_128 = arith.constant 2 : index
    %c2_129 = arith.constant 2 : index
    %c0_130 = arith.constant 0 : index
    %150 = vector.load %arg13[%c2_128, %c2_129, %c0_130] : memref<10x18x128xf32, #tpu.memory_space<vmem>>, vector<8x16x128xf32>
    %151 = vector.shape_cast %150 : vector<8x16x128xf32> to vector<128x128xf32>
    %c0_131 = arith.constant 0 : index
    %c0_132 = arith.constant 0 : index
    %c256_133 = arith.constant 256 : index
    %152 = vector.load %arg12[%c0_131, %c0_132, %c256_133] : memref<2x160x384xf32, #tpu.memory_space<vmem>>, vector<1x128x128xf32>
    %153 = vector.shape_cast %152 : vector<1x128x128xf32> to vector<128x128xf32>
    %154 = vector.shape_cast %151 : vector<128x128xf32> to vector<1x128x128xf32>
    tpu.vector_store %arg12[%c0_131, %c0_132, %c256_133], %154 {strides = array<i32>} : memref<2x160x384xf32, #tpu.memory_space<vmem>>, vector<1x128x128xf32>,
    %c0_134 = arith.constant 0 : index
    %c0_135 = arith.constant 0 : index
    %c0_136 = arith.constant 0 : index
    %155 = vector.load %arg12[%c0_134, %c0_135, %c0_136] : memref<2x160x384xf32, #tpu.memory_space<vmem>>, vector<1x128x384xf32>
    %156 = vector.shape_cast %155 : vector<1x128x384xf32> to vector<128x384xf32>
    %c768_137 = arith.constant 768 : index
    %c0_138 = arith.constant 0 : index
    %157 = vector.load %arg6[%c768_137, %c0_138] : memref<1152x128xf32, #tpu.memory_space<vmem>>, vector<384x128xf32>
    %cst_139 = arith.constant dense<0.000000e+00> : vector<128x128xf32>
    %158 = tpu.matmul %156, %157, %cst_139 {dimension_numbers = #tpu.dot_dimension_numbers<[1], [0], [0], [1], [0, 0, 1, 1], [], []>} : vector<128x384xf32>, vector<384x128xf32>, vector<128x128xf32> -> vector<128x128xf32>
    %159 = arith.addf %139, %158 : vector<128x128xf32>
    %c0_140 = arith.constant 0 : index
    %c0_141 = arith.constant 0 : index
    %160 = vector.load %arg7[%c0_140, %c0_141] : memref<1x128xf32, #tpu.memory_space<vmem>>, vector<1x128xf32>
    %161 = vector.broadcast %160 : vector<1x128xf32> to vector<128x128xf32>
    %162 = arith.mulf %159, %161 : vector<128x128xf32>
    %c0_142 = arith.constant 0 : index
    %c0_143 = arith.constant 0 : index
    %163 = vector.load %arg8[%c0_142, %c0_143] : memref<1x128xf32, #tpu.memory_space<vmem>>, vector<1x128xf32>
    %164 = vector.broadcast %163 : vector<1x128xf32> to vector<128x128xf32>
    %165 = arith.addf %162, %164 : vector<128x128xf32>
    %166 = vector.extract_strided_slice %18 {offsets = [2, 1, 0], sizes = [8, 16, 128], strides = [1, 1, 1]} : vector<12x18x128xf32> to vector<8x16x128xf32>
    %167 = vector.shape_cast %166 : vector<8x16x128xf32> to vector<128x128xf32>
    %168 = arith.addf %167, %165 : vector<128x128xf32>
    %cst_144 = arith.constant 0.000000e+00 : f32
    %169 = vector.broadcast %cst_144 : f32 to vector<128x128xf32>
    %170 = arith.maximumf %168, %169 : vector<128x128xf32>
    %171 = vector.shape_cast %170 : vector<128x128xf32> to vector<1x8x16x128xf32>
    %c0_145 = arith.constant 0 : index
    %c0_146 = arith.constant 0 : index
    %c0_147 = arith.constant 0 : index
    %c0_148 = arith.constant 0 : index
    %172 = vector.load %arg9[%c0_145, %c0_146, %c0_147, %c0_148] : memref<1x8x16x128xf32, #tpu.memory_space<vmem>>, vector<1x8x16x128xf32>
    tpu.vector_store %arg9[%c0_145, %c0_146, %c0_147, %c0_148], %171 {strides = array<i32>} : memref<1x8x16x128xf32, #tpu.memory_space<vmem>>, vector<1x8x16x128xf32>,
    return
  }
  func.func @transform_1(%arg0: i32, %arg1: i32) -> (i32, i32) {
    %c0_i32 = arith.constant 0 : i32
    %c0_i32_0 = arith.constant 0 : i32
    %c0_i32_1 = arith.constant 0 : i32
    return %c0_i32, %c0_i32_0 : i32, i32
  }
  func.func @transform_2(%arg0: i32, %arg1: i32) -> (i32, i32) {
    %c0_i32 = arith.constant 0 : i32
    %c0_i32_0 = arith.constant 0 : i32
    %c0_i32_1 = arith.constant 0 : i32
    return %c0_i32, %c0_i32_0 : i32, i32
  }
  func.func @transform_3(%arg0: i32, %arg1: i32) -> (i32, i32) {
    %c0_i32 = arith.constant 0 : i32
    %c0_i32_0 = arith.constant 0 : i32
    %c0_i32_1 = arith.constant 0 : i32
    return %c0_i32, %c0_i32_0 : i32, i32
  }
  func.func @transform_4(%arg0: i32, %arg1: i32) -> (i32, i32) {
    %c0_i32 = arith.constant 0 : i32
    %c0_i32_0 = arith.constant 0 : i32
    %c0_i32_1 = arith.constant 0 : i32
    return %c0_i32, %c0_i32_0 : i32, i32
  }
  func.func @transform_5(%arg0: i32, %arg1: i32) -> (i32, i32) {
    %c0_i32 = arith.constant 0 : i32
    %c0_i32_0 = arith.constant 0 : i32
    %c0_i32_1 = arith.constant 0 : i32
    return %c0_i32, %c0_i32_0 : i32, i32
  }
  func.func @transform_6(%arg0: i32, %arg1: i32) -> (i32, i32) {
    %c0_i32 = arith.constant 0 : i32
    %c0_i32_0 = arith.constant 0 : i32
    %c0_i32_1 = arith.constant 0 : i32
    return %c0_i32, %c0_i32_0 : i32, i32
  }
  func.func @transform_7(%arg0: i32, %arg1: i32) -> (i32, i32, i32, i32) {
    %c0_i32 = arith.constant 0 : i32
    %c0_i32_0 = arith.constant 0 : i32
    %c0_i32_1 = arith.constant 0 : i32
    return %arg0, %arg1, %c0_i32, %c0_i32_0 : i32, i32, i32, i32
  }
}

</mosaic_0001>

<bundles_post_ra>
// kernel: tpu_custom_call.1
= control target key start
LH: loop header
LB: loop body
LE: loop exit
PB: predicated region body
PF: predicated region fallthrough
CT: control target
= control target key end

     0   :  { %s6096_s0 = inlined_call_operand.vmem [shape: f32[2,20,18,128], index: 0, kind: input, shape index: {}]   ;;  %s6097_s1 = inlined_call_operand.vmem [shape: f32[1152,128], index: 1, kind: input, shape index: {}]   ;;  %s6098_s2 = inlined_call_operand.vmem [shape: f32[1,128], index: 2, kind: input, shape index: {}]   ;;  %s6099_s3 = inlined_call_operand.vmem [shape: f32[1,128], index: 3, kind: input, shape index: {}]   ;;  %s6100_s4 = inlined_call_operand.hbm [shape: f32[1152,128], index: 4, kind: input, shape index: {}]   ;;  %s6101_s5 = inlined_call_operand.vmem [shape: f32[1,128], index: 5, kind: input, shape index: {}]   ;;  %s6102_s6 = inlined_call_operand.vmem [shape: f32[1,128], index: 6, kind: input, shape index: {}]   ;;  %s6103_s7 = inlined_call_operand.hbm [shape: f32[2,16,16,128], index: 7, kind: output, shape index: {}]  }
   0x1   :  { %6126 = sst [smem:[#allocation81_spill]] %s6100_s4 }
   0x2   :  { %12 = vsyncpa [#allocation7], 0 }
   0x3   :  { %13 = vsyncpa [#allocation8], 0 }
   0x4   :  { %15 = vsyncpa [#allocation8 + $0x1], 0  ;;  %s3920_s24 = smov 0   ;;  %s3922_s25 = smov 0  }
   0x5   :  { %s3924_s26 = smov 0   ;;  %s3926_s27 = smov 0  }
   0x6   :  { %s3928_s28 = smov 0   ;;  %s3930_s29 = smov 0  }
   0x7   :  { %s3932_s30 = smov 0   ;;  %s3934_s8 = smov 0  }
   0x8 LB: > { %s3477_s9 = sadd.s32 4294967295, %s3870_s8   ;;  %s3478_s10 = sadd.s32 4294967294, %s3870_s8   ;;  %s3870_s8 = sphi %s3934_s8, %s21_s8   ;;  %s3866_s30 = sphi %s3932_s30, %s6276_s30   ;;  %s3862_s29 = sphi %s3930_s29, %s6275_s29   ;;  %s3858_s28 = sphi %s3928_s28, %s6274_s28   ;;  %s3854_s27 = sphi %s3926_s27, %s6273_s27   ;;  %s3850_s26 = sphi %s3924_s26, %s6272_s26   ;;  %s3846_s25 = sphi %s3922_s25, %s6271_s25   ;;  %s3842_s24 = sphi %s3920_s24, %s6270_s24  }
   0x9   : > { %s30_s11 = sadd.s32 1, %s3862_s29  ;;  %s33_s12 = sadd.s32 1, %s3866_s30 }
   0xa   : > { %p31_p0 = scmp.ge.s32.totalorder %s30_s11, 2  ;;  %s168_s13 = sadd.s32 1, %s3850_s26 }
   0xb   : > { %p178_p1 = scmp.ne.s32.totalorder %s3850_s26, %s3846_s25  ;;  %p179_p2 = scmp.eq.s32.totalorder %s3477_s9, 3 }
   0xc   : > { %s6278_s11 = smov (%p31_p0, %s30_s11), 0  ;;  %s6280_s12 = smov (!%p31_p0, %s33_s12), %s3866_s30 }
   0xd   : > { %6127 = sst [smem:[#allocation15_spill]] %s6278_s11  ;;  %s164_s14 = ssub.s32 %s3862_s29, %s6278_s11 }
   0xe   : > { %p3972_p3 = por %p179_p2, %p178_p1  ;;  %p35_p4 = scmp.ge.s32.totalorder %s6280_s12, 2 }
   0xf   : > { %p184_p5 = scmp.ne.s32.totalorder %s3846_s25, %s3842_s24  ;;  %p185_p6 = scmp.eq.s32.totalorder %s3478_s10, 3 }
  0x10   : > { %p3479_p7 = scmp.ge.s32.totalorder %s3870_s8, 1  ;;  %s6282_s12 = smov (%p35_p4, %s6280_s12), 0 }
  0x11   : > { %6129 = sst [smem:[#allocation16_spill]] %s6282_s12  ;;  %p3981_p8 = por %p185_p6, %p184_p5 }
  0x12   : > { %p192_p9 = scmp.lt.s32.totalorder %s3870_s8, 5  ;;  %s163_s17 = ssub.s32 %s3866_s30, %s6282_s12 }
  0x13   : > { %s165_s18 = sor.u32 %s164_s14, %s163_s17  ;;  %p3992_p12 = scmp.eq.s32.totalorder %s3477_s9, 0 }
  0x14   : > { %p3988_p10 = pnand %p3479_p7, %p192_p9  ;;  %p166_p11 = scmp.eq.s32.totalorder %s165_s18, 0 }
  0x15   : > { %s6133_s4 = sld [smem:[#allocation81_spill]]  ;;  %s3872_s14 = smov [#allocation6]  }
  0x16   : > { %p3612_p13 = pneg %p3988_p10  ;;  %s214_s17 = sshll.u32 %s3872_s14, 4  ;;  %s215_s17 = int_to_ptr.vmem [resolvable:$true] %s214_s17 }
  0x17   : > { %s4002_s10 = scalar_select %p166_p11, %s3850_s26, %s168_s13  }
  0x18   : > { %p3613_p0 = pnand %p3992_p12, %p3612_p13  ;;  %s3873_s18 = smov 128  }
  0x19   : > { %s3874_s9 = smov 8   ;;  %236 = sbr.rel (%p3988_p10) target bundleno = 1397 (0x575), region = 44 }
  0x1b   : > { %s212_s23 = sshll.u32 %s6133_s4, 4  ;;  %s213_s23 = int_to_ptr.hbm [resolvable:$true] %s212_s23 }
  0x1c   : > { %3615 = dma.hbm_to_vmem [thread:$0]  (!%p3613_p0), %s213_s23, 18432, %s215_s17, [#allocation7], %s3873_s18, %s3873_s18, %s3874_s9  }
  0x1e   : > { %3831 = dma.done.wait (%p3992_p12), [#allocation7], 18432  }
  0x1f   : > { %3833 = vsyncadd (%p3992_p12), [#allocation7], 4294948864  ;;  %s6104_s13 = sand.u32 1, %s3846_s25   ;;  %s4014_s21 = sand.u32 1, %s3854_s27 }
  0x20   : > { %s3483_s22 = sshll.u32 %s6104_s13, 7  ;;  %p3484_p1 = scmp.ne.s32.totalorder %s3854_s27, 0 }
  0x21   : > { %s4018_s14 = scalar_lea.vmem [#allocation9], %s3483_s22  ;;  %s269_s19 = smul.u32 (!%p3484_p1), 480, %s3858_s28 }
  0x22   : > { %267 = sbr.rel (%p3484_p1) target bundleno = 77 (0x4d), region = 52 }
  0x23   : > { %s4027_s17 = scalar_lea.vmem (!%p3484_p1), %s6096_s0, %s269_s19 }
  0x27   : > { %v284_v0 = vld [vmem:[%s4027_s17] sm:$0xff]  ;;  %v286_v1 = vld [vmem:[%s4027_s17 + $0x8] sm:$0xff]  ;;  %v288_v2 = vld [vmem:[%s4027_s17 + $0x18] sm:$0xff] }
  0x28   : > { %285 = vst [vmem:[#allocation2] sm:$0xff] %v284_v0  ;;  %v290_v3 = vld [vmem:[%s4027_s17 + $0x20] sm:$0xff]  ;;  %v292_v4 = vld [vmem:[%s4027_s17 + $0x30] sm:$0xff]  ;;  %v294_v5 = vld [vmem:[%s4027_s17 + $0x38] sm:$0xff] }
  0x29   : > { %287 = vst [vmem:[#allocation2 + $0x8] sm:$0xff] %v286_v1  ;;  %v296_v6 = vld [vmem:[%s4027_s17 + $0x48] sm:$0xff]  ;;  %v298_v7 = vld [vmem:[%s4027_s17 + $0x50] sm:$0xff]  ;;  %v300_v8 = vld [vmem:[%s4027_s17 + $0x60] sm:$0xff] }
  0x2a   : > { %289 = vst [vmem:[#allocation2 + $0x18] sm:$0xff] %v288_v2  ;;  %v302_v9 = vld [vmem:[%s4027_s17 + $0x68] sm:$0xff]  ;;  %v304_v10 = vld [vmem:[%s4027_s17 + $0x78] sm:$0xff]  ;;  %v306_v11 = vld [vmem:[%s4027_s17 + $0x80] sm:$0xff] }
  0x2b   : > { %291 = vst [vmem:[#allocation2 + $0x20] sm:$0xff] %v290_v3  ;;  %v308_v12 = vld [vmem:[%s4027_s17 + $0x90] sm:$0xff]  ;;  %v310_v13 = vld [vmem:[%s4027_s17 + $0x98] sm:$0xff]  ;;  %v312_v14 = vld [vmem:[%s4027_s17 + $0xa8] sm:$0xff] }
  0x2c   : > { %293 = vst [vmem:[#allocation2 + $0x30] sm:$0xff] %v292_v4  ;;  %v314_v15 = vld [vmem:[%s4027_s17 + $0xb0] sm:$0xff]  ;;  %v316_v16 = vld [vmem:[%s4027_s17 + $0xc0] sm:$0xff]  ;;  %v318_v17 = vld [vmem:[%s4027_s17 + $0xc8] sm:$0xff] }
  0x2d   : > { %295 = vst [vmem:[#allocation2 + $0x38] sm:$0xff] %v294_v5  ;;  %v320_v18 = vld [vmem:[%s4027_s17 + $0xd8] sm:$0xff]  ;;  %v322_v19 = vld [vmem:[%s4027_s17 + $0xe0] sm:$0xff]  ;;  %v324_v20 = vld [vmem:[%s4027_s17 + $0xf0] sm:$0xff] }
  0x2e   : > { %297 = vst [vmem:[#allocation2 + $0x48] sm:$0xff] %v296_v6  ;;  %v326_v21 = vld [vmem:[%s4027_s17 + $0xf8] sm:$0xff]  ;;  %v328_v22 = vld [vmem:[%s4027_s17 + $0x108] sm:$0xff]  ;;  %v330_v23 = vld [vmem:[%s4027_s17 + $0x110] sm:$0xff] }
  0x2f   : > { %299 = vst [vmem:[#allocation2 + $0x50] sm:$0xff] %v298_v7  ;;  %v3485_v24 = vld [vmem:[%s4027_s17 + $0x10] sm:$0x3]  ;;  %v3486_v25 = vld [vmem:[%s4027_s17 + $0x28] sm:$0x3] }
  0x30   : > { %301 = vst [vmem:[#allocation2 + $0x60] sm:$0xff] %v300_v8  ;;  %v3487_v26 = vld [vmem:[%s4027_s17 + $0x40] sm:$0x3]  ;;  %v3488_v27 = vld [vmem:[%s4027_s17 + $0x58] sm:$0x3] }
  0x31   : > { %303 = vst [vmem:[#allocation2 + $0x68] sm:$0xff] %v302_v9  ;;  %v3489_v28 = vld [vmem:[%s4027_s17 + $0x70] sm:$0x3]  ;;  %v3490_v29 = vld [vmem:[%s4027_s17 + $0x88] sm:$0x3] }
  0x32   : > { %305 = vst [vmem:[#allocation2 + $0x78] sm:$0xff] %v304_v10  ;;  %v3491_v30 = vld [vmem:[%s4027_s17 + $0xa0] sm:$0x3]  ;;  %v3492_v31 = vld [vmem:[%s4027_s17 + $0xb8] sm:$0x3] }
  0x33   : > { %307 = vst [vmem:[#allocation2 + $0x80] sm:$0xff] %v306_v11  ;;  %v3493_v32 = vld [vmem:[%s4027_s17 + $0xd0] sm:$0x3]  ;;  %v3494_v33 = vld [vmem:[%s4027_s17 + $0xe8] sm:$0x3] }
  0x34   : > { %309 = vst [vmem:[#allocation2 + $0x90] sm:$0xff] %v308_v12  ;;  %v3495_v34 = vld [vmem:[%s4027_s17 + $0x100] sm:$0x3]  ;;  %v3496_v35 = vld [vmem:[%s4027_s17 + $0x118] sm:$0x3] }
  0x35   : > { %311 = vst [vmem:[#allocation2 + $0x98] sm:$0xff] %v310_v13 }
  0x36   : > { %313 = vst [vmem:[#allocation2 + $0xa8] sm:$0xff] %v312_v14 }
  0x37   : > { %315 = vst [vmem:[#allocation2 + $0xb0] sm:$0xff] %v314_v15 }
  0x38   : > { %317 = vst [vmem:[#allocation2 + $0xc0] sm:$0xff] %v316_v16 }
  0x39   : > { %319 = vst [vmem:[#allocation2 + $0xc8] sm:$0xff] %v318_v17 }
  0x3a   : > { %321 = vst [vmem:[#allocation2 + $0xd8] sm:$0xff] %v320_v18 }
  0x3b   : > { %323 = vst [vmem:[#allocation2 + $0xe0] sm:$0xff] %v322_v19 }
  0x3c   : > { %325 = vst [vmem:[#allocation2 + $0xf0] sm:$0xff] %v324_v20 }
  0x3d   : > { %327 = vst [vmem:[#allocation2 + $0xf8] sm:$0xff] %v326_v21 }
  0x3e   : > { %329 = vst [vmem:[#allocation2 + $0x108] sm:$0xff] %v328_v22 }
  0x3f   : > { %331 = vst [vmem:[#allocation2 + $0x110] sm:$0xff] %v330_v23 }
  0x40   : > { %343 = vst [vmem:[#allocation2 + $0x10] sm:$0x3] %v3485_v24 }
  0x41   : > { %345 = vst [vmem:[#allocation2 + $0x28] sm:$0x3] %v3486_v25 }
  0x42   : > { %347 = vst [vmem:[#allocation2 + $0x40] sm:$0x3] %v3487_v26 }
  0x43   : > { %349 = vst [vmem:[#allocation2 + $0x58] sm:$0x3] %v3488_v27 }
  0x44   : > { %351 = vst [vmem:[#allocation2 + $0x70] sm:$0x3] %v3489_v28 }
  0x45   : > { %353 = vst [vmem:[#allocation2 + $0x88] sm:$0x3] %v3490_v29 }
  0x46   : > { %355 = vst [vmem:[#allocation2 + $0xa0] sm:$0x3] %v3491_v30 }
  0x47   : > { %357 = vst [vmem:[#allocation2 + $0xb8] sm:$0x3] %v3492_v31 }
  0x48   : > { %359 = vst [vmem:[#allocation2 + $0xd0] sm:$0x3] %v3493_v32 }
  0x49   : > { %361 = vst [vmem:[#allocation2 + $0xe8] sm:$0x3] %v3494_v33 }
  0x4a   : > { %363 = vst [vmem:[#allocation2 + $0x100] sm:$0x3] %v3495_v34 }
  0x4b   : > { %365 = vst [vmem:[#allocation2 + $0x118] sm:$0x3] %v3496_v35 }
  0x4c   : > { %369 = vsyncadd [#allocation3], 3456 }
  0x4d PF: > { %s371_s18 = smul.u32 288, %s4014_s21  ;;  %s373_s22 = scalar_lea.sflag [#allocation3], %s4014_s21 }
  0x4f   : > { %s4066_s9 = scalar_lea.vmem [#allocation2], %s371_s18 }
  0x50   : > { %3834 = dma.done.wait %s373_s22, 3456 }
  0x51   : > { %3835 = vsyncadd %s373_s22, 4294963840  ;;  %s378_s19 = sadd.s32 1, %s3854_s27 }
  0x52   : > { %p3497_p2 = scmp.ge.s32.totalorder %s378_s19, 2 }
  0x53   : > { %s383_s23 = ssub.s32 (!%p3497_p2), 1, %s4014_s21  ;;  %s3406_s20 = smul.u32 (!%p3497_p2), 192, %s3854_s27 }
  0x54   : > { %382 = sbr.rel (%p3497_p2) target bundleno = 127 (0x7f), region = 78 }
  0x55   : > { %s3407_s17 = smul.u32 (!%p3497_p2), 480, %s3858_s28 }
  0x56   : > { %s389_s13 = smul.u32 (!%p3497_p2), 288, %s383_s23 }
  0x57   : > { %s3408_s4 = sadd.s32 (!%p3497_p2), %s3407_s17, %s3406_s20 }
  0x58   : > { %s4078_s11 = scalar_lea.vmem (!%p3497_p2), %s6096_s0, %s3408_s4  ;;  %s4083_s22 = scalar_lea.vmem (!%p3497_p2), [#allocation2], %s389_s13 }
  0x59   : > { %v3498_v36 = vld [vmem:[%s4078_s11 + $0xc0] sm:$0xff]  ;;  %v3499_v37 = vld [vmem:[%s4078_s11 + $0xc8] sm:$0xff]  ;;  %v3500_v38 = vld [vmem:[%s4078_s11 + $0xd8] sm:$0xff]  ;;  %s391_s4 = scalar_lea.sflag [#allocation3], %s383_s23 }
  0x5a   : > { %405 = vst [vmem:[%s4083_s22] sm:$0xff] %v3498_v36  ;;  %v3501_v39 = vld [vmem:[%s4078_s11 + $0xe0] sm:$0xff]  ;;  %v3502_v40 = vld [vmem:[%s4078_s11 + $0xf0] sm:$0xff]  ;;  %v3503_v41 = vld [vmem:[%s4078_s11 + $0xf8] sm:$0xff] }
  0x5b   : > { %407 = vst [vmem:[%s4083_s22 + $0x8] sm:$0xff] %v3499_v37  ;;  %v3504_v42 = vld [vmem:[%s4078_s11 + $0x108] sm:$0xff]  ;;  %v3505_v43 = vld [vmem:[%s4078_s11 + $0x110] sm:$0xff]  ;;  %v3506_v44 = vld [vmem:[%s4078_s11 + $0x120] sm:$0xff] }
  0x5c   : > { %409 = vst [vmem:[%s4083_s22 + $0x18] sm:$0xff] %v3500_v38  ;;  %v3507_v45 = vld [vmem:[%s4078_s11 + $0x128] sm:$0xff]  ;;  %v3508_v46 = vld [vmem:[%s4078_s11 + $0x138] sm:$0xff]  ;;  %v3509_v47 = vld [vmem:[%s4078_s11 + $0x140] sm:$0xff] }
  0x5d   : > { %411 = vst [vmem:[%s4083_s22 + $0x20] sm:$0xff] %v3501_v39  ;;  %v3510_v48 = vld [vmem:[%s4078_s11 + $0x150] sm:$0xff]  ;;  %v3511_v49 = vld [vmem:[%s4078_s11 + $0x158] sm:$0xff]  ;;  %v3512_v50 = vld [vmem:[%s4078_s11 + $0x168] sm:$0xff] }
  0x5e   : > { %413 = vst [vmem:[%s4083_s22 + $0x30] sm:$0xff] %v3502_v40  ;;  %v3513_v51 = vld [vmem:[%s4078_s11 + $0x170] sm:$0xff]  ;;  %v3514_v52 = vld [vmem:[%s4078_s11 + $0x180] sm:$0xff]  ;;  %v3515_v53 = vld [vmem:[%s4078_s11 + $0x188] sm:$0xff] }
  0x5f   : > { %415 = vst [vmem:[%s4083_s22 + $0x38] sm:$0xff] %v3503_v41  ;;  %v3516_v54 = vld [vmem:[%s4078_s11 + $0x198] sm:$0xff]  ;;  %v3517_v55 = vld [vmem:[%s4078_s11 + $0x1a0] sm:$0xff]  ;;  %v3518_v56 = vld [vmem:[%s4078_s11 + $0x1b0] sm:$0xff] }
  0x60   : > { %417 = vst [vmem:[%s4083_s22 + $0x48] sm:$0xff] %v3504_v42  ;;  %v3519_v57 = vld [vmem:[%s4078_s11 + $0x1b8] sm:$0xff]  ;;  %v3520_v58 = vld [vmem:[%s4078_s11 + $0x1c8] sm:$0xff]  ;;  %v3521_v59 = vld [vmem:[%s4078_s11 + $0x1d0] sm:$0xff] }
  0x61   : > { %419 = vst [vmem:[%s4083_s22 + $0x50] sm:$0xff] %v3505_v43  ;;  %v3522_v60 = vld [vmem:[%s4078_s11 + $0xd0] sm:$0x3]  ;;  %v3524_v61 = vld [vmem:[%s4078_s11 + $0xe8] sm:$0x3] }
  0x62   : > { %421 = vst [vmem:[%s4083_s22 + $0x60] sm:$0xff] %v3506_v44  ;;  %v3526_v62 = vld [vmem:[%s4078_s11 + $0x100] sm:$0x3]  ;;  %v3528_v63 = vld [vmem:[%s4078_s11 + $0x118] sm:$0x3] }
  0x63   : > { %423 = vst [vmem:[%s4083_s22 + $0x68] sm:$0xff] %v3507_v45  ;;  %v3530_v0 = vld [vmem:[%s4078_s11 + $0x130] sm:$0x3]  ;;  %v3532_v1 = vld [vmem:[%s4078_s11 + $0x148] sm:$0x3] }
  0x64   : > { %425 = vst [vmem:[%s4083_s22 + $0x78] sm:$0xff] %v3508_v46  ;;  %v3534_v2 = vld [vmem:[%s4078_s11 + $0x160] sm:$0x3]  ;;  %v3536_v3 = vld [vmem:[%s4078_s11 + $0x178] sm:$0x3] }
  0x65   : > { %427 = vst [vmem:[%s4083_s22 + $0x80] sm:$0xff] %v3509_v47  ;;  %v3538_v4 = vld [vmem:[%s4078_s11 + $0x190] sm:$0x3]  ;;  %v3540_v5 = vld [vmem:[%s4078_s11 + $0x1a8] sm:$0x3] }
  0x66   : > { %429 = vst [vmem:[%s4083_s22 + $0x90] sm:$0xff] %v3510_v48  ;;  %v3542_v6 = vld [vmem:[%s4078_s11 + $0x1c0] sm:$0x3]  ;;  %v3544_v7 = vld [vmem:[%s4078_s11 + $0x1d8] sm:$0x3] }
  0x67   : > { %431 = vst [vmem:[%s4083_s22 + $0x98] sm:$0xff] %v3511_v49 }
  0x68   : > { %433 = vst [vmem:[%s4083_s22 + $0xa8] sm:$0xff] %v3512_v50 }
  0x69   : > { %435 = vst [vmem:[%s4083_s22 + $0xb0] sm:$0xff] %v3513_v51 }
  0x6a   : > { %437 = vst [vmem:[%s4083_s22 + $0xc0] sm:$0xff] %v3514_v52 }
  0x6b   : > { %439 = vst [vmem:[%s4083_s22 + $0xc8] sm:$0xff] %v3515_v53 }
  0x6c   : > { %441 = vst [vmem:[%s4083_s22 + $0xd8] sm:$0xff] %v3516_v54 }
  0x6d   : > { %443 = vst [vmem:[%s4083_s22 + $0xe0] sm:$0xff] %v3517_v55 }
  0x6e   : > { %445 = vst [vmem:[%s4083_s22 + $0xf0] sm:$0xff] %v3518_v56 }
  0x6f   : > { %447 = vst [vmem:[%s4083_s22 + $0xf8] sm:$0xff] %v3519_v57 }
  0x70   : > { %449 = vst [vmem:[%s4083_s22 + $0x108] sm:$0xff] %v3520_v58 }
  0x71   : > { %451 = vst [vmem:[%s4083_s22 + $0x110] sm:$0xff] %v3521_v59 }
  0x72   : > { %3523 = vst [vmem:[%s4083_s22 + $0x10] sm:$0x3] %v3522_v60 }
  0x73   : > { %3525 = vst [vmem:[%s4083_s22 + $0x28] sm:$0x3] %v3524_v61 }
  0x74   : > { %3527 = vst [vmem:[%s4083_s22 + $0x40] sm:$0x3] %v3526_v62 }
  0x75   : > { %3529 = vst [vmem:[%s4083_s22 + $0x58] sm:$0x3] %v3528_v63 }
  0x76   : > { %3531 = vst [vmem:[%s4083_s22 + $0x70] sm:$0x3] %v3530_v0 }
  0x77   : > { %3533 = vst [vmem:[%s4083_s22 + $0x88] sm:$0x3] %v3532_v1 }
  0x78   : > { %3535 = vst [vmem:[%s4083_s22 + $0xa0] sm:$0x3] %v3534_v2 }
  0x79   : > { %3537 = vst [vmem:[%s4083_s22 + $0xb8] sm:$0x3] %v3536_v3 }
  0x7a   : > { %3539 = vst [vmem:[%s4083_s22 + $0xd0] sm:$0x3] %v3538_v4 }
  0x7b   : > { %3541 = vst [vmem:[%s4083_s22 + $0xe8] sm:$0x3] %v3540_v5 }
  0x7c   : > { %3543 = vst [vmem:[%s4083_s22 + $0x100] sm:$0x3] %v3542_v6 }
  0x7d   : > { %3545 = vst [vmem:[%s4083_s22 + $0x118] sm:$0x3] %v3544_v7 }
  0x7e   : > { %489 = vsyncadd %s391_s4, 3456 }
  0x7f PF: > { %v1019_v8 = vld [vmem:[%s6097_s1 + $0x1f8] sm:$0xff]  ;;  %v1018_v10 = vld [vmem:[%s6097_s1 + $0x1f0] sm:$0xff]  ;;  %v1017_v12 = vld [vmem:[%s6097_s1 + $0x1e8] sm:$0xff]  ;;  %vm576_vm0 = vcmask 1046528   ;;  %vm667_vm1 = vcmask 1045504  }
  0x80   : > { %v1035_v9 = vld [vmem:[%s6097_s1 + $0x278] sm:$0xff]  ;;  %1052 = vmatpush.msra.mxu0 %v1019_v8  ;;  %v1034_v11 = vld [vmem:[%s6097_s1 + $0x270] sm:$0xff]  ;;  %v1033_v13 = vld [vmem:[%s6097_s1 + $0x268] sm:$0xff] }
  0x81   : > { %1129 = vmatpush.msra.mxu1 %v1035_v9  ;;  %3558 = vmatpush.msra.mxu3 %v1035_v9  ;;  %v1016_v14 = vld [vmem:[%s6097_s1 + $0x1e0] sm:$0xff]  ;;  %v1015_v16 = vld [vmem:[%s6097_s1 + $0x1d8] sm:$0xff]  ;;  %v1014_v18 = vld [vmem:[%s6097_s1 + $0x1d0] sm:$0xff] }
  0x82   : > { %1053 = vmatpush.msra.mxu0 %v1018_v10  ;;  %v1032_v15 = vld [vmem:[%s6097_s1 + $0x260] sm:$0xff]  ;;  %v1031_v17 = vld [vmem:[%s6097_s1 + $0x258] sm:$0xff]  ;;  %v1030_v19 = vld [vmem:[%s6097_s1 + $0x250] sm:$0xff] }
  0x83   : > { %1130 = vmatpush.msra.mxu1 %v1034_v11  ;;  %3559 = vmatpush.msra.mxu3 %v1034_v11  ;;  %v1013_v20 = vld [vmem:[%s6097_s1 + $0x1c8] sm:$0xff]  ;;  %v1012_v22 = vld [vmem:[%s6097_s1 + $0x1c0] sm:$0xff]  ;;  %v4223_v32 = vld [vmem:[%s6097_s1 + $0x2f8] sm:$0xff] }
  0x84   : > { %1054 = vmatpush.msra.mxu0 %v1017_v12  ;;  %v1029_v21 = vld [vmem:[%s6097_s1 + $0x248] sm:$0xff]  ;;  %v1028_v23 = vld [vmem:[%s6097_s1 + $0x240] sm:$0xff]  ;;  %v4205_v24 = vld [vmem:[%s4066_s9 + $0x18] sm:$0xff]  ;;  %3574 = vmatpush.msra.mxu2 %v4223_v32 }
  0x85   : > { %1131 = vmatpush.msra.mxu1 %v1033_v13  ;;  %3560 = vmatpush.msra.mxu3 %v1033_v13  ;;  %v4208_v25 = vld [vmem:[%s4066_s9 + $0x20] sm:$0xff]  ;;  %v582_v26 = vrot.slane %v4205_v24, 1  ;;  %v4212_v27 = vld [vmem:[%s4066_s9 + $0xb0] sm:$0xff]  ;;  %v4215_v28 = vld [vmem:[%s4066_s9 + $0xb8] sm:$0x3] }
  0x86   : > { %1055 = vmatpush.msra.mxu0 %v1016_v14  ;;  %v583_v29 = vrot.slane %v4208_v25, 1  ;;  %v613_v30 = vrot.slane %v4212_v27, 1  ;;  %v615_v31 = vrot.slane %v4215_v28, 1  ;;  %v4226_v33 = vld [vmem:[%s4066_s9 + $0xc0] sm:$0xff]  ;;  %v4229_v34 = vld [vmem:[%s4066_s9 + $0x28] sm:$0x3] }
  0x87   : > { %1132 = vmatpush.msra.mxu1 %v1032_v15  ;;  %3561 = vmatpush.msra.mxu3 %v1032_v15  ;;  %v4232_v35 = vld [vmem:[%s4066_s9 + $0xc8] sm:$0xff]  ;;  %v4237_v36 = vld [vmem:[%s6097_s1 + $0x2f0] sm:$0xff]  ;;  %v1011_v37 = vld [vmem:[%s6097_s1 + $0x1b8] sm:$0xff]  ;;  %v585_v40 = vrot.slane %v4229_v34, 1  ;;  %881 = vst [vmem:[#allocation4 + $0x50] sm:$0xff] %v4226_v33  ;;  %v617_v43 = vrot.slane %v4226_v33, 1 }
  0x88   : > { %1056 = vmatpush.msra.mxu0 %v1015_v16  ;;  %v1027_v38 = vld [vmem:[%s6097_s1 + $0x238] sm:$0xff]  ;;  %v4246_v39 = vsel %vm576_vm0, %v582_v26, %v583_v29  ;;  %v1010_v41 = vld [vmem:[%s6097_s1 + $0x1b0] sm:$0xff]  ;;  %v4262_v44 = vsel %vm576_vm0, %v613_v30, %v615_v31  ;;  %v618_v45 = vrot.slane %v4232_v35, 1  ;;  %3575 = vmatpush.msra.mxu2 %v4237_v36  ;;  %v4276_v48 = vld [vmem:[%s6097_s1 + $0x2e8] sm:$0xff]  ;;  %1525 = vst [vmem:[#allocation4 + $0x1c8] sm:$0xff] %v4212_v27 }
  0x89   : > { %1133 = vmatpush.msra.mxu1 %v1031_v17  ;;  %3562 = vmatpush.msra.mxu3 %v1031_v17  ;;  %v1026_v42 = vld [vmem:[%s6097_s1 + $0x230] sm:$0xff]  ;;  %649 = vst [vmem:[#allocation4 + $0x178] sm:$0xff] %v4246_v39  ;;  %v4271_v47 = vld [vmem:[%s4066_s9 + $0x38] sm:$0xff]  ;;  %v1009_v49 = vld [vmem:[%s6097_s1 + $0x1a8] sm:$0xff]  ;;  %v4286_v51 = vsel %vm576_vm0, %v583_v29, %v585_v40 }
  0x8a   : > { %1057 = vmatpush.msra.mxu0 %v1014_v18  ;;  %6134 = vst [vmem:[#allocation17_spill] sm:$0xff] %v4262_v44  ;;  %v4268_v46 = vld [vmem:[%s4066_s9 + $0x30] sm:$0xff]  ;;  %v1025_v50 = vld [vmem:[%s6097_s1 + $0x228] sm:$0xff]  ;;  %3576 = vmatpush.msra.mxu2 %v4276_v48  ;;  %v1008_v52 = vld [vmem:[%s6097_s1 + $0x1a0] sm:$0xff]  ;;  %v4297_v54 = vsel %vm576_vm0, %v617_v43, %v618_v45  ;;  %v588_v56 = vrot.slane %v4271_v47, 1 }
  0x8b   : > { %1134 = vmatpush.msra.mxu1 %v1030_v19  ;;  %3563 = vmatpush.msra.mxu3 %v1030_v19  ;;  %910 = vst [vmem:[#allocation4 + $0x2f8] sm:$0xff] %v4262_v44  ;;  %v1024_v53 = vld [vmem:[%s6097_s1 + $0x220] sm:$0xff]  ;;  %v587_v55 = vrot.slane %v4268_v46, 1  ;;  %v4302_v57 = vld [vmem:[%s4066_s9 + $0xd0] sm:$0x3]  ;;  %v1007_v58 = vld [vmem:[%s6097_s1 + $0x198] sm:$0xff] }
  0x8c   : > { %1058 = vmatpush.msra.mxu0 %v1013_v20  ;;  %662 = vst [vmem:[#allocation4 + $0x3a8] sm:$0xff] %v4262_v44  ;;  %v1023_v59 = vld [vmem:[%s6097_s1 + $0x218] sm:$0xff]  ;;  %v4313_v60 = vld [vmem:[%s4066_s9 + $0x40] sm:$0x3]  ;;  %v1006_v61 = vld [vmem:[%s6097_s1 + $0x190] sm:$0xff]  ;;  %v620_v62 = vrot.slane %v4302_v57, 1 }
  0x8d   : > { %1135 = vmatpush.msra.mxu1 %v1029_v21  ;;  %3564 = vmatpush.msra.mxu3 %v1029_v21  ;;  %650 = vst [vmem:[#allocation4 + $0x88] sm:$0xff] %v4286_v51  ;;  %v1022_v63 = vld [vmem:[%s6097_s1 + $0x210] sm:$0xff]  ;;  %v4324_v0 = vsel %vm576_vm0, %v587_v55, %v588_v56  ;;  %v4327_v1 = vld [vmem:[%s4066_s9 + $0xd8] sm:$0xff]  ;;  %v4330_v2 = vld [vmem:[%s4066_s9 + $0xe0] sm:$0xff]  ;;  %v590_v3 = vrot.slane %v4313_v60, 1 }
  0x8e   : > { %1059 = vmatpush.msra.mxu0 %v1012_v22  ;;  %6135 = vst [vmem:[#allocation18_spill] sm:$0xff] %v4297_v54  ;;  %v4337_v4 = vld [vmem:[%s6097_s1 + $0x2e0] sm:$0xff]  ;;  %v1005_v5 = vld [vmem:[%s6097_s1 + $0x188] sm:$0xff]  ;;  %v4350_v7 = vld [vmem:[%s6097_s1 + $0x2d8] sm:$0xff]  ;;  %v4354_v8 = vsel %vm576_vm0, %v618_v45, %v620_v62  ;;  %v622_v9 = vrot.slane %v4327_v1, 1  ;;  %v623_v10 = vrot.slane %v4330_v2, 1 }
  0x8f   : > { %1136 = vmatpush.msra.mxu1 %v1028_v23  ;;  %3565 = vmatpush.msra.mxu3 %v1028_v23  ;;  %911 = vst [vmem:[#allocation4 + $0x348] sm:$0xff] %v4297_v54  ;;  %v1021_v6 = vld [vmem:[%s6097_s1 + $0x208] sm:$0xff]  ;;  %v4361_v11 = vld [vmem:[%s6097_s1 + $0x2d0] sm:$0xff]  ;;  %v1004_v12 = vld [vmem:[%s6097_s1 + $0x180] sm:$0xff]  ;;  %v4373_v14 = vsel %vm576_vm0, %v588_v56, %v590_v3 }
  0x90   : > { %1060 = vmatpush.msra.mxu0 %v1011_v37  ;;  %663 = vst [vmem:[#allocation4] sm:$0xff] %v4297_v54  ;;  %3577 = vmatpush.msra.mxu2 %v4337_v4  ;;  %v1020_v13 = vld [vmem:[%s6097_s1 + $0x200] sm:$0xff]  ;;  %v4378_v15 = vld [vmem:[%s4066_s9 + $0x48] sm:$0xff]  ;;  %v4381_v16 = vld [vmem:[%s4066_s9 + $0x50] sm:$0xff]  ;;  %v4385_v17 = vsel %vm576_vm0, %v622_v9, %v623_v10 }
  0x91   : > { %1137 = vmatpush.msra.mxu1 %v1027_v38  ;;  %3566 = vmatpush.msra.mxu3 %v1027_v38  ;;  %869 = vst [vmem:[#allocation4 + $0xa8] sm:$0xff] %v4268_v46  ;;  %v833_v18 = vld [vmem:[%s6097_s1 + $0x78] sm:$0xff]  ;;  %v832_v19 = vld [vmem:[%s6097_s1 + $0x70] sm:$0xff]  ;;  %v592_v20 = vrot.slane %v4378_v15, 1  ;;  %v593_v21 = vrot.slane %v4381_v16, 1  ;;  %v4406_v23 = vld [vmem:[%s6097_s1 + $0x2c8] sm:$0xff] }
  0x92   : > { %1061 = vmatpush.msra.mxu0 %v1010_v41  ;;  %6136 = vst [vmem:[#allocation19_spill] sm:$0xff] %v4324_v0  ;;  %3578 = vmatpush.msra.mxu2 %v4350_v7  ;;  %v4401_v22 = vld [vmem:[%s4066_s9 + $0xe8] sm:$0x3]  ;;  %v4413_v26 = vld [vmem:[%s6097_s1 + $0x2c0] sm:$0xff]  ;;  %v4427_v37 = vld [vmem:[%s6097_s1 + $0x2b8] sm:$0xff] }
  0x93   : > { %1138 = vmatpush.msra.mxu1 %v1026_v42  ;;  %3567 = vmatpush.msra.mxu3 %v1026_v42  ;;  %899 = vst [vmem:[#allocation4 + $0x2d0] sm:$0xff] %v4324_v0  ;;  %v831_v29 = vld [vmem:[%s6097_s1 + $0x68] sm:$0xff]  ;;  %v830_v31 = vld [vmem:[%s6097_s1 + $0x60] sm:$0xff]  ;;  %v4431_v38 = vsel %vm576_vm0, %v592_v20, %v593_v21  ;;  %v4441_v40 = vld [vmem:[%s4066_s9 + $0xf8] sm:$0xff] }
  0x94   : > { %1062 = vmatpush.msra.mxu0 %v1009_v49  ;;  %651 = vst [vmem:[#allocation4 + $0x338] sm:$0xff] %v4324_v0  ;;  %3579 = vmatpush.msra.mxu2 %v4361_v11  ;;  %v829_v42 = vld [vmem:[%s6097_s1 + $0x58] sm:$0xff]  ;;  %v4458_v45 = vld [vmem:[%s6097_s1 + $0x2b0] sm:$0xff]  ;;  %v891_v49 = vrot.slane %v4441_v40, 1  ;;  %v4484_v55 = vld [vmem:[%s4066_s9 + $0x60] sm:$0xff] }
  0x95   : > { %1139 = vmatpush.msra.mxu1 %v1025_v50  ;;  %3568 = vmatpush.msra.mxu3 %v1025_v50  ;;  %870 = vst [vmem:[#allocation4 + $0x2d8] sm:$0xff] %v4271_v47  ;;  %v828_v50 = vld [vmem:[%s6097_s1 + $0x50] sm:$0xff]  ;;  %v4505_v62 = vld [vmem:[%s4066_s9 + $0x100] sm:$0x3] }
  0x96   : > { %1063 = vmatpush.msra.mxu0 %v1008_v52  ;;  %6137 = vst [vmem:[#allocation20_spill] sm:$0xff] %v4354_v8  ;;  %3580 = vmatpush.msra.mxu2 %v4406_v23  ;;  %v824_v9 = vld [vmem:[%s6097_s1 + $0x30] sm:$0xff] }
  0x97   : > { %1140 = vmatpush.msra.mxu1 %v1024_v53  ;;  %3569 = vmatpush.msra.mxu3 %v1024_v53  ;;  %912 = vst [vmem:[#allocation4 + $0x2a0] sm:$0xff] %v4354_v8  ;;  %v827_v53 = vld [vmem:[%s6097_s1 + $0x48] sm:$0xff] }
  0x98   : > { %1064 = vmatpush.msra.mxu0 %v1007_v58  ;;  %664 = vst [vmem:[#allocation4 + $0x218] sm:$0xff] %v4354_v8  ;;  %3581 = vmatpush.msra.mxu2 %v4413_v26  ;;  %v4494_v58 = vld [vmem:[%s6097_s1 + $0x2a0] sm:$0xff] }
  0x99   : > { %1141 = vmatpush.msra.mxu1 %v1023_v59  ;;  %3570 = vmatpush.msra.mxu3 %v1023_v59  ;;  %6138 = vst [vmem:[#allocation21_spill] sm:$0xff] %v4373_v14  ;;  %v826_v59 = vld [vmem:[%s6097_s1 + $0x40] sm:$0xff] }
  0x9a   : > { %1065 = vmatpush.msra.mxu0 %v1006_v61  ;;  %900 = vst [vmem:[#allocation4 + $0x230] sm:$0xff] %v4373_v14  ;;  %3582 = vmatpush.msra.mxu2 %v4427_v37  ;;  %v4502_v61 = vld [vmem:[%s4066_s9 + $0x68] sm:$0xff] }
  0x9b   : > { %1142 = vmatpush.msra.mxu1 %v1022_v63  ;;  %3571 = vmatpush.msra.mxu3 %v1022_v63  ;;  %652 = vst [vmem:[#allocation4 + $0x200] sm:$0xff] %v4373_v14  ;;  %v597_v63 = vrot.slane %v4484_v55, 1  ;;  %v598_v3 = vrot.slane %v4502_v61, 1 }
  0x9c   : > { %1066 = vmatpush.msra.mxu0 %v1005_v5  ;;  %6139 = vst [vmem:[#allocation22_spill] sm:$0xff] %v4385_v17  ;;  %3583 = vmatpush.msra.mxu2 %v4458_v45  ;;  %v4517_v5 = vld [vmem:[%s6097_s1 + $0x298] sm:$0xff] }
  0x9d   : > { %1143 = vmatpush.msra.mxu1 %v1021_v6  ;;  %3572 = vmatpush.msra.mxu3 %v1021_v6  ;;  %913 = vst [vmem:[#allocation4 + $0x248] sm:$0xff] %v4385_v17  ;;  %v893_v6 = vrot.slane %v4505_v62, 1 }
  0x9e   : > { %1067 = vmatpush.msra.mxu0 %v1004_v12  ;;  %545 = vst [vmem:[#allocation4 + $0x250] sm:$0xff] %v4330_v2  ;;  %v504_v12 = vld [vmem:[%s4066_s9 + $0x70] sm:$0x3] }
  0x9f   : > { %1144 = vmatpush.msra.mxu1 %v1020_v13  ;;  %3573 = vmatpush.msra.mxu3 %v1020_v13  ;;  %665 = vst [vmem:[#allocation4 + $0xe8] sm:$0xff] %v4385_v17  ;;  %v823_v13 = vld [vmem:[%s6097_s1 + $0x28] sm:$0xff]  ;;  %v691_v20 = vrot.slane %v504_v12, 2 }
  0xa0   : > { %1068 = vmatmul.f32.vlgmr.msra.gmra.mxu0 %v4205_v24  ;;  %1145 = vmatmul.f32.vlgmr.msra.gmra.mxu1 %v4246_v39  ;;  %871 = vst [vmem:[#allocation4 + $0x90] sm:$0xff] %v4378_v15  ;;  %v4438_v39 = vld [vmem:[%s4066_s9 + $0xf0] sm:$0xff] }
  0xa1   : > { %1184 = vmatmul.f32.vlgmr.msra.gmra.mxu3 %v4262_v44  ;;  %1206 = vmatpush.msrb.mxu0 %v4223_v32  ;;  %v625_v32 = vrot.slane %v4401_v22, 1  ;;  %6140 = vst [vmem:[#allocation23_spill] sm:$0xff] %v4431_v38 }
  0xa2   : > { %1283 = vmatpush.msrb.mxu3 %v833_v18  ;;  %901 = vst [vmem:[#allocation4 + $0x3b0] sm:$0xff] %v4431_v38  ;;  %v4543_v18 = vsel %vm576_vm0, %v891_v49, %v893_v6 }
  0xa3   : > { %1207 = vmatpush.msrb.mxu0 %v4237_v36  ;;  %v4435_v36 = vld [vmem:[%s4066_s9 + $0x58] sm:$0x3]  ;;  %653 = vst [vmem:[#allocation4 + $0x2b0] sm:$0xff] %v4431_v38  ;;  %v4453_v43 = vsel %vm576_vm0, %v623_v10, %v625_v32  ;;  %v4532_v10 = vld [vmem:[%s6097_s1 + $0x290] sm:$0xff]  ;;  %v4568_v32 = vld [vmem:[%s6097_s1 + $0x280] sm:$0xff] }
  0xa4   : > { %1284 = vmatpush.msrb.mxu3 %v832_v19  ;;  %v595_v41 = vrot.slane %v4435_v36, 1  ;;  %6141 = vst [vmem:[#allocation24_spill] sm:$0xff] %v4453_v43  ;;  %v4548_v19 = vld [vmem:[%s6097_s1 + $0x288] sm:$0xff] }
  0xa5   : > { %1208 = vmatpush.msrb.mxu0 %v4276_v48  ;;  %v890_v48 = vrot.slane %v4438_v39, 1  ;;  %914 = vst [vmem:[#allocation4 + $0x130] sm:$0xff] %v4453_v43 }
  0xa6   : > { %1285 = vmatpush.msrb.mxu3 %v831_v29  ;;  %666 = vst [vmem:[#allocation4 + $0xc8] sm:$0xff] %v4453_v43  ;;  %v4471_v52 = vsel %vm576_vm0, %v593_v21, %v595_v41  ;;  %v822_v21 = vld [vmem:[%s6097_s1 + $0x20] sm:$0xff]  ;;  %v820_v41 = vld [vmem:[%s6097_s1 + $0x10] sm:$0xff] }
  0xa7   : > { %1209 = vmatpush.msrb.mxu0 %v4337_v4  ;;  %6142 = vst [vmem:[#allocation25_spill] sm:$0xff] %v4471_v52  ;;  %v4488_v56 = vsel %vm576_vm0, %v890_v48, %v891_v49  ;;  %v825_v4 = vld [vmem:[%s6097_s1 + $0x38] sm:$0xff] }
  0xa8   : > { %1071 = vmatmul.f32.gmra.mxu0 %v4208_v25  ;;  %1286 = vmatpush.msrb.mxu3 %v830_v31  ;;  %902 = vst [vmem:[#allocation4 + $0x70] sm:$0xff] %v4471_v52  ;;  %v821_v31 = vld [vmem:[%s6097_s1 + $0x18] sm:$0xff] }
  0xa9   : > { %1148 = vmatmul.f32.gmra.mxu1 %v4286_v51  ;;  %1187 = vmatmul.f32.gmra.mxu3 %v4297_v54  ;;  %v4476_v51 = vld [vmem:[%s6097_s1 + $0x2a8] sm:$0xff]  ;;  %654 = vst [vmem:[#allocation4 + $0x1b8] sm:$0xff] %v4471_v52 }
  0xaa   : > { %1287 = vmatpush.msrb.mxu3 %v829_v42  ;;  %1210 = vmatpush.msrb.mxu0 %v4350_v7  ;;  %915 = vst [vmem:[#allocation4 + $0x108] sm:$0xff] %v4488_v56  ;;  %v4522_v7 = vsel %vm576_vm0, %v597_v63, %v598_v3  ;;  %v4583_v42 = vld [vmem:[%s4066_s9 + $0x78] sm:$0xff] }
  0xab   : > { %3584 = vmatpush.msra.mxu2 %v4476_v51  ;;  %6143 = vst [vmem:[#allocation26_spill] sm:$0xff] %v4522_v7  ;;  %v693_v48 = vrot.slane %v4583_v42, 2  ;;  %v602_v63 = vrot.slane %v4583_v42, 1 }
  0xac   : > { %1288 = vmatpush.msrb.mxu3 %v828_v50  ;;  %1211 = vmatpush.msrb.mxu0 %v4361_v11  ;;  %903 = vst [vmem:[#allocation4 + $0x198] sm:$0xff] %v4522_v7  ;;  %v689_v11 = vrot.slane %v4502_v61, 2  ;;  %v819_v50 = vld [vmem:[%s6097_s1 + $0x8] sm:$0xff] }
  0xad   : > { %3585 = vmatpush.msra.mxu2 %v4494_v58  ;;  %655 = vst [vmem:[#allocation4 + $0x160] sm:$0xff] %v4522_v7 }
  0xae   : > { %1289 = vmatpush.msrb.mxu3 %v827_v53  ;;  %1212 = vmatpush.msrb.mxu0 %v4406_v23  ;;  %916 = vst [vmem:[#allocation4 + $0x258] sm:$0xff] %v4543_v18  ;;  %v692_v29 = vsel %vm667_vm1, %v689_v11, %v691_v20  ;;  %v600_v23 = vrot.slane %v504_v12, 1 }
  0xaf   : > { %3586 = vmatpush.msra.mxu2 %v4517_v5  ;;  %1514 = vst [vmem:[#allocation4 + $0x278] sm:$0xff] %v4268_v46 }
  0xb0   : > { %1074 = vmatmul.f32.gmra.mxu0 %v4268_v46  ;;  %1290 = vmatpush.msrb.mxu3 %v826_v59  ;;  %931 = vst [vmem:[#allocation4 + $0x288] sm:$0xff] %v692_v29  ;;  %v818_v59 = vld [vmem:[%s6097_s1] sm:$0xff] }
  0xb1   : > { %1151 = vmatmul.f32.gmra.mxu1 %v4324_v0  ;;  %1190 = vmatmul.f32.gmra.mxu3 %v4354_v8  ;;  %747 = vst [vmem:[#allocation4 + $0x2a8] sm:$0xff] %v692_v29 }
  0xb2   : > { %1291 = vmatpush.msrb.mxu3 %v825_v4  ;;  %3587 = vmatpush.msra.mxu2 %v4532_v10  ;;  %1515 = vst [vmem:[#allocation4 + $0x3a0] sm:$0xff] %v4271_v47 }
  0xb3   : > { %1213 = vmatpush.msrb.mxu0 %v4413_v26  ;;  %v4573_v26 = vsel %vm576_vm0, %v598_v3, %v600_v23  ;;  %1516 = vst [vmem:[#allocation4 + $0xb0] sm:$0xff] %v4378_v15 }
  0xb4   : > { %1292 = vmatpush.msrb.mxu3 %v824_v9  ;;  %3588 = vmatpush.msra.mxu2 %v4548_v19  ;;  %6144 = vst [vmem:[#allocation27_spill] sm:$0xff] %v4573_v26  ;;  %v4631_v9 = vld [vmem:[%s4066_s9 + $0x90] sm:$0xff] }
  0xb5   : > { %1214 = vmatpush.msrb.mxu0 %v4427_v37  ;;  %904 = vst [vmem:[#allocation4 + $0x78] sm:$0xff] %v4573_v26  ;;  %v4586_v37 = vld [vmem:[%s4066_s9 + $0x80] sm:$0xff]  ;;  %v698_v12 = vrot.slane %v4631_v9, 2 }
  0xb6   : > { %1293 = vmatpush.msrb.mxu3 %v823_v13  ;;  %3589 = vmatpush.msra.mxu2 %v4568_v32  ;;  %656 = vst [vmem:[#allocation4 + $0x390] sm:$0xff] %v4573_v26  ;;  %v694_v49 = vrot.slane %v4586_v37, 2  ;;  %v603_v3 = vrot.slane %v4586_v37, 1 }
  0xb7   : > { %1243 = vmatmul.f32.vlgmr.msra.gmra.mxu2 %v692_v29  ;;  %1215 = vmatpush.msrb.mxu0 %v4458_v45  ;;  %1517 = vst [vmem:[#allocation4 + $0x48] sm:$0xff] %v4381_v16  ;;  %v510_v29 = vld [vmem:[%s4066_s9 + $0xa0] sm:$0x3] }
  0xb8   : > { %1077 = vmatmul.f32.gmra.mxu0 %v4271_v47  ;;  %1294 = vmatpush.msrb.mxu3 %v822_v21  ;;  %v695_v53 = vsel %vm667_vm1, %v693_v48, %v694_v49  ;;  %v4607_v45 = vsel %vm576_vm0, %v602_v63, %v603_v3  ;;  %1518 = vst [vmem:[#allocation4 + $0xf0] sm:$0xff] %v4484_v55  ;;  %v701_v23 = vrot.slane %v510_v29, 2  ;;  %v4674_v48 = vld [vmem:[%s4066_s9 + $0xa8] sm:$0xff] }
  0xb9   : > { %1154 = vmatmul.f32.gmra.mxu1 %v4373_v14  ;;  %1193 = vmatmul.f32.gmra.mxu3 %v4385_v17  ;;  %932 = vst [vmem:[#allocation4 + $0x118] sm:$0xff] %v695_v53  ;;  %v612_v63 = vrot.slane %v4674_v48, 1 }
  0xba   : > { %1295 = vmatpush.msrb.mxu3 %v821_v31  ;;  %1216 = vmatpush.msrb.mxu0 %v4476_v51  ;;  %748 = vst [vmem:[#allocation4 + $0x208] sm:$0xff] %v695_v53  ;;  %v507_v51 = vld [vmem:[%s4066_s9 + $0x88] sm:$0x3] }
  0xbb   : > { %6145 = vst [vmem:[#allocation28_spill] sm:$0xff] %v4607_v45  ;;  %v696_v4 = vrot.slane %v507_v51, 2  ;;  %v605_v6 = vrot.slane %v507_v51, 1  ;;  %v706_v51 = vrot.slane %v4215_v28, 2  ;;  %v708_v28 = vrot.slane %v4226_v33, 2 }
  0xbc   : > { %1296 = vmatpush.msrb.mxu3 %v820_v41  ;;  %1217 = vmatpush.msrb.mxu0 %v4494_v58  ;;  %905 = vst [vmem:[#allocation4 + $0x188] sm:$0xff] %v4607_v45 }
  0xbd   : > { %657 = vst [vmem:[#allocation4 + $0xf8] sm:$0xff] %v4607_v45  ;;  %v697_v58 = vsel %vm667_vm1, %v694_v49, %v696_v4  ;;  %v704_v49 = vrot.slane %v4212_v27, 2 }
  0xbe   : > { %1297 = vmatpush.msrb.mxu3 %v819_v50  ;;  %1218 = vmatpush.msrb.mxu0 %v4517_v5  ;;  %1519 = vst [vmem:[#allocation4 + $0x2c8] sm:$0xff] %v4502_v61  ;;  %v4624_v5 = vsel %vm576_vm0, %v603_v3, %v605_v6  ;;  %v703_v50 = vrot.slane %v4674_v48, 2  ;;  %v4695_v3 = vsel %vm576_vm0, %v612_v63, %v613_v30  ;;  %v709_v30 = vrot.slane %v4232_v35, 2 }
  0xbf   : > { %1246 = vmatmul.f32.gmra.mxu2 %v695_v53  ;;  %933 = vst [vmem:[#allocation4 + $0x260] sm:$0xff] %v697_v58  ;;  %v4705_v4 = vsel %vm667_vm1, %v704_v49, %v706_v51  ;;  %v711_v6 = vrot.slane %v4302_v57, 2  ;;  %v674_v63 = vrot.slane %v4208_v25, 2  ;;  %v849_v51 = vld [vmem:[%s6097_s1 + $0xf8] sm:$0xff] }
  0xc0   : > { %1080 = vmatmul.f32.gmra.mxu0 %v4378_v15  ;;  %1298 = vmatpush.msrb.mxu3 %v818_v59  ;;  %749 = vst [vmem:[#allocation4 + $0x2e8] sm:$0xff] %v697_v58  ;;  %v4681_v53 = vsel %vm667_vm1, %v703_v50, %v704_v49  ;;  %v4686_v59 = vld [vmem:[%s4066_s9 + $0x8] sm:$0xff] }
  0xc1   : > { %1157 = vmatmul.f32.gmra.mxu1 %v4431_v38  ;;  %1196 = vmatmul.f32.gmra.mxu3 %v4453_v43  ;;  %1520 = vst [vmem:[#allocation4 + $0x220] sm:$0xff] %v4583_v42  ;;  %v1681_v43 = vld [vmem:[%s6097_s1 + $0x3f0] sm:$0xff]  ;;  %v6159_v54 = vrot.slane %v4686_v59, 1 }
  0xc2   : > { %1219 = vmatpush.msrb.mxu0 %v4532_v10  ;;  %6146 = vst [vmem:[#allocation29_spill] sm:$0xff] %v4624_v5  ;;  %v4634_v10 = vld [vmem:[%s4066_s9 + $0x98] sm:$0xff] }
  0xc3   : > { %1521 = vst [vmem:[#allocation4 + $0xd8] sm:$0xff] %v4586_v37  ;;  %v699_v13 = vrot.slane %v4634_v10, 2  ;;  %v608_v20 = vrot.slane %v4634_v10, 1 }
  0xc4   : > { %1220 = vmatpush.msrb.mxu0 %v4548_v19  ;;  %906 = vst [vmem:[#allocation4 + $0x10] sm:$0xff] %v4624_v5 }
  0xc5   : > { %658 = vst [vmem:[#allocation4 + $0x18] sm:$0xff] %v4624_v5  ;;  %v700_v19 = vsel %vm667_vm1, %v698_v12, %v699_v13  ;;  %v4656_v31 = vsel %vm667_vm1, %v699_v13, %v701_v23  ;;  %v4727_v12 = vsel %vm667_vm1, %v709_v30, %v711_v6  ;;  %v713_v13 = vrot.slane %v4327_v1, 2  ;;  %v847_v6 = vld [vmem:[%s6097_s1 + $0xe8] sm:$0xff] }
  0xc6   : > { %1221 = vmatpush.msrb.mxu0 %v4568_v32  ;;  %934 = vst [vmem:[#allocation4 + $0x80] sm:$0xff] %v700_v19  ;;  %v4661_v32 = vld [vmem:[%s4066_s9] sm:$0xff]  ;;  %v918_v23 = vrot.slane %v4441_v40, 2 }
  0xc7   : > { %1249 = vmatmul.f32.gmra.mxu2 %v697_v58  ;;  %750 = vst [vmem:[#allocation4 + $0x168] sm:$0xff] %v700_v19  ;;  %v4717_v58 = vsel %vm667_vm1, %v708_v28, %v709_v30 }
  0xc8   : > { %1083 = vmatmul.f32.gmra.mxu0 %v4381_v16  ;;  %1522 = vst [vmem:[#allocation4 + $0x310] sm:$0xff] %v4631_v9 }
  0xc9   : > { %1160 = vmatmul.f32.gmra.mxu1 %v4471_v52  ;;  %1199 = vmatmul.f32.gmra.mxu3 %v4488_v56  ;;  %v607_v56 = vrot.slane %v4631_v9, 1  ;;  %1523 = vst [vmem:[#allocation4 + $0x158] sm:$0xff] %v4634_v10 }
  0xca   : > { %1526 = vst [vmem:[#allocation4 + $0x1f0] sm:$0xff] %v4226_v33  ;;  %1360 = vmatpush.msra.mxu0 %v849_v51 }
  0xcb   : > { %v4646_v21 = vsel %vm576_vm0, %v607_v56, %v608_v20  ;;  %935 = vst [vmem:[#allocation4 + $0x3b8] sm:$0xff] %v4656_v31  ;;  %v716_v56 = vrot.slane %v4401_v22, 2 }
  0xcc   : > { %6147 = vst [vmem:[#allocation30_spill] sm:$0xff] %v4646_v21 }
  0xcd   : > { %907 = vst [vmem:[#allocation4 + $0x138] sm:$0xff] %v4646_v21 }
  0xce   : > { %659 = vst [vmem:[#allocation4 + $0x28] sm:$0xff] %v4646_v21 }
  0xcf   : > { %1252 = vmatmul.f32.gmra.mxu2 %v700_v19  ;;  %751 = vst [vmem:[#allocation4 + $0x58] sm:$0xff] %v4656_v31  ;;  %v714_v19 = vrot.slane %v4330_v2, 2 }
  0xd0   : > { %1086 = vmatmul.f32.gmra.mxu0 %v4484_v55  ;;  %1527 = vst [vmem:[#allocation4 + $0x40] sm:$0xff] %v4232_v35 }
  0xd1   : > { %1163 = vmatmul.f32.gmra.mxu1 %v4522_v7  ;;  %1202 = vmatmul.f32.gmra.mxu3 %v4543_v18  ;;  %v610_v18 = vrot.slane %v510_v29, 1  ;;  %1528 = vst [vmem:[#allocation4 + $0x140] sm:$0xff] %v4327_v1  ;;  %v4738_v57 = vsel %vm667_vm1, %v713_v13, %v714_v19  ;;  %v917_v29 = vrot.slane %v4438_v39, 2 }
  0xd2   : > { %1524 = vst [vmem:[#allocation4 + $0x170] sm:$0xff] %v4674_v48 }
  0xd3   : > { %v4667_v41 = vsel %vm576_vm0, %v608_v20, %v610_v18  ;;  %936 = vst [vmem:[#allocation4 + $0x300] sm:$0xff] %v4681_v53  ;;  %v4748_v20 = vsel %vm667_vm1, %v714_v19, %v716_v56  ;;  %v4758_v22 = vsel %vm667_vm1, %v917_v29, %v918_v23  ;;  %v920_v18 = vrot.slane %v4505_v62, 2  ;;  %v846_v56 = vld [vmem:[%s6097_s1 + $0xe0] sm:$0xff] }
  0xd4   : > { %6148 = vst [vmem:[#allocation31_spill] sm:$0xff] %v4667_v41 }
  0xd5   : > { %908 = vst [vmem:[#allocation4 + $0x98] sm:$0xff] %v4667_v41  ;;  %v4766_v49 = vsel %vm667_vm1, %v918_v23, %v920_v18  ;;  %v679_v23 = vrot.slane %v4271_v47, 2 }
  0xd6   : > { %660 = vst [vmem:[#allocation4 + $0x240] sm:$0xff] %v4667_v41 }
  0xd7   : > { %1255 = vmatmul.f32.gmra.mxu2 %v4656_v31  ;;  %752 = vst [vmem:[#allocation4 + $0x20] sm:$0xff] %v4681_v53 }
  0xd8   : > { %1089 = vmatmul.f32.gmra.mxu0 %v4502_v61  ;;  %1529 = vst [vmem:[#allocation4 + $0x120] sm:$0xff] %v4330_v2 }
  0xd9   : > { %1166 = vmatmul.f32.gmra.mxu1 %v4573_v26  ;;  %1299 = vmatmul.f32.vlgmr.msrb.gmra.mxu3 %v4661_v32  ;;  %6149 = vst [vmem:[#allocation32_spill] sm:$0xff] %v4695_v3 }
  0xda   : > { %1530 = vst [vmem:[#allocation4 + $0x308] sm:$0xff] %v4438_v39 }
  0xdb   : > { %909 = vst [vmem:[#allocation4 + $0xd0] sm:$0xff] %v4695_v3 }
  0xdc   : > { %661 = vst [vmem:[#allocation4 + $0x340] sm:$0xff] %v4695_v3 }
  0xdd   : > { %1531 = vst [vmem:[#allocation4 + $0x328] sm:$0xff] %v4441_v40 }
  0xde   : > { %937 = vst [vmem:[#allocation4 + $0xb8] sm:$0xff] %v4705_v4 }
  0xdf   : > { %1258 = vmatmul.f32.gmra.mxu2 %v4681_v53  ;;  %753 = vst [vmem:[#allocation4 + $0x368] sm:$0xff] %v4705_v4 }
  0xe0   : > { %1092 = vmatmul.f32.gmra.mxu0 %v4583_v42  ;;  %938 = vst [vmem:[#allocation4 + $0x38] sm:$0xff] %v4717_v58 }
  0xe1   : > { %1169 = vmatmul.f32.gmra.mxu1 %v4607_v45  ;;  %1302 = vmatmul.f32.gmra.mxu3 %v4686_v59  ;;  %754 = vst [vmem:[#allocation4 + $0xe0] sm:$0xff] %v4717_v58 }
  0xe2   : > { %939 = vst [vmem:[#allocation4 + $0x358] sm:$0xff] %v4727_v12 }
  0xe3   : > { %755 = vst [vmem:[#allocation4 + $0x60] sm:$0xff] %v4727_v12 }
  0xe4   : > { %940 = vst [vmem:[#allocation4 + $0x2f0] sm:$0xff] %v4738_v57 }
  0xe5   : > { %756 = vst [vmem:[#allocation4 + $0xc0] sm:$0xff] %v4738_v57 }
  0xe6   : > { %941 = vst [vmem:[#allocation4 + $0x1a8] sm:$0xff] %v4748_v20 }
  0xe7   : > { %1261 = vmatmul.f32.gmra.mxu2 %v4705_v4  ;;  %757 = vst [vmem:[#allocation4 + $0x1c0] sm:$0xff] %v4748_v20 }
  0xe8   : > { %1095 = vmatmul.f32.gmra.mxu0 %v4586_v37  ;;  %942 = vst [vmem:[#allocation4 + $0x2c0] sm:$0xff] %v4758_v22 }
  0xe9   : > { %1172 = vmatmul.f32.gmra.mxu1 %v4624_v5  ;;  %1305 = vmatmul.f32.gmra.mxu3 %v4205_v24  ;;  %943 = vst [vmem:[#allocation4 + $0x398] sm:$0xff] %v4766_v49 }
  0xef   : > { %1264 = vmatmul.f32.gmra.mxu2 %v4717_v58 }
  0xf0   : > { %1098 = vmatmul.f32.gmra.mxu0 %v4631_v9 }
  0xf1   : > { %1175 = vmatmul.f32.gmra.mxu1 %v4646_v21  ;;  %1308 = vmatmul.f32.gmra.mxu3 %v4208_v25  ;;  %v676_v25 = vrot.slane %v4229_v34, 2  ;;  %v678_v34 = vrot.slane %v4268_v46, 2 }
  0xf3   : > { %v4797_v13 = vsel %vm667_vm1, %v674_v63, %v676_v25  ;;  %v683_v25 = vrot.slane %v4378_v15, 2 }
  0xf7   : > { %1267 = vmatmul.f32.gmra.mxu2 %v4727_v12 }
  0xf8   : > { %1101 = vmatmul.f32.gmra.mxu0 %v4634_v10 }
  0xf9   : > { %1178 = vmatmul.f32.gmra.mxu1 %v4667_v41  ;;  %1311 = vmatmul.f32.gmra.mxu3 %v4268_v46  ;;  %v844_v46 = vld [vmem:[%s6097_s1 + $0xd0] sm:$0xff] }
  0xff   : > { %1270 = vmatmul.f32.gmra.mxu2 %v4738_v57 }
 0x100   : > { %1104 = vmatmul.f32.gmra.mxu0 %v4674_v48 }
 0x101   : > { %1181 = vmatmul.f32.gmra.mxu1 %v4695_v3  ;;  %1314 = vmatmul.f32.gmra.mxu3 %v4271_v47 }
 0x107   : > { %1273 = vmatmul.f32.gmra.mxu2 %v4748_v20 }
 0x108   : > { %1107 = vmatmul.f32.gmra.mxu0 %v4212_v27 }
 0x109   : > { %1317 = vmatmul.f32.gmra.mxu3 %v4378_v15  ;;  %v840_v15 = vld [vmem:[%s6097_s1 + $0xb0] sm:$0xff] }
 0x10f   : > { %1276 = vmatmul.f32.gmra.mxu2 %v4758_v22 }
 0x110   : > { %1110 = vmatmul.f32.gmra.mxu0 %v4226_v33  ;;  %v673_v33 = vrot.slane %v4205_v24, 2  ;;  %v848_v24 = vld [vmem:[%s6097_s1 + $0xf0] sm:$0xff] }
 0x111   : > { %1320 = vmatmul.f32.gmra.mxu3 %v4381_v16  ;;  %1361 = vmatpush.msra.mxu0 %v848_v24  ;;  %v864_v24 = vld [vmem:[%s6097_s1 + $0x170] sm:$0xff] }
 0x112   : > { %v4778_v62 = vsel %vm667_vm1, %v673_v33, %v674_v63  ;;  %v681_v33 = vrot.slane %v4313_v60, 2  ;;  %v842_v63 = vld [vmem:[%s6097_s1 + $0xc0] sm:$0xff]  ;;  %v865_v60 = vld [vmem:[%s6097_s1 + $0x178] sm:$0xff] }
 0x113   : > { %1362 = vmatpush.msra.mxu0 %v847_v6  ;;  %1437 = vmatpush.msrb.mxu1 %v865_v60  ;;  %v684_v6 = vrot.slane %v4381_v16, 2  ;;  %v862_v16 = vld [vmem:[%s6097_s1 + $0x160] sm:$0xff] }
 0x115   : > { %1363 = vmatpush.msra.mxu0 %v846_v56  ;;  %1438 = vmatpush.msrb.mxu1 %v864_v24  ;;  %v863_v56 = vld [vmem:[%s6097_s1 + $0x168] sm:$0xff] }
 0x116   : > { %v4894_v24 = vld [vmem:[%s4066_s9 + $0x108] sm:$0xff] }
 0x117   : > { %1279 = vmatmul.f32.gmra.mxu2 %v4766_v49  ;;  %1439 = vmatpush.msrb.mxu1 %v863_v56  ;;  %1532 = vst [vmem:[#allocation4 + $0x238] sm:$0xff] %v4894_v24 }
 0x118   : > { %1113 = vmatmul.f32.gmra.mxu0 %v4232_v35 }
 0x119   : > { %1323 = vmatmul.f32.gmra.mxu3 %v4484_v55  ;;  %1440 = vmatpush.msrb.mxu1 %v862_v16  ;;  %v688_v16 = vrot.slane %v4484_v55, 2  ;;  %v4930_v55 = vld [vmem:[%s4066_s9 + $0x110] sm:$0xff] }
 0x11d   : > { %v4772_v50 = vpop.f32.mrf.mxu0 }
 0x120   : > { %1116 = vmatmul.f32.gmra.mxu0 %v4327_v1 }
 0x121   : > { %1326 = vmatmul.f32.gmra.mxu3 %v4502_v61  ;;  %v854_v61 = vld [vmem:[%s6097_s1 + $0x120] sm:$0xff] }
 0x124   : > { %v4784_v28 = vpop.f32.mrf.mxu3 }
 0x125   : > { %6150 = vst [vmem:[#allocation33_spill] sm:$0xff] %v4784_v28  ;;  %v4789_v30 = vpop.f32.mrf.mxu0 }
 0x128   : > { %1119 = vmatmul.f32.gmra.mxu0 %v4330_v2  ;;  %v845_v2 = vld [vmem:[%s6097_s1 + $0xd8] sm:$0xff] }
 0x129   : > { %1329 = vmatmul.f32.gmra.mxu3 %v4583_v42  ;;  %v4814_v42 = vsel %vm667_vm1, %v678_v34, %v679_v23  ;;  %1364 = vmatpush.msra.mxu0 %v845_v2  ;;  %v4858_v34 = vsel %vm667_vm1, %v683_v25, %v684_v6  ;;  %v837_v25 = vld [vmem:[%s6097_s1 + $0x98] sm:$0xff] }
 0x12a   : > { %926 = vst [vmem:[#allocation4 + $0x30] sm:$0xff] %v4814_v42 }
 0x12b   : > { %1365 = vmatpush.msra.mxu0 %v844_v46  ;;  %928 = vst [vmem:[#allocation4 + $0x318] sm:$0xff] %v4858_v34 }
 0x12c   : > { %v4800_v19 = vpop.f32.mrf.mxu3 }
 0x12d   : > { %6151 = vst [vmem:[#allocation34_spill] sm:$0xff] %v4800_v19  ;;  %v4805_v29 = vpop.f32.mrf.mxu0  ;;  %v1660_v19 = vld [vmem:[%s6097_s1 + $0x348] sm:$0xff] }
 0x130   : > { %1122 = vmatmul.f32.gmra.mxu0 %v4438_v39  ;;  %v843_v39 = vld [vmem:[%s6097_s1 + $0xc8] sm:$0xff] }
 0x131   : > { %1332 = vmatmul.f32.gmra.mxu3 %v4586_v37  ;;  %v4831_v37 = vsel %vm667_vm1, %v679_v23, %v681_v33  ;;  %1366 = vmatpush.msra.mxu0 %v843_v39  ;;  %v861_v23 = vld [vmem:[%s6097_s1 + $0x158] sm:$0xff]  ;;  %v860_v33 = vld [vmem:[%s6097_s1 + $0x150] sm:$0xff]  ;;  %v686_v39 = vrot.slane %v4435_v36, 2  ;;  %v858_v36 = vld [vmem:[%s6097_s1 + $0x140] sm:$0xff] }
 0x132   : > { %927 = vst [vmem:[#allocation4 + $0x378] sm:$0xff] %v4831_v37  ;;  %1441 = vmatpush.msrb.mxu1 %v861_v23  ;;  %v836_v23 = vld [vmem:[%s6097_s1 + $0x90] sm:$0xff] }
 0x133   : > { %1367 = vmatpush.msra.mxu0 %v842_v63  ;;  %v859_v63 = vld [vmem:[%s6097_s1 + $0x148] sm:$0xff]  ;;  %v4887_v60 = vsel %vm667_vm1, %v684_v6, %v686_v39  ;;  %v4926_v39 = vld [vmem:[#allocation4 + $0x250] sm:$0xff] }
 0x134   : > { %v4821_v47 = vpop.f32.mrf.mxu3  ;;  %1442 = vmatpush.msrb.mxu1 %v860_v33  ;;  %v4924_v33 = vsel %vm667_vm1, %v688_v16, %v689_v11  ;;  %1533 = vst [vmem:[#allocation4 + $0x250] sm:$0xff] %v4930_v55  ;;  %v577_v11 = vrot.slane %v4661_v32, 1 }
 0x135   : > { %6152 = vst [vmem:[#allocation35_spill] sm:$0xff] %v4821_v47  ;;  %v4823_v18 = vpop.f32.mrf.mxu0 }
 0x136   : > { %1443 = vmatpush.msrb.mxu1 %v859_v63  ;;  %v1682_v63 = vld [vmem:[%s6097_s1 + $0x3f8] sm:$0xff] }
 0x137   : > { %1776 = vmatpush.msra.mxu3 %v1682_v63  ;;  %v851_v63 = vld [vmem:[%s6097_s1 + $0x108] sm:$0xff] }
 0x138   : > { %1125 = vmatmul.f32.gmra.mxu0 %v4441_v40  ;;  %v841_v40 = vld [vmem:[%s6097_s1 + $0xb8] sm:$0xff]  ;;  %1444 = vmatpush.msrb.mxu1 %v858_v36  ;;  %v6108_v36 = vrot.slane %v4686_v59, 1 }
 0x139   : > { %1335 = vmatmul.f32.gmra.mxu3 %v4631_v9  ;;  %1368 = vmatpush.msra.mxu0 %v841_v40  ;;  %v838_v40 = vld [vmem:[%s6097_s1 + $0xa0] sm:$0xff] }
 0x13a   : > { %1777 = vmatpush.msra.mxu3 %v1681_v43  ;;  %v5023_v17 = vpop.f32.mrf.mxu2 }
 0x13b   : > { %1369 = vmatpush.msra.mxu0 %v840_v15  ;;  %v856_v15 = vld [vmem:[%s6097_s1 + $0x130] sm:$0xff] }
 0x13c   : > { %v4841_v51 = vpop.f32.mrf.mxu3 }
 0x13d   : > { %v4846_v9 = vpop.f32.mrf.mxu0 }
 0x140   : > { %1222 = vmatmul.f32.vlgmr.msrb.gmra.mxu0 %v4778_v62 }
 0x141   : > { %1338 = vmatmul.f32.gmra.mxu3 %v4634_v10  ;;  %v839_v10 = vld [vmem:[%s6097_s1 + $0xa8] sm:$0xff] }
 0x142   : > { %1370 = vmatpush.msra.mxu0 %v839_v10  ;;  %v855_v10 = vld [vmem:[%s6097_s1 + $0x128] sm:$0xff]  ;;  %v5040_v44 = vpop.f32.mrf.mxu2 }
 0x143   : > { %6160 = vst [vmem:[#allocation42_spill] sm:$0xff] %v5040_v44 }
 0x144   : > { %v4871_v2 = vpop.f32.mrf.mxu3  ;;  %1371 = vmatpush.msra.mxu0 %v838_v40  ;;  %v835_v40 = vld [vmem:[%s6097_s1 + $0x88] sm:$0xff] }
 0x145   : > { %v4876_v46 = vpop.f32.mrf.mxu0 }
 0x146   : > { %1372 = vmatpush.msra.mxu0 %v837_v25 }
 0x148   : > { %1225 = vmatmul.f32.gmra.mxu0 %v4797_v13 }
 0x149   : > { %1341 = vmatmul.f32.gmra.mxu3 %v4674_v48  ;;  %v857_v48 = vld [vmem:[%s6097_s1 + $0x138] sm:$0xff]  ;;  %1373 = vmatpush.msra.mxu0 %v836_v23  ;;  %v852_v23 = vld [vmem:[%s6097_s1 + $0x110] sm:$0xff] }
 0x14a   : > { %1445 = vmatpush.msrb.mxu1 %v857_v48  ;;  %v668_v48 = vrot.slane %v4661_v32, 2  ;;  %v579_v32 = vsel %vm576_vm0, %v577_v11, %v6108_v36 }
 0x14b   : > { %1374 = vmatpush.msra.mxu0 %v835_v40  ;;  %v3697_v40 = vld [vmem:[#allocation4 + $0x50] sm:$0xff] }
 0x14c   : > { %v4906_v6 = vpop.f32.mrf.mxu3  ;;  %1446 = vmatpush.msrb.mxu1 %v856_v15  ;;  %v669_v15 = vrot.slane %v4686_v59, 2 }
 0x14d   : > { %v4908_v56 = vpop.f32.mrf.mxu0 }
 0x14e   : > { %1447 = vmatpush.msrb.mxu1 %v855_v10  ;;  %v834_v10 = vld [vmem:[%s6097_s1 + $0x80] sm:$0xff] }
 0x14f   : > { %1375 = vmatpush.msra.mxu0 %v834_v10 }
 0x150   : > { %1228 = vmatmul.f32.gmra.mxu0 %v4814_v42  ;;  %1448 = vmatpush.msrb.mxu1 %v854_v61  ;;  %v1698_v61 = vld [vmem:[%s6097_s1 + $0x478] sm:$0xff] }
 0x151   : > { %1344 = vmatmul.f32.gmra.mxu3 %v4212_v27  ;;  %v853_v27 = vld [vmem:[%s6097_s1 + $0x118] sm:$0xff]  ;;  %1853 = vmatpush.msrb.mxu0 %v1698_v61  ;;  %v1680_v61 = vld [vmem:[%s6097_s1 + $0x3e8] sm:$0xff] }
 0x152   : > { %1449 = vmatpush.msrb.mxu1 %v853_v27  ;;  %v850_v27 = vld [vmem:[%s6097_s1 + $0x100] sm:$0xff]  ;;  %1778 = vmatpush.msra.mxu3 %v1680_v61 }
 0x154   : > { %v4947_v25 = vpop.f32.mrf.mxu3  ;;  %1450 = vmatpush.msrb.mxu1 %v852_v23  ;;  %v670_v23 = vsel %vm667_vm1, %v668_v48, %v669_v15  ;;  %v1697_v48 = vld [vmem:[%s6097_s1 + $0x470] sm:$0xff] }
 0x155   : > { %6153 = vst [vmem:[#allocation36_spill] sm:$0xff] %v4947_v25  ;;  %v4951_v16 = vpop.f32.mrf.mxu0  ;;  %1854 = vmatpush.msrb.mxu0 %v1697_v48  ;;  %v1679_v48 = vld [vmem:[%s6097_s1 + $0x3e0] sm:$0xff]  ;;  %v1662_v25 = vld [vmem:[%s6097_s1 + $0x358] sm:$0xff] }
 0x156   : > { %1451 = vmatpush.msrb.mxu1 %v851_v63  ;;  %1779 = vmatpush.msra.mxu3 %v1679_v48  ;;  %v1678_v48 = vld [vmem:[%s6097_s1 + $0x3d8] sm:$0xff] }
 0x158   : > { %1231 = vmatmul.f32.gmra.mxu0 %v4831_v37  ;;  %1452 = vmatpush.msrb.mxu1 %v850_v27 }
 0x159   : > { %1347 = vmatmul.f32.gmra.mxu3 %v3697_v40  ;;  %1453 = vmatmul.f32.vlgmr.msrb.gmra.mxu1 %v670_v23  ;;  %v492_v40 = vld [vmem:[%s4066_s9 + $0x10] sm:$0x3] }
 0x15a   : > { %v671_v36 = vrot.slane %v492_v40, 2  ;;  %1780 = vmatpush.msra.mxu3 %v1678_v48  ;;  %v1677_v48 = vld [vmem:[%s6097_s1 + $0x3d0] sm:$0xff] }
 0x15c   : > { %v4976_v11 = vpop.f32.mrf.mxu3  ;;  %v672_v63 = vsel %vm667_vm1, %v669_v15, %v671_v36  ;;  %v1696_v36 = vld [vmem:[%s6097_s1 + $0x468] sm:$0xff]  ;;  %1781 = vmatpush.msra.mxu3 %v1677_v48 }
 0x15d   : > { %v4978_v10 = vpop.f32.mrf.mxu0  ;;  %1855 = vmatpush.msrb.mxu0 %v1696_v36  ;;  %v771_v36 = vld [vmem:[#allocation4 + $0x338] sm:$0xff] }
 0x15e   : > { %6154 = vst [vmem:[#allocation37_spill] sm:$0xff] %v4978_v10  ;;  %v3706_v10 = vld [vmem:[#allocation4 + $0x230] sm:$0xff] }
 0x15f   : > { %1548 = vst [vmem:[#allocation4 + $0x338] sm:$0xff] %v4522_v7  ;;  %v5062_v7 = vpop.f32.mrf.mxu2 }
 0x160   : > { %1234 = vmatmul.f32.gmra.mxu0 %v4858_v34  ;;  %6163 = vst [vmem:[#allocation45_spill] sm:$0xff] %v5062_v7 }
 0x161   : > { %1350 = vmatmul.f32.gmra.mxu3 %v4232_v35  ;;  %1456 = vmatmul.f32.gmra.mxu1 %v672_v63  ;;  %v765_v35 = vld [vmem:[#allocation4 + $0x178] sm:$0xff] }
 0x162   : > { %1546 = vst [vmem:[#allocation4 + $0x178] sm:$0xff] %v4431_v38  ;;  %v1692_v38 = vld [vmem:[%s6097_s1 + $0x448] sm:$0xff] }
 0x164   : > { %v4987_v43 = vpop.f32.mrf.mxu3 }
 0x165   : > { %v4992_v27 = vpop.f32.mrf.mxu0 }
 0x166   : > { %6155 = vst [vmem:[#allocation38_spill] sm:$0xff] %v4992_v27  ;;  %v1653_v27 = vld [vmem:[%s6097_s1 + $0x310] sm:$0xff] }
 0x168   : > { %1237 = vmatmul.f32.gmra.mxu0 %v4887_v60 }
 0x169   : > { %1353 = vmatmul.f32.gmra.mxu3 %v4327_v1  ;;  %1459 = vmatmul.f32.gmra.mxu1 %v4778_v62  ;;  %v768_v1 = vld [vmem:[#allocation4 + $0x88] sm:$0xff]  ;;  %v1695_v62 = vld [vmem:[%s6097_s1 + $0x460] sm:$0xff] }
 0x16a   : > { %1547 = vst [vmem:[#allocation4 + $0x88] sm:$0xff] %v4471_v52  ;;  %1856 = vmatpush.msrb.mxu0 %v1695_v62 }
 0x16c   : > { %v4997_v23 = vpop.f32.mrf.mxu3 }
 0x16d   : > { %v5002_v15 = vpop.f32.mrf.mxu0 }
 0x16e   : > { %6156 = vst [vmem:[#allocation39_spill] sm:$0xff] %v5002_v15  ;;  %v1654_v15 = vld [vmem:[%s6097_s1 + $0x318] sm:$0xff] }
 0x170   : > { %1240 = vmatmul.f32.gmra.mxu0 %v4924_v33 }
 0x171   : > { %1356 = vmatmul.f32.gmra.mxu3 %v4926_v39  ;;  %1462 = vmatmul.f32.gmra.mxu1 %v4797_v13  ;;  %v580_v39 = vrot.slane %v492_v40, 1  ;;  %v1694_v40 = vld [vmem:[%s6097_s1 + $0x458] sm:$0xff] }
 0x172   : > { %1857 = vmatpush.msrb.mxu0 %v1694_v40 }
 0x173   : > { %v581_v62 = vsel %vm576_vm0, %v6159_v54, %v580_v39  ;;  %v777_v39 = vld [vmem:[#allocation4 + $0x2b0] sm:$0xff] }
 0x174   : > { %v5011_v63 = vpop.f32.mrf.mxu3  ;;  %1550 = vst [vmem:[#allocation4 + $0x2b0] sm:$0xff] %v4607_v45  ;;  %v1665_v45 = vld [vmem:[%s6097_s1 + $0x370] sm:$0xff] }
 0x175   : > { %v5013_v61 = vpop.f32.mrf.mxu0 }
 0x176   : > { %6157 = vst [vmem:[#allocation40_spill] sm:$0xff] %v5013_v61 }
 0x178   : > { %1376 = vmatmul.f32.vlgmr.msra.gmra.mxu0 %v579_v32  ;;  %v774_v32 = vld [vmem:[#allocation4 + $0x200] sm:$0xff] }
 0x179   : > { %1465 = vmatmul.f32.gmra.mxu1 %v4814_v42  ;;  %1549 = vst [vmem:[#allocation4 + $0x200] sm:$0xff] %v4573_v26  ;;  %v1693_v26 = vld [vmem:[%s6097_s1 + $0x450] sm:$0xff] }
 0x17a   : > { %1858 = vmatpush.msrb.mxu0 %v1693_v26 }
 0x17c   : > { %v5025_v8 = vpop.f32.mrf.mxu3  ;;  %1859 = vmatpush.msrb.mxu0 %v1692_v38  ;;  %v1663_v38 = vld [vmem:[%s6097_s1 + $0x360] sm:$0xff] }
 0x17d   : > { %v5027_v13 = vpop.f32.mrf.mxu0 }
 0x17e   : > { %6158 = vst [vmem:[#allocation41_spill] sm:$0xff] %v5027_v13  ;;  %v799_v13 = vld [vmem:[#allocation4 + $0x58] sm:$0xff] }
 0x17f   : > { %1584 = vst [vmem:[#allocation4 + $0x58] sm:$0xff] %v4727_v12  ;;  %v5203_v12 = vld [vmem:[#allocation4 + $0x248] sm:$0xff] }
 0x180   : > { %1379 = vmatmul.f32.gmra.mxu0 %v581_v62  ;;  %v1666_v62 = vld [vmem:[%s6097_s1 + $0x378] sm:$0xff] }
 0x181   : > { %1468 = vmatmul.f32.gmra.mxu1 %v4831_v37  ;;  %1699 = vmatpush.msrb.mxu2 %v1666_v62  ;;  %v780_v62 = vld [vmem:[#allocation4 + $0x1b8] sm:$0xff] }
 0x182   : > { %1551 = vst [vmem:[#allocation4 + $0x1b8] sm:$0xff] %v4624_v5  ;;  %v783_v5 = vld [vmem:[#allocation4 + $0x160] sm:$0xff] }
 0x183   : > { %1700 = vmatpush.msrb.mxu2 %v1665_v45  ;;  %v1675_v45 = vld [vmem:[%s6097_s1 + $0x3c0] sm:$0xff]  ;;  %1552 = vst [vmem:[#allocation4 + $0x160] sm:$0xff] %v4646_v21  ;;  %v787_v21 = vld [vmem:[#allocation4 + $0x2a8] sm:$0xff] }
 0x184   : > { %v5042_v59 = vpop.f32.mrf.mxu3  ;;  %1580 = vst [vmem:[#allocation4 + $0x2a8] sm:$0xff] %v4656_v31  ;;  %v1661_v31 = vld [vmem:[%s6097_s1 + $0x350] sm:$0xff] }
 0x185   : > { %v5044_v54 = vpop.f32.mrf.mxu0 }
 0x186   : > { %6161 = vst [vmem:[#allocation43_spill] sm:$0xff] %v5044_v54 }
 0x188   : > { %1382 = vmatmul.f32.gmra.mxu0 %v765_v35  ;;  %v1676_v35 = vld [vmem:[%s6097_s1 + $0x3c8] sm:$0xff] }
 0x189   : > { %1471 = vmatmul.f32.gmra.mxu1 %v4858_v34  ;;  %1782 = vmatpush.msra.mxu3 %v1676_v35  ;;  %v5082_v35 = vpop.f32.mrf.mxu2 }
 0x18a   : > { %6166 = vst [vmem:[#allocation48_spill] sm:$0xff] %v5082_v35  ;;  %v5224_v35 = vld [vmem:[#allocation4 + $0x130] sm:$0xff] }
 0x18b   : > { %1783 = vmatpush.msra.mxu3 %v1675_v45  ;;  %v5096_v45 = vld [vmem:[#allocation4 + $0x390] sm:$0xff] }
 0x18c   : > { %v5054_v40 = vpop.f32.mrf.mxu3  ;;  %1553 = vst [vmem:[#allocation4 + $0x390] sm:$0xff] %v4667_v41  ;;  %v5114_v41 = vld [vmem:[#allocation4 + $0xf8] sm:$0xff] }
 0x18d   : > { %v5056_v48 = vpop.f32.mrf.mxu0  ;;  %1554 = vst [vmem:[#allocation4 + $0xf8] sm:$0xff] %v4695_v3 }
 0x18e   : > { %6162 = vst [vmem:[#allocation44_spill] sm:$0xff] %v5056_v48  ;;  %v1689_v48 = vld [vmem:[%s6097_s1 + $0x430] sm:$0xff] }
 0x190   : > { %1385 = vmatmul.f32.gmra.mxu0 %v768_v1  ;;  %v1664_v1 = vld [vmem:[%s6097_s1 + $0x368] sm:$0xff] }
 0x191   : > { %1474 = vmatmul.f32.gmra.mxu1 %v4887_v60  ;;  %1701 = vmatpush.msrb.mxu2 %v1664_v1  ;;  %v1691_v1 = vld [vmem:[%s6097_s1 + $0x440] sm:$0xff] }
 0x192   : > { %1860 = vmatpush.msrb.mxu0 %v1691_v1  ;;  %v5110_v1 = vpop.f32.mrf.mxu1 }
 0x193   : > { %1702 = vmatpush.msrb.mxu2 %v1663_v38  ;;  %v5106_v38 = vpop.f32.mrf.mxu2 }
 0x194   : > { %v5068_v26 = vpop.f32.mrf.mxu3  ;;  %6168 = vst [vmem:[#allocation50_spill] sm:$0xff] %v5106_v38 }
 0x195   : > { %6164 = vst [vmem:[#allocation46_spill] sm:$0xff] %v5068_v26  ;;  %v5070_v52 = vpop.f32.mrf.mxu0  ;;  %1703 = vmatpush.msrb.mxu2 %v1662_v25  ;;  %v790_v25 = vld [vmem:[#allocation4 + $0x208] sm:$0xff] }
 0x196   : > { %6165 = vst [vmem:[#allocation47_spill] sm:$0xff] %v5070_v52 }
 0x197   : > { %1704 = vmatpush.msrb.mxu2 %v1661_v31  ;;  %1581 = vst [vmem:[#allocation4 + $0x208] sm:$0xff] %v4681_v53  ;;  %v5140_v53 = vld [vmem:[#allocation4 + $0x2f8] sm:$0xff] }
 0x198   : > { %1388 = vmatmul.f32.gmra.mxu0 %v771_v36  ;;  %v1674_v36 = vld [vmem:[%s6097_s1 + $0x3b8] sm:$0xff] }
 0x199   : > { %1477 = vmatmul.f32.gmra.mxu1 %v4924_v33  ;;  %1784 = vmatpush.msra.mxu3 %v1674_v36  ;;  %v1690_v36 = vld [vmem:[%s6097_s1 + $0x438] sm:$0xff] }
 0x19a   : > { %1861 = vmatpush.msrb.mxu0 %v1690_v36  ;;  %v5136_v36 = vld [vmem:[#allocation4 + $0x18] sm:$0xff]  ;;  %v5138_v31 = vpop.f32.mrf.mxu1  ;;  %1705 = vmatpush.msrb.mxu2 %v1660_v19  ;;  %v1672_v19 = vld [vmem:[%s6097_s1 + $0x3a8] sm:$0xff] }
 0x19b   : > { %v5127_v3 = vpop.f32.mrf.mxu2  ;;  %1555 = vst [vmem:[#allocation4 + $0x18] sm:$0xff] %v5140_v53 }
 0x19c   : > { %v5085_v14 = vpop.f32.mrf.mxu3  ;;  %6170 = vst [vmem:[#allocation52_spill] sm:$0xff] %v5127_v3  ;;  %1862 = vmatpush.msrb.mxu0 %v1689_v48  ;;  %v5159_v3 = vld [vmem:[#allocation4 + $0x28] sm:$0xff] }
 0x19d   : > { %6167 = vst [vmem:[#allocation49_spill] sm:$0xff] %v5085_v14  ;;  %v5087_v0 = vpop.f32.mrf.mxu0  ;;  %v796_v48 = vld [vmem:[#allocation4 + $0x168] sm:$0xff] }
 0x19e   : > { %1583 = vst [vmem:[#allocation4 + $0x168] sm:$0xff] %v4717_v58  ;;  %v5180_v58 = vld [vmem:[#allocation4 + $0x240] sm:$0xff] }
 0x1a0   : > { %1391 = vmatmul.f32.gmra.mxu0 %v774_v32 }
 0x1a1   : > { %1480 = vmatmul.f32.gmra.mxu1 %v787_v21  ;;  %v1673_v21 = vld [vmem:[%s6097_s1 + $0x3b0] sm:$0xff] }
 0x1a2   : > { %1785 = vmatpush.msra.mxu3 %v1673_v21  ;;  %v793_v21 = vld [vmem:[#allocation4 + $0x2e8] sm:$0xff] }
 0x1a3   : > { %1582 = vst [vmem:[#allocation4 + $0x2e8] sm:$0xff] %v4705_v4  ;;  %v5154_v54 = vpop.f32.mrf.mxu2  ;;  %v5161_v4 = vld [vmem:[#allocation4 + $0x348] sm:$0xff] }
 0x1a4   : > { %v5108_v47 = vpop.f32.mrf.mxu3  ;;  %6174 = vst [vmem:[#allocation56_spill] sm:$0xff] %v5154_v54  ;;  %1786 = vmatpush.msra.mxu3 %v1672_v19  ;;  %v1658_v54 = vld [vmem:[%s6097_s1 + $0x338] sm:$0xff] }
 0x1a5   : > { %6169 = vst [vmem:[#allocation51_spill] sm:$0xff] %v5108_v47  ;;  %v5112_v32 = vpop.f32.mrf.mxu0 }
 0x1a6   : > { %1556 = vst [vmem:[#allocation4 + $0x28] sm:$0xff] %v5161_v4 }
 0x1a8   : > { %1394 = vmatmul.f32.gmra.mxu0 %v777_v39 }
 0x1a9   : > { %1483 = vmatmul.f32.gmra.mxu1 %v790_v25 }
 0x1ac   : > { %v5129_v39 = vpop.f32.mrf.mxu3 }
 0x1ad   : > { %6171 = vst [vmem:[#allocation53_spill] sm:$0xff] %v5129_v39  ;;  %v5131_v52 = vpop.f32.mrf.mxu0  ;;  %v5222_v39 = vld [vmem:[#allocation4 + $0x3a8] sm:$0xff] }
 0x1ae   : > { %1559 = vst [vmem:[#allocation4 + $0x3a8] sm:$0xff] %v5224_v35 }
 0x1b0   : > { %1397 = vmatmul.f32.gmra.mxu0 %v780_v62  ;;  %v1659_v62 = vld [vmem:[%s6097_s1 + $0x340] sm:$0xff] }
 0x1b1   : > { %1486 = vmatmul.f32.gmra.mxu1 %v793_v21  ;;  %1706 = vmatpush.msrb.mxu2 %v1659_v62  ;;  %v5164_v21 = vpop.f32.mrf.mxu1  ;;  %v1688_v62 = vld [vmem:[%s6097_s1 + $0x428] sm:$0xff] }
 0x1b2   : > { %1863 = vmatpush.msrb.mxu0 %v1688_v62 }
 0x1b3   : > { %1707 = vmatpush.msrb.mxu2 %v1658_v54 }
 0x1b4   : > { %v5147_v25 = vpop.f32.mrf.mxu3 }
 0x1b5   : > { %6172 = vst [vmem:[#allocation54_spill] sm:$0xff] %v5147_v25  ;;  %v5149_v28 = vpop.f32.mrf.mxu0 }
 0x1b6   : > { %6173 = vst [vmem:[#allocation55_spill] sm:$0xff] %v5149_v28 }
 0x1b8   : > { %1400 = vmatmul.f32.gmra.mxu0 %v783_v5  ;;  %v1671_v5 = vld [vmem:[%s6097_s1 + $0x3a0] sm:$0xff] }
 0x1b9   : > { %1489 = vmatmul.f32.gmra.mxu1 %v796_v48  ;;  %1787 = vmatpush.msra.mxu3 %v1671_v5  ;;  %v5185_v48 = vpop.f32.mrf.mxu2  ;;  %v5189_v54 = vpop.f32.mrf.mxu1  ;;  %v1657_v5 = vld [vmem:[%s6097_s1 + $0x330] sm:$0xff] }
 0x1ba   : > { %6176 = vst [vmem:[#allocation58_spill] sm:$0xff] %v5185_v48  ;;  %1708 = vmatpush.msrb.mxu2 %v1657_v5  ;;  %v1687_v48 = vld [vmem:[%s6097_s1 + $0x420] sm:$0xff]  ;;  %v1656_v5 = vld [vmem:[%s6097_s1 + $0x328] sm:$0xff] }
 0x1bb   : > { %1864 = vmatpush.msrb.mxu0 %v1687_v48 }
 0x1bc   : > { %v5167_v28 = vpop.f32.mrf.mxu3  ;;  %1709 = vmatpush.msrb.mxu2 %v1656_v5  ;;  %v805_v5 = vld [vmem:[#allocation4 + $0x368] sm:$0xff] }
 0x1bd   : > { %6175 = vst [vmem:[#allocation57_spill] sm:$0xff] %v5167_v28  ;;  %v5169_v19 = vpop.f32.mrf.mxu0  ;;  %v5182_v28 = vld [vmem:[#allocation4 + $0x2a0] sm:$0xff] }
 0x1be   : > { %1557 = vst [vmem:[#allocation4 + $0x240] sm:$0xff] %v5182_v28 }
 0x1bf   : > { %1586 = vst [vmem:[#allocation4 + $0x368] sm:$0xff] %v4748_v20  ;;  %v1195_v20 = vadd.f32 %v4841_v51, %v5087_v0 }
 0x1c0   : > { %1403 = vmatmul.f32.gmra.mxu0 %v5096_v45  ;;  %v5201_v45 = vld [vmem:[#allocation4 + $0x340] sm:$0xff] }
 0x1c1   : > { %1492 = vmatmul.f32.gmra.mxu1 %v799_v13  ;;  %1558 = vst [vmem:[#allocation4 + $0x340] sm:$0xff] %v5203_v12  ;;  %v1670_v13 = vld [vmem:[%s6097_s1 + $0x398] sm:$0xff]  ;;  %v5214_v48 = vpop.f32.mrf.mxu2  ;;  %v5218_v61 = vpop.f32.mrf.mxu1 }
 0x1c2   : > { %1788 = vmatpush.msra.mxu3 %v1670_v13  ;;  %6178 = vst [vmem:[#allocation60_spill] sm:$0xff] %v5214_v48  ;;  %v1686_v13 = vld [vmem:[%s6097_s1 + $0x418] sm:$0xff] }
 0x1c3   : > { %1865 = vmatpush.msrb.mxu0 %v1686_v13  ;;  %v1685_v13 = vld [vmem:[%s6097_s1 + $0x410] sm:$0xff] }
 0x1c4   : > { %v5191_v62 = vpop.f32.mrf.mxu3 }
 0x1c5   : > { %6177 = vst [vmem:[#allocation59_spill] sm:$0xff] %v5191_v62  ;;  %v5193_v25 = vpop.f32.mrf.mxu0  ;;  %v802_v62 = vld [vmem:[#allocation4 + $0x20] sm:$0xff]  ;;  %1866 = vmatpush.msrb.mxu0 %v1685_v13  ;;  %v1198_v13 = vadd.f32 %v4871_v2, %v5112_v32  ;;  %v1684_v2 = vld [vmem:[%s6097_s1 + $0x408] sm:$0xff]  ;;  %v1537_v32 = vrot.slane %v4894_v24, 1 }
 0x1c6   : > { %1585 = vst [vmem:[#allocation4 + $0x20] sm:$0xff] %v4738_v57  ;;  %v1655_v57 = vld [vmem:[%s6097_s1 + $0x320] sm:$0xff] }
 0x1c7   : > { %1710 = vmatpush.msrb.mxu2 %v1655_v57  ;;  %v5250_v57 = vld [vmem:[#allocation4] sm:$0xff]  ;;  %1867 = vmatpush.msrb.mxu0 %v1684_v2  ;;  %v3705_v2 = vld [vmem:[#allocation4 + $0x2d0] sm:$0xff] }
 0x1c8   : > { %1406 = vmatmul.f32.gmra.mxu0 %v5114_v41 }
 0x1c9   : > { %1495 = vmatmul.f32.gmra.mxu1 %v802_v62  ;;  %v1669_v62 = vld [vmem:[%s6097_s1 + $0x390] sm:$0xff]  ;;  %v1271_v48 = vpop.f32.mrf.mxu2  ;;  %v5245_v47 = vpop.f32.mrf.mxu1  ;;  %1711 = vmatpush.msrb.mxu2 %v1654_v15 }
 0x1ca   : > { %1789 = vmatpush.msra.mxu3 %v1669_v62  ;;  %v5255_v62 = vld [vmem:[#allocation4 + $0x108] sm:$0xff]  ;;  %v1272_v0 = vadd.f32 %v1271_v48, %v1195_v20  ;;  %v5279_v20 = vld [vmem:[#allocation4 + $0x258] sm:$0xff] }
 0x1cb   : > { %1560 = vst [vmem:[#allocation4] sm:$0xff] %v5255_v62  ;;  %1712 = vmatpush.msrb.mxu2 %v1653_v27  ;;  %v1652_v48 = vld [vmem:[%s6097_s1 + $0x308] sm:$0xff] }
 0x1cc   : > { %v5216_v38 = vpop.f32.mrf.mxu3 }
 0x1cd   : > { %6179 = vst [vmem:[#allocation61_spill] sm:$0xff] %v5216_v38  ;;  %v5220_v41 = vpop.f32.mrf.mxu0  ;;  %1713 = vmatpush.msrb.mxu2 %v1652_v48 }
 0x1d0   : > { %1409 = vmatmul.f32.gmra.mxu0 %v5136_v36 }
 0x1d1   : > { %1498 = vmatmul.f32.gmra.mxu1 %v805_v5  ;;  %v808_v5 = vld [vmem:[#allocation4 + $0xe0] sm:$0xff]  ;;  %v1274_v7 = vpop.f32.mrf.mxu2 }
 0x1d2   : > { %1587 = vst [vmem:[#allocation4 + $0xe0] sm:$0xff] %v4758_v22  ;;  %v5272_v22 = vld [vmem:[#allocation4 + $0x218] sm:$0xff]  ;;  %v1275_v27 = vadd.f32 %v1274_v7, %v1198_v13  ;;  %v1201_v7 = vadd.f32 %v4906_v6, %v5131_v52  ;;  %v814_v52 = vld [vmem:[#allocation4 + $0xc0] sm:$0xff] }
 0x1d3   : > { %1561 = vst [vmem:[#allocation4 + $0x218] sm:$0xff] %v5279_v20 }
 0x1d4   : > { %v5238_v36 = vpop.f32.mrf.mxu3 }
 0x1d5   : > { %6180 = vst [vmem:[#allocation62_spill] sm:$0xff] %v5238_v36  ;;  %v5240_v38 = vpop.f32.mrf.mxu0  ;;  %v1668_v36 = vld [vmem:[%s6097_s1 + $0x388] sm:$0xff] }
 0x1d6   : > { %1790 = vmatpush.msra.mxu3 %v1668_v36  ;;  %v5277_v36 = vpop.f32.mrf.mxu1 }
 0x1d8   : > { %1412 = vmatmul.f32.gmra.mxu0 %v5159_v3 }
 0x1d9   : > { %1501 = vmatmul.f32.gmra.mxu1 %v808_v5  ;;  %v811_v5 = vld [vmem:[#allocation4 + $0x60] sm:$0xff]  ;;  %v1277_v13 = vpop.f32.mrf.mxu2 }
 0x1da   : > { %1588 = vst [vmem:[#allocation4 + $0x60] sm:$0xff] %v4766_v49  ;;  %v1667_v49 = vld [vmem:[%s6097_s1 + $0x380] sm:$0xff] }
 0x1db   : > { %1791 = vmatpush.msra.mxu3 %v1667_v49  ;;  %v1683_v49 = vld [vmem:[%s6097_s1 + $0x400] sm:$0xff] }
 0x1dc   : > { %v1348_v3 = vpop.f32.mrf.mxu3  ;;  %1792 = vmatmul.f32.vlgmr.msra.gmra.mxu3 %v3705_v2  ;;  %1868 = vmatpush.msrb.mxu0 %v1683_v49  ;;  %v525_v2 = vld [vmem:[%s4066_s9 + $0x118] sm:$0x3] }
 0x1dd   : > { %v5262_v51 = vadd.f32 %v1348_v3, %v1272_v0  ;;  %v5264_v15 = vpop.f32.mrf.mxu0  ;;  %v1538_v0 = vrot.slane %v4930_v55, 1  ;;  %v1565_v3 = vrot.slane %v4930_v55, 2  ;;  %v1540_v26 = vrot.slane %v525_v2, 1 }
 0x1de   : > { %v5311_v6 = vpop.f32.mrf.mxu1 }
 0x1df   : > { %v5301_v55 = vsel %vm576_vm0, %v1537_v32, %v1538_v0 }
 0x1e0   : > { %1415 = vmatmul.f32.gmra.mxu0 %v5180_v58  ;;  %v1564_v58 = vrot.slane %v4894_v24, 2  ;;  %v813_v24 = vld [vmem:[#allocation4 + $0xe8] sm:$0xff] }
 0x1e1   : > { %1504 = vmatmul.f32.gmra.mxu1 %v811_v5  ;;  %v1651_v5 = vld [vmem:[%s6097_s1 + $0x300] sm:$0xff]  ;;  %1562 = vst [vmem:[#allocation4 + $0xe8] sm:$0xff] %v5301_v55 }
 0x1e2   : > { %1714 = vmatpush.msrb.mxu2 %v1651_v5  ;;  %v1591_v5 = vld [vmem:[#allocation4 + $0x278] sm:$0xff] }
 0x1e3   : > { %1715 = vmatmul.f32.vlgmr.msrb.gmra.mxu2 %v1591_v5 }
 0x1e4   : > { %v1351_v14 = vpop.f32.mrf.mxu3  ;;  %1795 = vmatmul.f32.gmra.mxu3 %v3706_v10  ;;  %v1594_v10 = vld [vmem:[#allocation4 + $0x3a0] sm:$0xff] }
 0x1e5   : > { %v5290_v44 = vadd.f32 %v1351_v14, %v1275_v27  ;;  %v5292_v48 = vpop.f32.mrf.mxu0  ;;  %v5304_v14 = vsel %vm667_vm1, %v1564_v58, %v1565_v3 }
 0x1e6   : > { %1589 = vst [vmem:[#allocation4 + $0xc0] sm:$0xff] %v5304_v14  ;;  %v5329_v49 = vpop.f32.mrf.mxu1 }
 0x1e7   : > { %6181 = vst [vmem:[#allocation63_spill] sm:$0xff] %v5329_v49 }
 0x1e8   : > { %1418 = vmatmul.f32.gmra.mxu0 %v5201_v45  ;;  %v1278_v45 = vadd.f32 %v1277_v13, %v1201_v7  ;;  %v1567_v7 = vrot.slane %v525_v2, 2  ;;  %v817_v13 = vld [vmem:[#allocation4 + $0x1c0] sm:$0xff]  ;;  %v3707_v2 = vld [vmem:[#allocation4 + $0x3b0] sm:$0xff] }
 0x1e9   : > { %1507 = vmatmul.f32.gmra.mxu1 %v814_v52 }
 0x1ea   : > { %v5327_v52 = vsel %vm667_vm1, %v1565_v3, %v1567_v7  ;;  %v3708_v3 = vld [vmem:[#allocation4 + $0x70] sm:$0xff]  ;;  %v1600_v7 = vld [vmem:[#allocation4 + $0x48] sm:$0xff] }
 0x1eb   : > { %1590 = vst [vmem:[#allocation4 + $0x1c0] sm:$0xff] %v5327_v52  ;;  %1718 = vmatmul.f32.gmra.mxu2 %v1594_v10  ;;  %v3710_v10 = vld [vmem:[#allocation4 + $0x78] sm:$0xff] }
 0x1ec   : > { %v1354_v27 = vpop.f32.mrf.mxu3  ;;  %1798 = vmatmul.f32.gmra.mxu3 %v3707_v2  ;;  %v1603_v2 = vld [vmem:[#allocation4 + $0xf0] sm:$0xff] }
 0x1ed   : > { %v5313_v32 = vadd.f32 %v1354_v27, %v1278_v45  ;;  %v5315_v58 = vpop.f32.mrf.mxu0  ;;  %v816_v45 = vld [vmem:[#allocation4 + $0xc8] sm:$0xff]  ;;  %v5323_v27 = vsel %vm576_vm0, %v1538_v0, %v1540_v26  ;;  %v1597_v0 = vld [vmem:[#allocation4 + $0xb0] sm:$0xff] }
 0x1ee   : > { %1563 = vst [vmem:[#allocation4 + $0xc8] sm:$0xff] %v5323_v27 }
 0x1f0   : > { %1421 = vmatmul.f32.gmra.mxu0 %v5222_v39 }
 0x1f1   : > { %1510 = vmatmul.f32.gmra.mxu1 %v817_v13  ;;  %v3709_v13 = vld [vmem:[#allocation4 + $0x198] sm:$0xff] }
 0x1f3   : > { %1721 = vmatmul.f32.gmra.mxu2 %v1597_v0  ;;  %v3711_v0 = vld [vmem:[#allocation4 + $0x188] sm:$0xff] }
 0x1f4   : > { %1801 = vmatmul.f32.gmra.mxu3 %v3708_v3  ;;  %v1609_v3 = vld [vmem:[#allocation4 + $0x220] sm:$0xff] }
 0x1f5   : > { %v5331_v39 = vpop.f32.mrf.mxu0 }
 0x1f8   : > { %1424 = vmatmul.f32.gmra.mxu0 %v5250_v57 }
 0x1fb   : > { %1724 = vmatmul.f32.gmra.mxu2 %v1600_v7  ;;  %v3712_v7 = vld [vmem:[#allocation4 + $0x10] sm:$0xff] }
 0x1fc   : > { %1804 = vmatmul.f32.gmra.mxu3 %v3709_v13  ;;  %v1612_v13 = vld [vmem:[#allocation4 + $0xd8] sm:$0xff] }
 0x1fd   : > { %v5335_v26 = vpop.f32.mrf.mxu0 }
 0x200   : > { %1427 = vmatmul.f32.gmra.mxu0 %v5272_v22  ;;  %v1606_v22 = vld [vmem:[#allocation4 + $0x2c8] sm:$0xff] }
 0x203   : > { %1727 = vmatmul.f32.gmra.mxu2 %v1603_v2  ;;  %v3713_v2 = vld [vmem:[#allocation4 + $0x138] sm:$0xff] }
 0x204   : > { %1807 = vmatmul.f32.gmra.mxu3 %v3710_v10  ;;  %v1615_v10 = vld [vmem:[#allocation4 + $0x310] sm:$0xff] }
 0x205   : > { %v5338_v5 = vpop.f32.mrf.mxu0 }
 0x208   : > { %1430 = vmatmul.f32.gmra.mxu0 %v813_v24 }
 0x20b   : > { %1730 = vmatmul.f32.gmra.mxu2 %v1606_v22  ;;  %v3714_v22 = vld [vmem:[#allocation4 + $0x98] sm:$0xff] }
 0x20c   : > { %1810 = vmatmul.f32.gmra.mxu3 %v3711_v0  ;;  %v1618_v0 = vld [vmem:[#allocation4 + $0x158] sm:$0xff] }
 0x20d   : > { %v5340_v57 = vpop.f32.mrf.mxu0 }
 0x210   : > { %1433 = vmatmul.f32.gmra.mxu0 %v816_v45 }
 0x213   : > { %1733 = vmatmul.f32.gmra.mxu2 %v1609_v3  ;;  %v3715_v3 = vld [vmem:[#allocation4 + $0xd0] sm:$0xff] }
 0x214   : > { %1813 = vmatmul.f32.gmra.mxu3 %v3712_v7  ;;  %v3716_v7 = vld [vmem:[#allocation4 + $0x288] sm:$0xff] }
 0x215   : > { %v5342_v49 = vpop.f32.mrf.mxu0 }
 0x218   : > { %1869 = vmatmul.f32.vlgmr.msrb.gmra.mxu0 %v4814_v42 }
 0x21b   : > { %1736 = vmatmul.f32.gmra.mxu2 %v1612_v13  ;;  %v1621_v13 = vld [vmem:[#allocation4 + $0x170] sm:$0xff] }
 0x21c   : > { %1816 = vmatmul.f32.gmra.mxu3 %v3713_v2  ;;  %v5362_v2 = vpop.f32.mrf.mxu1 }
 0x21d   : > { %v5345_v24 = vpop.f32.mrf.mxu0 }
 0x220   : > { %1872 = vmatmul.f32.gmra.mxu0 %v4831_v37 }
 0x223   : > { %1739 = vmatmul.f32.gmra.mxu2 %v1615_v10  ;;  %v3717_v10 = vld [vmem:[#allocation4 + $0x118] sm:$0xff] }
 0x224   : > { %1819 = vmatmul.f32.gmra.mxu3 %v3714_v22  ;;  %v1624_v22 = vld [vmem:[#allocation4 + $0x1c8] sm:$0xff] }
 0x225   : > { %v5348_v45 = vpop.f32.mrf.mxu0 }
 0x228   : > { %1875 = vmatmul.f32.gmra.mxu0 %v4858_v34 }
 0x22b   : > { %1742 = vmatmul.f32.gmra.mxu2 %v1618_v0  ;;  %v3718_v0 = vld [vmem:[#allocation4 + $0x260] sm:$0xff] }
 0x22c   : > { %1822 = vmatmul.f32.gmra.mxu3 %v3715_v3  ;;  %v1627_v3 = vld [vmem:[#allocation4 + $0x1f0] sm:$0xff] }
 0x22d   : > { %v5351_v42 = vpop.f32.mrf.mxu0 }
 0x230   : > { %1878 = vmatmul.f32.gmra.mxu0 %v4887_v60 }
 0x233   : > { %1745 = vmatmul.f32.gmra.mxu2 %v1621_v13  ;;  %v3719_v13 = vld [vmem:[#allocation4 + $0x80] sm:$0xff] }
 0x234   : > { %1825 = vmatmul.f32.gmra.mxu3 %v5140_v53 }
 0x235   : > { %v5354_v37 = vpop.f32.mrf.mxu0 }
 0x236   : > { %6182 = vst [vmem:[#allocation64_spill] sm:$0xff] %v5354_v37  ;;  %v3726_v37 = vld [vmem:[#allocation4 + $0x1a8] sm:$0xff] }
 0x238   : > { %1881 = vmatmul.f32.gmra.mxu0 %v4924_v33 }
 0x23b   : > { %1748 = vmatmul.f32.gmra.mxu2 %v1624_v22  ;;  %v3720_v22 = vld [vmem:[#allocation4 + $0x3b8] sm:$0xff] }
 0x23c   : > { %1828 = vmatmul.f32.gmra.mxu3 %v5161_v4 }
 0x23d   : > { %v5357_v34 = vpop.f32.mrf.mxu0 }
 0x23e   : > { %6183 = vst [vmem:[#allocation65_spill] sm:$0xff] %v5357_v34 }
 0x240   : > { %1884 = vmatmul.f32.gmra.mxu0 %v3716_v7  ;;  %v5368_v7 = vpop.f32.mrf.mxu1 }
 0x241   : > { %6186 = vst [vmem:[#allocation68_spill] sm:$0xff] %v5368_v7 }
 0x243   : > { %1751 = vmatmul.f32.gmra.mxu2 %v1627_v3 }
 0x244   : > { %1831 = vmatmul.f32.gmra.mxu3 %v5182_v28 }
 0x245   : > { %v5360_v60 = vpop.f32.mrf.mxu0 }
 0x246   : > { %6184 = vst [vmem:[#allocation66_spill] sm:$0xff] %v5360_v60  ;;  %v1630_v60 = vld [vmem:[#allocation4 + $0x40] sm:$0xff] }
 0x248   : > { %1887 = vmatmul.f32.gmra.mxu0 %v3717_v10  ;;  %v5373_v4 = vpop.f32.mrf.mxu1 }
 0x249   : > { %6188 = vst [vmem:[#allocation70_spill] sm:$0xff] %v5373_v4 }
 0x24b   : > { %1754 = vmatmul.f32.gmra.mxu2 %v1630_v60  ;;  %v5385_v60 = vpop.f32.mrf.mxu2 }
 0x24c   : > { %1834 = vmatmul.f32.gmra.mxu3 %v5203_v12  ;;  %v5383_v12 = vpop.f32.mrf.mxu3  ;;  %6193 = vst [vmem:[#allocation75_spill] sm:$0xff] %v5385_v60 }
 0x24d   : > { %v5365_v33 = vpop.f32.mrf.mxu0  ;;  %6192 = vst [vmem:[#allocation74_spill] sm:$0xff] %v5383_v12  ;;  %v1642_v12 = vld [vmem:[#allocation4 + $0x328] sm:$0xff] }
 0x24e   : > { %6185 = vst [vmem:[#allocation67_spill] sm:$0xff] %v5365_v33  ;;  %v3722_v33 = vld [vmem:[#allocation4 + $0xb8] sm:$0xff] }
 0x250   : > { %1890 = vmatmul.f32.gmra.mxu0 %v3718_v0  ;;  %v1633_v0 = vld [vmem:[#allocation4 + $0x140] sm:$0xff]  ;;  %v5378_v28 = vpop.f32.mrf.mxu1 }
 0x251   : > { %6190 = vst [vmem:[#allocation72_spill] sm:$0xff] %v5378_v28 }
 0x253   : > { %1757 = vmatmul.f32.gmra.mxu2 %v1633_v0 }
 0x254   : > { %1837 = vmatmul.f32.gmra.mxu3 %v5224_v35  ;;  %v1639_v35 = vld [vmem:[#allocation4 + $0x308] sm:$0xff] }
 0x255   : > { %v5370_v53 = vpop.f32.mrf.mxu0 }
 0x256   : > { %6187 = vst [vmem:[#allocation69_spill] sm:$0xff] %v5370_v53  ;;  %v3721_v53 = vld [vmem:[#allocation4 + $0x300] sm:$0xff] }
 0x258   : > { %1893 = vmatmul.f32.gmra.mxu0 %v3719_v13  ;;  %v1636_v13 = vld [vmem:[#allocation4 + $0x120] sm:$0xff] }
 0x25b   : > { %1760 = vmatmul.f32.gmra.mxu2 %v1636_v13  ;;  %v3723_v13 = vld [vmem:[#allocation4 + $0x38] sm:$0xff] }
 0x25c   : > { %1840 = vmatmul.f32.gmra.mxu3 %v5255_v62 }
 0x25d   : > { %v5375_v10 = vpop.f32.mrf.mxu0 }
 0x25e   : > { %6189 = vst [vmem:[#allocation71_spill] sm:$0xff] %v5375_v10  ;;  %v1454_v10 = vpop.f32.mrf.mxu1 }
 0x25f   : > { %v1793_v0 = vpop.f32.mrf.mxu3 }
 0x260   : > { %1896 = vmatmul.f32.gmra.mxu0 %v3720_v22 }
 0x263   : > { %1763 = vmatmul.f32.gmra.mxu2 %v1639_v35  ;;  %v1645_v35 = vld [vmem:[#allocation4 + $0x238] sm:$0xff] }
 0x264   : > { %1843 = vmatmul.f32.gmra.mxu3 %v5279_v20  ;;  %v3724_v20 = vld [vmem:[#allocation4 + $0x358] sm:$0xff] }
 0x265   : > { %v5380_v3 = vpop.f32.mrf.mxu0 }
 0x266   : > { %6191 = vst [vmem:[#allocation73_spill] sm:$0xff] %v5380_v3  ;;  %v1716_v3 = vpop.f32.mrf.mxu2  ;;  %v1457_v62 = vpop.f32.mrf.mxu1 }
 0x268   : > { %1899 = vmatmul.f32.gmra.mxu0 %v3721_v53 }
 0x26b   : > { %1766 = vmatmul.f32.gmra.mxu2 %v1642_v12  ;;  %v1648_v12 = vld [vmem:[#allocation4 + $0x250] sm:$0xff] }
 0x26c   : > { %1846 = vmatmul.f32.gmra.mxu3 %v5301_v55  ;;  %v3725_v55 = vld [vmem:[#allocation4 + $0x2f0] sm:$0xff] }
 0x26d   : > { %v5387_v22 = vpop.f32.mrf.mxu0 }
 0x26e   : > { %6194 = vst [vmem:[#allocation76_spill] sm:$0xff] %v5387_v22  ;;  %v1719_v60 = vpop.f32.mrf.mxu2  ;;  %v1796_v22 = vpop.f32.mrf.mxu3 }
 0x270   : > { %1902 = vmatmul.f32.gmra.mxu0 %v3722_v33 }
 0x273   : > { %1769 = vmatmul.f32.gmra.mxu2 %v1645_v35 }
 0x274   : > { %1849 = vmatmul.f32.gmra.mxu3 %v5323_v27 }
 0x275   : > { %v1425_v53 = vpop.f32.mrf.mxu0 }
 0x276   : > { %v5391_v28 = vadd.f32 %v1425_v53, %v5262_v51  ;;  %v1460_v51 = vpop.f32.mrf.mxu1  ;;  %v1722_v53 = vpop.f32.mrf.mxu2 }
 0x278   : > { %6195 = vst [vmem:[#allocation77_spill] sm:$0xff] %v5391_v28  ;;  %1905 = vmatmul.f32.gmra.mxu0 %v3723_v13  ;;  %v1799_v28 = vpop.f32.mrf.mxu3 }
 0x27b   : > { %1772 = vmatmul.f32.gmra.mxu2 %v1648_v12 }
 0x27d   : > { %v1428_v33 = vpop.f32.mrf.mxu0 }
 0x27e   : > { %v5395_v4 = vadd.f32 %v1428_v33, %v5290_v44  ;;  %v1147_v44 = vadd.f32 %v5110_v1, %v4772_v50  ;;  %v5403_v33 = vpop.f32.mrf.mxu1  ;;  %v1725_v27 = vpop.f32.mrf.mxu2 }
 0x280   : > { %6196 = vst [vmem:[#allocation78_spill] sm:$0xff] %v5395_v4  ;;  %1908 = vmatmul.f32.gmra.mxu0 %v3724_v20  ;;  %v1224_v20 = vadd.f32 %v5169_v19, %v1147_v44  ;;  %v1802_v4 = vpop.f32.mrf.mxu3 }
 0x282   : > { %v1301_v7 = vadd.f32 %v4976_v11, %v1224_v20  ;;  %v5422_v11 = vld [vmem:[%s6098_s2] ss:$0 sm:$0xff] }
 0x285   : > { %v1431_v13 = vpop.f32.mrf.mxu0 }
 0x286   : > { %v5399_v34 = vadd.f32 %v1431_v13, %v5313_v32  ;;  %v1150_v32 = vadd.f32 %v5138_v31, %v4789_v30  ;;  %v1378_v13 = vadd.f32 %v5331_v39, %v1301_v7  ;;  %v5413_v1 = vpop.f32.mrf.mxu2  ;;  %v5417_v19 = vpop.f32.mrf.mxu1  ;;  %v3727_v39 = vld [vmem:[#allocation4 + $0x2c0] sm:$0xff] }
 0x288   : > { %6197 = vst [vmem:[#allocation79_spill] sm:$0xff] %v5399_v34  ;;  %1911 = vmatmul.f32.gmra.mxu0 %v3725_v55  ;;  %v1794_v55 = vadd.f32 %v1793_v0, %v1716_v3  ;;  %v1227_v50 = vadd.f32 %v5193_v25, %v1150_v32  ;;  %v5415_v12 = vpop.f32.mrf.mxu3  ;;  %v5428_v25 = vld [vmem:[%s6099_s3] ss:$0 sm:$0xff]  ;;  %v1797_v3 = vadd.f32 %v1796_v22, %v1719_v60 }
 0x28a   : > { %v1304_v30 = vadd.f32 %v4987_v43, %v1227_v50 }
 0x28c   : > { %v1381_v7 = vadd.f32 %v5335_v26, %v1304_v30  ;;  %v3728_v26 = vld [vmem:[#allocation4 + $0x398] sm:$0xff] }
 0x28d   : > { %v5406_v35 = vpop.f32.mrf.mxu0 }
 0x28e   : > { %6198 = vst [vmem:[#allocation80_spill] sm:$0xff] %v5406_v35  ;;  %v1455_v35 = vadd.f32 %v1454_v10, %v1378_v13  ;;  %v1458_v32 = vadd.f32 %v1457_v62, %v1381_v7  ;;  %v5440_v50 = vpop.f32.mrf.mxu1 }
 0x290   : > { %1914 = vmatmul.f32.gmra.mxu0 %v3726_v37  ;;  %v1153_v37 = vadd.f32 %v5164_v21, %v4805_v29  ;;  %v5438_v20 = vpop.f32.mrf.mxu3 }
 0x292   : > { %v1230_v0 = vadd.f32 %v5220_v41, %v1153_v37  ;;  %v1156_v41 = vadd.f32 %v5189_v54, %v4823_v18  ;;  %v1159_v54 = vadd.f32 %v5218_v61, %v4846_v9  ;;  %v1162_v61 = vadd.f32 %v5245_v47, %v4876_v46 }
 0x294   : > { %v1307_v29 = vadd.f32 %v4997_v23, %v1230_v0  ;;  %v1233_v62 = vadd.f32 %v5240_v38, %v1156_v41 }
 0x295   : > { %v1870_v44 = vpop.f32.mrf.mxu0 }
 0x296   : > { %v1871_v34 = vadd.f32 %v1870_v44, %v1794_v55  ;;  %v1384_v60 = vadd.f32 %v5338_v5, %v1307_v29  ;;  %v1800_v44 = vadd.f32 %v1799_v28, %v1722_v53  ;;  %v1472_v18 = vpop.f32.mrf.mxu1  ;;  %v1803_v28 = vadd.f32 %v1802_v4, %v1725_v27 }
 0x297   : > { %v1236_v53 = vadd.f32 %v5264_v15, %v1159_v54  ;;  %v1806_v4 = vadd.f32 %v5415_v12, %v5413_v1  ;;  %v1239_v27 = vadd.f32 %v5292_v48, %v1162_v61 }
 0x298   : > { %v1930_v31 = vadd.f32 %v1871_v34, %v1455_v35  ;;  %1917 = vmatmul.f32.gmra.mxu0 %v3727_v39  ;;  %v5436_v34 = vpop.f32.mrf.mxu2  ;;  %v1811_v37 = vpop.f32.mrf.mxu3  ;;  %v1461_v23 = vadd.f32 %v1460_v51, %v1384_v60  ;;  %v1165_v60 = vadd.f32 %v5277_v36, %v4908_v56  ;;  %v1168_v36 = vadd.f32 %v5311_v6, %v4951_v16  ;;  %v6200_v6 = vld [vmem:[#allocation37_spill] sm:$0xff] }
 0x299   : > { %v1316_v41 = vadd.f32 %v5042_v59, %v1239_v27  ;;  %v1809_v12 = vadd.f32 %v5438_v20, %v5436_v34 }
 0x29a   : > { %v1954_v10 = vmul.f32 %v5422_v11, %v1930_v31 }
 0x29b   : > { %v1393_v1 = vadd.f32 %v5345_v24, %v1316_v41  ;;  %v6206_v41 = vld [vmem:[#allocation45_spill] sm:$0xff] }
 0x29c   : > { %v1978_v43 = vadd.f32 %v5428_v25, %v1954_v10 }
 0x29d   : > { %v1873_v35 = vpop.f32.mrf.mxu0 }
 0x29e   : > { %v1998_v13 = vmax.f32 %v1978_v43, 0.0  ;;  %v1874_v55 = vadd.f32 %v1873_v35, %v1797_v3  ;;  %v1310_v3 = vadd.f32 %v5011_v63, %v1233_v62  ;;  %v1470_v62 = vadd.f32 %v5440_v50, %v1393_v1 }
 0x29f   : > { %v1245_v50 = vadd.f32 %v5023_v17, %v1168_v36 }
 0x2a0   : > { %2018 = vst [vmem:[#allocation5 + $0x1] sm:$0xff] %v1998_v13  ;;  %v1931_v21 = vadd.f32 %v1874_v55, %v1458_v32  ;;  %1920 = vmatmul.f32.gmra.mxu0 %v3728_v26  ;;  %v1734_v31 = vpop.f32.mrf.mxu2  ;;  %v1387_v38 = vadd.f32 %v5340_v57, %v1310_v3  ;;  %v1313_v55 = vadd.f32 %v5025_v8, %v1236_v53 }
 0x2a2   : > { %v1955_v22 = vmul.f32 %v5422_v11, %v1931_v21  ;;  %v1464_v63 = vadd.f32 %v5403_v33, %v1387_v38  ;;  %v1390_v15 = vadd.f32 %v5342_v49, %v1313_v55  ;;  %v1475_v33 = vpop.f32.mrf.mxu1 }
 0x2a4   : > { %v1979_v30 = vadd.f32 %v5428_v25, %v1955_v22  ;;  %v1467_v21 = vadd.f32 %v5417_v19, %v1390_v15  ;;  %v1242_v19 = vadd.f32 %v5315_v58, %v1165_v60  ;;  %v1812_v58 = vadd.f32 %v1811_v37, %v1734_v31  ;;  %v6203_v15 = vld [vmem:[#allocation49_spill] sm:$0xff] }
 0x2a5   : > { %v1876_v39 = vpop.f32.mrf.mxu0 }
 0x2a6   : > { %v1999_v7 = vmax.f32 %v1979_v30, 0.0  ;;  %v1877_v10 = vadd.f32 %v1876_v39, %v1800_v44 }
 0x2a8   : > { %2019 = vst [vmem:[#allocation5 + $0x9] sm:$0xff] %v1999_v7  ;;  %v1932_v0 = vadd.f32 %v1877_v10, %v1461_v23  ;;  %1923 = vmatmul.f32.gmra.mxu0 %v5304_v14  ;;  %v1737_v13 = vpop.f32.mrf.mxu2  ;;  %v1814_v14 = vpop.f32.mrf.mxu3  ;;  %v1319_v23 = vadd.f32 %v5054_v40, %v1242_v19  ;;  %v6207_v19 = vld [vmem:[#allocation51_spill] sm:$0xff] }
 0x2aa   : > { %v1956_v5 = vmul.f32 %v5422_v11, %v1932_v0  ;;  %v1478_v44 = vpop.f32.mrf.mxu1  ;;  %v1396_v24 = vadd.f32 %v5348_v45, %v1319_v23  ;;  %v6201_v45 = vld [vmem:[#allocation63_spill] sm:$0xff] }
 0x2ab   : > { %v1171_v53 = vadd.f32 %v6201_v45, %v6200_v6  ;;  %v6215_v45 = vld [vmem:[#allocation66_spill] sm:$0xff] }
 0x2ac   : > { %v1980_v51 = vadd.f32 %v5428_v25, %v1956_v5  ;;  %v1473_v0 = vadd.f32 %v1472_v18, %v1396_v24  ;;  %v6199_v5 = vld [vmem:[#allocation46_spill] sm:$0xff]  ;;  %v6211_v24 = vld [vmem:[#allocation48_spill] sm:$0xff] }
 0x2ad   : > { %v1879_v43 = vpop.f32.mrf.mxu0 }
 0x2ae   : > { %v2000_v35 = vmax.f32 %v1980_v51, 0.0  ;;  %v1880_v32 = vadd.f32 %v1879_v43, %v1803_v28  ;;  %v1322_v28 = vadd.f32 %v6199_v5, %v1245_v50  ;;  %v1815_v51 = vadd.f32 %v1814_v14, %v1737_v13  ;;  %v6212_v50 = vld [vmem:[#allocation53_spill] sm:$0xff] }
 0x2b0   : > { %2020 = vst [vmem:[#allocation5 + $0x19] sm:$0xff] %v2000_v35  ;;  %v1933_v9 = vadd.f32 %v1880_v32, %v1464_v63  ;;  %1926 = vmatmul.f32.gmra.mxu0 %v5327_v52  ;;  %v1740_v46 = vpop.f32.mrf.mxu2  ;;  %v1817_v49 = vpop.f32.mrf.mxu3  ;;  %v1399_v31 = vadd.f32 %v5351_v42, %v1322_v28  ;;  %v6202_v35 = vld [vmem:[#allocation42_spill] sm:$0xff]  ;;  %v6213_v28 = vld [vmem:[#allocation40_spill] sm:$0xff] }
 0x2b1   : > { %v1248_v32 = vadd.f32 %v6202_v35, %v1171_v53 }
 0x2b2   : > { %v1957_v57 = vmul.f32 %v5422_v11, %v1933_v9  ;;  %v1481_v38 = vpop.f32.mrf.mxu1  ;;  %v1476_v55 = vadd.f32 %v1475_v33, %v1399_v31 }
 0x2b4   : > { %v1981_v29 = vadd.f32 %v5428_v25, %v1957_v57  ;;  %v1325_v57 = vadd.f32 %v6203_v15, %v1248_v32  ;;  %v6218_v15 = vld [vmem:[#allocation41_spill] sm:$0xff] }
 0x2b5   : > { %v1882_v8 = vpop.f32.mrf.mxu0 }
 0x2b6   : > { %v2001_v26 = vmax.f32 %v1981_v29, 0.0  ;;  %v1883_v52 = vadd.f32 %v1882_v8, %v1806_v4  ;;  %v6204_v29 = vld [vmem:[#allocation38_spill] sm:$0xff]  ;;  %v6205_v8 = vld [vmem:[#allocation64_spill] sm:$0xff] }
 0x2b7   : > { %v1174_v42 = vadd.f32 %v5362_v2, %v6204_v29  ;;  %v1402_v13 = vadd.f32 %v6205_v8, %v1325_v57  ;;  %v6208_v2 = vld [vmem:[#allocation39_spill] sm:$0xff]  ;;  %v6219_v57 = vld [vmem:[#allocation72_spill] sm:$0xff] }
 0x2b8   : > { %2021 = vst [vmem:[#allocation5 + $0x21] sm:$0xff] %v2001_v26  ;;  %v1934_v47 = vadd.f32 %v1883_v52, %v1467_v21  ;;  %v1743_v20 = vpop.f32.mrf.mxu2  ;;  %v1820_v7 = vpop.f32.mrf.mxu3  ;;  %v1818_v21 = vadd.f32 %v1817_v49, %v1740_v46  ;;  %v6220_v29 = vld [vmem:[#allocation67_spill] sm:$0xff] }
 0x2b9   : > { %v1251_v33 = vadd.f32 %v6206_v41, %v1174_v42  ;;  %v1821_v49 = vadd.f32 %v1820_v7, %v1743_v20 }
 0x2ba   : > { %v1958_v48 = vmul.f32 %v5422_v11, %v1934_v47  ;;  %v1484_v27 = vpop.f32.mrf.mxu1  ;;  %v1479_v47 = vadd.f32 %v1478_v44, %v1402_v13 }
 0x2bc   : > { %v1982_v22 = vadd.f32 %v5428_v25, %v1958_v48 }
 0x2bd   : > { %v1885_v59 = vpop.f32.mrf.mxu0 }
 0x2be   : > { %v2002_v30 = vmax.f32 %v1982_v22, 0.0  ;;  %v1886_v39 = vadd.f32 %v1885_v59, %v1809_v12  ;;  %v1328_v22 = vadd.f32 %v6207_v19, %v1251_v33 }
 0x2c0   : > { %2022 = vst [vmem:[#allocation5 + $0x31] sm:$0xff] %v2002_v30  ;;  %v1935_v56 = vadd.f32 %v1886_v39, %v1470_v62  ;;  %v1746_v63 = vpop.f32.mrf.mxu2  ;;  %v1823_v18 = vpop.f32.mrf.mxu3  ;;  %v6209_v62 = vld [vmem:[#allocation68_spill] sm:$0xff]  ;;  %v6210_v39 = vld [vmem:[#allocation65_spill] sm:$0xff] }
 0x2c1   : > { %v1177_v30 = vadd.f32 %v6209_v62, %v6208_v2  ;;  %v1405_v23 = vadd.f32 %v6210_v39, %v1328_v22  ;;  %v1824_v53 = vadd.f32 %v1823_v18, %v1746_v63  ;;  %v6223_v22 = vld [vmem:[#allocation43_spill] sm:$0xff]  ;;  %v6225_v62 = vld [vmem:[#allocation69_spill] sm:$0xff] }
 0x2c2   : > { %v1959_v34 = vmul.f32 %v5422_v11, %v1935_v56  ;;  %v1487_v56 = vpop.f32.mrf.mxu1 }
 0x2c4   : > { %v1983_v10 = vadd.f32 %v5428_v25, %v1959_v34  ;;  %v1254_v34 = vadd.f32 %v6211_v24, %v1177_v30 }
 0x2c5   : > { %v1888_v3 = vpop.f32.mrf.mxu0 }
 0x2c6   : > { %v2003_v54 = vmax.f32 %v1983_v10, 0.0  ;;  %v1889_v40 = vadd.f32 %v1888_v3, %v1812_v58  ;;  %v1482_v58 = vadd.f32 %v1481_v38, %v1405_v23 }
 0x2c8   : > { %2023 = vst [vmem:[#allocation5 + $0x39] sm:$0xff] %v2003_v54  ;;  %v1936_v16 = vadd.f32 %v1889_v40, %v1473_v0  ;;  %v1749_v48 = vpop.f32.mrf.mxu2  ;;  %v1826_v12 = vpop.f32.mrf.mxu3  ;;  %v1331_v0 = vadd.f32 %v6212_v50, %v1254_v34 }
 0x2c9   : > { %v1827_v18 = vadd.f32 %v1826_v12, %v1749_v48 }
 0x2ca   : > { %v1960_v37 = vmul.f32 %v5422_v11, %v1936_v16  ;;  %v6214_v16 = vld [vmem:[#allocation70_spill] sm:$0xff]  ;;  %v1408_v20 = vadd.f32 %v6215_v45, %v1331_v0  ;;  %v6228_v0 = vld [vmem:[#allocation44_spill] sm:$0xff] }
 0x2cb   : > { %v1180_v6 = vadd.f32 %v6214_v16, %v6213_v28  ;;  %v6230_v16 = vld [vmem:[#allocation71_spill] sm:$0xff] }
 0x2cc   : > { %v1984_v43 = vadd.f32 %v5428_v25, %v1960_v37  ;;  %v1490_v37 = vpop.f32.mrf.mxu1 }
 0x2cd   : > { %v1891_v17 = vpop.f32.mrf.mxu0 }
 0x2ce   : > { %v2004_v9 = vmax.f32 %v1984_v43, 0.0  ;;  %v1892_v61 = vadd.f32 %v1891_v17, %v1815_v51  ;;  %v6216_v51 = vld [vmem:[#allocation50_spill] sm:$0xff]  ;;  %v1485_v17 = vadd.f32 %v1484_v27, %v1408_v20  ;;  %v6221_v27 = vld [vmem:[#allocation52_spill] sm:$0xff] }
 0x2cf   : > { %v1257_v43 = vadd.f32 %v6216_v51, %v1180_v6 }
 0x2d0   : > { %2024 = vst [vmem:[#allocation5 + $0x49] sm:$0xff] %v2004_v9  ;;  %v1937_v4 = vadd.f32 %v1892_v61, %v1476_v55  ;;  %v1752_v40 = vpop.f32.mrf.mxu2  ;;  %v1829_v5 = vpop.f32.mrf.mxu3  ;;  %v6217_v55 = vld [vmem:[#allocation54_spill] sm:$0xff] }
 0x2d1   : > { %v1334_v9 = vadd.f32 %v6217_v55, %v1257_v43  ;;  %v1830_v30 = vadd.f32 %v1829_v5, %v1752_v40  ;;  %v6233_v55 = vld [vmem:[#allocation47_spill] sm:$0xff] }
 0x2d2   : > { %v1961_v14 = vmul.f32 %v5422_v11, %v1937_v4  ;;  %v1183_v4 = vadd.f32 %v6219_v57, %v6218_v15  ;;  %v6235_v15 = vld [vmem:[#allocation73_spill] sm:$0xff] }
 0x2d3   : > { %v1411_v42 = vadd.f32 %v6220_v29, %v1334_v9  ;;  %v6234_v9 = vld [vmem:[#allocation35_spill] sm:$0xff] }
 0x2d4   : > { %v1985_v26 = vadd.f32 %v5428_v25, %v1961_v14 }
 0x2d5   : > { %v1894_v52 = vpop.f32.mrf.mxu0 }
 0x2d6   : > { %v2005_v60 = vmax.f32 %v1985_v26, 0.0  ;;  %v1895_v1 = vadd.f32 %v1894_v52, %v1818_v21  ;;  %v1260_v26 = vadd.f32 %v6221_v27, %v1183_v4  ;;  %v1488_v52 = vadd.f32 %v1487_v56, %v1411_v42  ;;  %v6226_v56 = vld [vmem:[#allocation56_spill] sm:$0xff] }
 0x2d8   : > { %2025 = vst [vmem:[#allocation5 + $0x51] sm:$0xff] %v2005_v60  ;;  %v1938_v59 = vadd.f32 %v1895_v1, %v1479_v47  ;;  %v1755_v8 = vpop.f32.mrf.mxu2  ;;  %v1832_v13 = vpop.f32.mrf.mxu3  ;;  %v6222_v60 = vld [vmem:[#allocation57_spill] sm:$0xff] }
 0x2d9   : > { %v1493_v47 = vpop.f32.mrf.mxu1  ;;  %v1337_v1 = vadd.f32 %v6222_v60, %v1260_v26  ;;  %v1833_v6 = vadd.f32 %v1832_v13, %v1755_v8  ;;  %v6236_v8 = vld [vmem:[#allocation60_spill] sm:$0xff]  ;;  %v6237_v26 = vld [vmem:[#allocation62_spill] sm:$0xff] }
 0x2da   : > { %v1962_v46 = vmul.f32 %v5422_v11, %v1938_v59  ;;  %v6224_v59 = vld [vmem:[#allocation33_spill] sm:$0xff]  ;;  %v6238_v60 = vld [vmem:[#allocation76_spill] sm:$0xff] }
 0x2db   : > { %v1186_v2 = vadd.f32 %v6224_v59, %v6223_v22  ;;  %v1414_v48 = vadd.f32 %v6225_v62, %v1337_v1 }
 0x2dc   : > { %v1986_v36 = vadd.f32 %v5428_v25, %v1962_v46 }
 0x2dd   : > { %v1897_v44 = vpop.f32.mrf.mxu0 }
 0x2de   : > { %v2006_v10 = vmax.f32 %v1986_v36, 0.0  ;;  %v1898_v3 = vadd.f32 %v1897_v44, %v1821_v49  ;;  %v1263_v36 = vadd.f32 %v6226_v56, %v1186_v2  ;;  %v1491_v44 = vadd.f32 %v1490_v37, %v1414_v48 }
 0x2e0   : > { %2026 = vst [vmem:[#allocation5 + $0x61] sm:$0xff] %v2006_v10  ;;  %v1939_v54 = vadd.f32 %v1898_v3, %v1482_v58  ;;  %v1758_v23 = vpop.f32.mrf.mxu2  ;;  %v1835_v49 = vpop.f32.mrf.mxu3  ;;  %v6227_v58 = vld [vmem:[#allocation59_spill] sm:$0xff] }
 0x2e1   : > { %v1340_v10 = vadd.f32 %v6227_v58, %v1263_v36  ;;  %v1496_v50 = vpop.f32.mrf.mxu1  ;;  %v1836_v29 = vadd.f32 %v1835_v49, %v1758_v23 }
 0x2e2   : > { %v1963_v7 = vmul.f32 %v5422_v11, %v1939_v54  ;;  %v6229_v54 = vld [vmem:[#allocation34_spill] sm:$0xff] }
 0x2e3   : > { %v1189_v28 = vadd.f32 %v6229_v54, %v6228_v0  ;;  %v1417_v40 = vadd.f32 %v6230_v16, %v1340_v10  ;;  %v3875_v0 = vmov 0.0  }
 0x2e4   : > { %v1987_v31 = vadd.f32 %v5428_v25, %v1963_v7  ;;  %v6231_v7 = vld [vmem:[#allocation58_spill] sm:$0xff]  ;;  %2038 = vst [vmem:[#allocation5] sm:$0x1] %v3875_v0 }
 0x2e5   : > { %v1900_v38 = vpop.f32.mrf.mxu0  ;;  %2039 = vst [vmem:[#allocation5 + $0x18] sm:$0x1] %v3875_v0 }
 0x2e6   : > { %v2007_v35 = vmax.f32 %v1987_v31, 0.0  ;;  %v1901_v32 = vadd.f32 %v1900_v38, %v1824_v53  ;;  %v1266_v53 = vadd.f32 %v6231_v7, %v1189_v28  ;;  %v1494_v31 = vadd.f32 %v1493_v47, %v1417_v40  ;;  %2040 = vst [vmem:[#allocation5 + $0x30] sm:$0x1] %v3875_v0 }
 0x2e7   : > { %2041 = vst [vmem:[#allocation5 + $0x48] sm:$0x1] %v3875_v0 }
 0x2e8   : > { %2027 = vst [vmem:[#allocation5 + $0x69] sm:$0xff] %v2007_v35  ;;  %v1940_v61 = vadd.f32 %v1901_v32, %v1485_v17  ;;  %v1761_v51 = vpop.f32.mrf.mxu2  ;;  %v1838_v43 = vpop.f32.mrf.mxu3  ;;  %v6232_v17 = vld [vmem:[#allocation61_spill] sm:$0xff] }
 0x2e9   : > { %v1343_v35 = vadd.f32 %v6232_v17, %v1266_v53  ;;  %v1499_v42 = vpop.f32.mrf.mxu1  ;;  %v1839_v22 = vadd.f32 %v1838_v43, %v1761_v51  ;;  %2042 = vst [vmem:[#allocation5 + $0x60] sm:$0x1] %v3875_v0  ;;  %v6242_v51 = vld [vmem:[#allocation36_spill] sm:$0xff] }
 0x2ea   : > { %v1964_v63 = vmul.f32 %v5422_v11, %v1940_v61  ;;  %v1192_v61 = vadd.f32 %v6234_v9, %v6233_v55  ;;  %2043 = vst [vmem:[#allocation5 + $0x78] sm:$0x1] %v3875_v0  ;;  %v6243_v9 = vld [vmem:[#allocation75_spill] sm:$0xff] }
 0x2eb   : > { %v1420_v57 = vadd.f32 %v6235_v15, %v1343_v35  ;;  %2044 = vst [vmem:[#allocation5 + $0x90] sm:$0x1] %v3875_v0  ;;  %v6244_v15 = vld [vmem:[#allocation79_spill] sm:$0xff] }
 0x2ec   : > { %v1988_v14 = vadd.f32 %v5428_v25, %v1964_v63  ;;  %v1269_v13 = vadd.f32 %v6236_v8, %v1192_v61  ;;  %2045 = vst [vmem:[#allocation5 + $0xa8] sm:$0x1] %v3875_v0 }
 0x2ed   : > { %v1903_v21 = vpop.f32.mrf.mxu0  ;;  %2046 = vst [vmem:[#allocation5 + $0xc0] sm:$0x1] %v3875_v0 }
 0x2ee   : > { %v2008_v41 = vmax.f32 %v1988_v14, 0.0  ;;  %v1904_v33 = vadd.f32 %v1903_v21, %v1827_v18  ;;  %v1497_v14 = vadd.f32 %v1496_v50, %v1420_v57  ;;  %2047 = vst [vmem:[#allocation5 + $0xd8] sm:$0x1] %v3875_v0 }
 0x2ef   : > { %2048 = vst [vmem:[#allocation5 + $0x11] sm:$0x1] %v3875_v0 }
 0x2f0   : > { %2028 = vst [vmem:[#allocation5 + $0x79] sm:$0xff] %v2008_v41  ;;  %v1941_v19 = vadd.f32 %v1904_v33, %v1488_v52  ;;  %v1346_v52 = vadd.f32 %v6237_v26, %v1269_v13  ;;  %v1764_v33 = vpop.f32.mrf.mxu2  ;;  %v1841_v47 = vpop.f32.mrf.mxu3 }
 0x2f1   : > { %v1502_v2 = vpop.f32.mrf.mxu1  ;;  %2049 = vst [vmem:[#allocation5 + $0x29] sm:$0x1] %v3875_v0 }
 0x2f2   : > { %v1965_v12 = vmul.f32 %v5422_v11, %v1941_v19  ;;  %v1423_v1 = vadd.f32 %v6238_v60, %v1346_v52  ;;  %2050 = vst [vmem:[#allocation5 + $0x41] sm:$0x1] %v3875_v0 }
 0x2f3   : > { %2051 = vst [vmem:[#allocation5 + $0x59] sm:$0x1] %v3875_v0 }
 0x2f4   : > { %v1989_v39 = vadd.f32 %v5428_v25, %v1965_v12  ;;  %v1500_v48 = vadd.f32 %v1499_v42, %v1423_v1  ;;  %2052 = vst [vmem:[#allocation5 + $0x71] sm:$0x1] %v3875_v0 }
 0x2f5   : > { %v1906_v46 = vpop.f32.mrf.mxu0  ;;  %2053 = vst [vmem:[#allocation5 + $0x89] sm:$0x1] %v3875_v0 }
 0x2f6   : > { %v2009_v24 = vmax.f32 %v1989_v39, 0.0  ;;  %v1907_v34 = vadd.f32 %v1906_v46, %v1830_v30  ;;  %v1842_v46 = vadd.f32 %v1841_v47, %v1764_v33  ;;  %2054 = vst [vmem:[#allocation5 + $0xa1] sm:$0x1] %v3875_v0 }
 0x2f7   : > { %2055 = vst [vmem:[#allocation5 + $0xb9] sm:$0x1] %v3875_v0 }
 0x2f8   : > { %2029 = vst [vmem:[#allocation5 + $0x81] sm:$0xff] %v2009_v24  ;;  %v1942_v3 = vadd.f32 %v1907_v34, %v1491_v44  ;;  %v1767_v49 = vpop.f32.mrf.mxu2  ;;  %v1844_v56 = vpop.f32.mrf.mxu3  ;;  %v6239_v24 = vld [vmem:[#allocation77_spill] sm:$0xff] }
 0x2f9   : > { %v1503_v34 = vadd.f32 %v1502_v2, %v6239_v24  ;;  %v1845_v28 = vadd.f32 %v1844_v56, %v1767_v49  ;;  %2056 = vst [vmem:[#allocation5 + $0xd1] sm:$0x1] %v3875_v0 }
 0x2fa   : > { %v1966_v5 = vmul.f32 %v5422_v11, %v1942_v3  ;;  %v1505_v3 = vpop.f32.mrf.mxu1  ;;  %2057 = vst [vmem:[#allocation5 + $0xe9] sm:$0x1] %v3875_v0 }
 0x2fc   : > { %v1990_v45 = vadd.f32 %v5428_v25, %v1966_v5 }
 0x2fd   : > { %v1909_v20 = vpop.f32.mrf.mxu0 }
 0x2fe   : > { %v2010_v37 = vmax.f32 %v1990_v45, 0.0  ;;  %v1910_v38 = vadd.f32 %v1909_v20, %v1833_v6  ;;  %v6240_v45 = vld [vmem:[#allocation78_spill] sm:$0xff] }
 0x2ff   : > { %v1506_v20 = vadd.f32 %v1505_v3, %v6240_v45 }
 0x300   : > { %2030 = vst [vmem:[#allocation5 + $0x91] sm:$0xff] %v2010_v37  ;;  %v1943_v32 = vadd.f32 %v1910_v38, %v1494_v31  ;;  %v1770_v40 = vpop.f32.mrf.mxu2  ;;  %v1847_v6 = vpop.f32.mrf.mxu3  ;;  %v6241_v38 = vld [vmem:[#allocation55_spill] sm:$0xff] }
 0x301   : > { %v1204_v43 = vadd.f32 %v6242_v51, %v6241_v38  ;;  %v1848_v35 = vadd.f32 %v1847_v6, %v1770_v40 }
 0x302   : > { %v1967_v4 = vmul.f32 %v5422_v11, %v1943_v32  ;;  %v1508_v37 = vpop.f32.mrf.mxu1 }
 0x303   : > { %v1281_v61 = vadd.f32 %v6243_v9, %v1204_v43  ;;  %v1509_v57 = vadd.f32 %v1508_v37, %v6244_v15 }
 0x304   : > { %v1991_v63 = vadd.f32 %v5428_v25, %v1967_v4 }
 0x305   : > { %v1912_v18 = vpop.f32.mrf.mxu0 }
 0x306   : > { %v2011_v21 = vmax.f32 %v1991_v63, 0.0  ;;  %v1913_v27 = vadd.f32 %v1912_v18, %v1836_v29  ;;  %v6245_v18 = vld [vmem:[#allocation74_spill] sm:$0xff] }
 0x307   : > { %v1358_v8 = vadd.f32 %v6245_v18, %v1281_v61 }
 0x308   : > { %2031 = vst [vmem:[#allocation5 + $0x99] sm:$0xff] %v2011_v21  ;;  %v1944_v41 = vadd.f32 %v1913_v27, %v1497_v14  ;;  %v1773_v42 = vpop.f32.mrf.mxu2  ;;  %v1850_v63 = vpop.f32.mrf.mxu3  ;;  %v6246_v14 = vld [vmem:[#allocation80_spill] sm:$0xff] }
 0x309   : > { %v1435_v21 = vadd.f32 %v6246_v14, %v1358_v8  ;;  %v1851_v26 = vadd.f32 %v1850_v63, %v1773_v42 }
 0x30a   : > { %v1968_v19 = vmul.f32 %v5422_v11, %v1944_v41  ;;  %v1511_v52 = vpop.f32.mrf.mxu1 }
 0x30b   : > { %v1512_v47 = vadd.f32 %v1511_v52, %v1435_v21 }
 0x30c   : > { %v1992_v59 = vadd.f32 %v5428_v25, %v1968_v19 }
 0x30d   : > { %v1915_v62 = vpop.f32.mrf.mxu0 }
 0x30e   : > { %v2012_v12 = vmax.f32 %v1992_v59, 0.0  ;;  %v1916_v30 = vadd.f32 %v1915_v62, %v1839_v22 }
 0x310   : > { %2032 = vst [vmem:[#allocation5 + $0xa9] sm:$0xff] %v2012_v12  ;;  %v1945_v39 = vadd.f32 %v1916_v30, %v1500_v48 }
 0x312   : > { %v1969_v23 = vmul.f32 %v5422_v11, %v1945_v39 }
 0x314   : > { %v1993_v36 = vadd.f32 %v5428_v25, %v1969_v23 }
 0x315   : > { %v1918_v44 = vpop.f32.mrf.mxu0 }
 0x316   : > { %v2013_v58 = vmax.f32 %v1993_v36, 0.0  ;;  %v1919_v10 = vadd.f32 %v1918_v44, %v1842_v46 }
 0x318   : > { %2033 = vst [vmem:[#allocation5 + $0xb1] sm:$0xff] %v2013_v58  ;;  %v1946_v50 = vadd.f32 %v1919_v10, %v1503_v34 }
 0x31a   : > { %v1970_v54 = vmul.f32 %v5422_v11, %v1946_v50 }
 0x31c   : > { %v1994_v16 = vadd.f32 %v5428_v25, %v1970_v54 }
 0x31d   : > { %v1921_v5 = vpop.f32.mrf.mxu0 }
 0x31e   : > { %v2014_v7 = vmax.f32 %v1994_v16, 0.0  ;;  %v1922_v53 = vadd.f32 %v1921_v5, %v1845_v28 }
 0x320   : > { %2034 = vst [vmem:[#allocation5 + $0xc1] sm:$0xff] %v2014_v7  ;;  %v1947_v31 = vadd.f32 %v1922_v53, %v1506_v20 }
 0x322   : > { %v1971_v17 = vmul.f32 %v5422_v11, %v1947_v31 }
 0x324   : > { %v1995_v32 = vadd.f32 %v5428_v25, %v1971_v17 }
 0x325   : > { %v1924_v55 = vpop.f32.mrf.mxu0 }
 0x326   : > { %v2015_v4 = vmax.f32 %v1995_v32, 0.0  ;;  %v1925_v29 = vadd.f32 %v1924_v55, %v1848_v35 }
 0x328   : > { %2035 = vst [vmem:[#allocation5 + $0xc9] sm:$0xff] %v2015_v4  ;;  %v1948_v13 = vadd.f32 %v1925_v29, %v1509_v57 }
 0x32a   : > { %v1972_v27 = vmul.f32 %v5422_v11, %v1948_v13 }
 0x32c   : > { %v1996_v41 = vadd.f32 %v5428_v25, %v1972_v27 }
 0x32d   : > { %v1927_v33 = vpop.f32.mrf.mxu0 }
 0x32e   : > { %v2016_v60 = vmax.f32 %v1996_v41, 0.0  ;;  %v1928_v1 = vadd.f32 %v1927_v33, %v1851_v26 }
 0x330   : > { %2036 = vst [vmem:[#allocation5 + $0xd9] sm:$0xff] %v2016_v60  ;;  %v1949_v19 = vadd.f32 %v1928_v1, %v1512_v47 }
 0x332   : > { %v1973_v22 = vmul.f32 %v5422_v11, %v1949_v19 }
 0x334   : > { %v1997_v59 = vadd.f32 %v5428_v25, %v1973_v22  ;;  %2060 = sbr.rel (%p3484_p1) target bundleno = 829 (0x33d), region = 104 }
 0x336   : > { %v2017_v2 = vmax.f32 %v1997_v59, 0.0 }
 0x338   : > { %2037 = vst [vmem:[#allocation5 + $0xe1] sm:$0xff] %v2017_v2 }
 0x339   : > { %v3876_v62 = vmov 0.0  }
 0x33a   : > { %2061 = vst [vmem:[#allocation5] sm:$0xff] %v3876_v62 }
 0x33b   : > { %2062 = vst [vmem:[#allocation5 + $0x8] sm:$0xff] %v3876_v62 }
 0x33c   : > { %2063 = vst [vmem:[#allocation5 + $0x10] sm:$0x3] %v3876_v62 }
 0x33d PF: > { %p3547_p4 = scmp.ne.s32.totalorder %s3854_s27, 1 }
 0x33f   : > { %2067 = sbr.rel (%p3547_p4) target bundleno = 840 (0x348), region = 108 }
 0x344   : > { %v3877_v48 = vmov 0.0  }
 0x345   : > { %2069 = vst [vmem:[#allocation5 + $0xd8] sm:$0xff] %v3877_v48 }
 0x346   : > { %2070 = vst [vmem:[#allocation5 + $0xe0] sm:$0xff] %v3877_v48 }
 0x347   : > { %2071 = vst [vmem:[#allocation5 + $0xe8] sm:$0x3] %v3877_v48 }
 0x348 PF: > { %v2424_v11 = vld [vmem:[#allocation6 + $0x1f8] sm:$0xff]  ;;  %v2423_v12 = vld [vmem:[#allocation6 + $0x1f0] sm:$0xff]  ;;  %v2422_v23 = vld [vmem:[#allocation6 + $0x1e8] sm:$0xff]  ;;  %s3557_s23 = sshll.u32 %s3854_s27, 4  ;;  %s3551_s4 = sshll.u32 %s3858_s28, 5 }
 0x349   : > { %v2440_v25 = vld [vmem:[#allocation6 + $0x278] sm:$0xff]  ;;  %2457 = vmatpush.msra.mxu1 %v2424_v11  ;;  %v2439_v30 = vld [vmem:[#allocation6 + $0x270] sm:$0xff]  ;;  %v2438_v46 = vld [vmem:[#allocation6 + $0x268] sm:$0xff]  ;;  %s3352_s12 = sadd.s32 %s3557_s23, %s3551_s4  ;;  %s3355_s19 = sshll.u32 %s4018_s14, 4  ;;  %s3356_s19 = int_to_ptr.vmem [resolvable:$true] %s3355_s19 }
 0x34a   : > { %2522 = vmatpush.msra.mxu2 %v2440_v25  ;;  %v2456_v39 = vld [vmem:[#allocation6 + $0x2f8] sm:$0xff]  ;;  %v2455_v49 = vld [vmem:[#allocation6 + $0x2f0] sm:$0xff]  ;;  %v2454_v56 = vld [vmem:[#allocation6 + $0x2e8] sm:$0xff]  ;;  %s3552_s13 = sshll.u32 %s3352_s12, 3  ;;  %s6267_s17 = sand.u32 1, %s3846_s25  }
 0x34b   : > { %2587 = vmatpush.msrb.mxu3 %v2456_v39  ;;  %2458 = vmatpush.msra.mxu1 %v2423_v12  ;;  %v2421_v36 = vld [vmem:[#allocation6 + $0x1e0] sm:$0xff]  ;;  %v2420_v34 = vld [vmem:[#allocation6 + $0x1d8] sm:$0xff]  ;;  %v2419_v3 = vld [vmem:[#allocation6 + $0x1d0] sm:$0xff]  ;;  %s3354_s9 = scalar_lea.hbm %s6103_s7, %s3552_s13  ;;  %s3340_s18 = scalar_lea.sflag [#allocation8], %s6267_s17 }
 0x34c   : > { %2523 = vmatpush.msra.mxu2 %v2439_v30  ;;  %v2437_v44 = vld [vmem:[#allocation6 + $0x260] sm:$0xff]  ;;  %v2436_v58 = vld [vmem:[#allocation6 + $0x258] sm:$0xff]  ;;  %v2435_v50 = vld [vmem:[#allocation6 + $0x250] sm:$0xff]  ;;  %s3357_s20 = sshll.u32 %s3354_s9, 4  ;;  %s3790_s4 = scalar_lea.hbm %s6103_s7, 512  ;;  %s3358_s20 = int_to_ptr.hbm [resolvable:$true] %s3357_s20 }
 0x34d   : > { %2588 = vmatpush.msrb.mxu3 %v2455_v49  ;;  %2459 = vmatpush.msra.mxu1 %v2422_v23  ;;  %v2453_v24 = vld [vmem:[#allocation6 + $0x2e0] sm:$0xff]  ;;  %v2452_v10 = vld [vmem:[#allocation6 + $0x2d8] sm:$0xff]  ;;  %v2451_v0 = vld [vmem:[#allocation6 + $0x2d0] sm:$0xff]  ;;  %s3784_s11 = sshra.s32 %s3358_s20, 4  ;;  %s3785_s11 = int_to_ptr.hbm [resolvable:$true] %s3784_s11 }
 0x34e   : > { %2524 = vmatpush.msra.mxu2 %v2438_v46  ;;  %v2418_v54 = vld [vmem:[#allocation6 + $0x1c8] sm:$0xff]  ;;  %v2417_v40 = vld [vmem:[#allocation6 + $0x1c0] sm:$0xff]  ;;  %v2416_v45 = vld [vmem:[#allocation6 + $0x1b8] sm:$0xff]  ;;  %s3786_s22 = scalar_lea.hbm %s3785_s11, 128  ;;  %p3791_p9 = scmp.lt.s32.totalorder %s3785_s11, %s6103_s7 }
 0x34f   : > { %2589 = vmatpush.msrb.mxu3 %v2454_v56  ;;  %2460 = vmatpush.msra.mxu1 %v2421_v36  ;;  %v2434_v28 = vld [vmem:[#allocation6 + $0x248] sm:$0xff]  ;;  %v2433_v5 = vld [vmem:[#allocation6 + $0x240] sm:$0xff]  ;;  %v2432_v20 = vld [vmem:[#allocation6 + $0x238] sm:$0xff]  ;;  %p3787_p5 = scmp.ne.s32.totalorder %s3785_s11, %s3786_s22  ;;  %p3792_p10 = scmp.lt.s32.totalorder %s3790_s4, %s3786_s22 }
 0x350   : > { %2525 = vmatpush.msra.mxu2 %v2437_v44  ;;  %v2450_v16 = vld [vmem:[#allocation6 + $0x2c8] sm:$0xff]  ;;  %v2449_v6 = vld [vmem:[#allocation6 + $0x2c0] sm:$0xff]  ;;  %v2448_v7 = vld [vmem:[#allocation6 + $0x2b8] sm:$0xff] }
 0x351   : > { %2590 = vmatpush.msrb.mxu3 %v2453_v24  ;;  %2461 = vmatpush.msra.mxu1 %v2420_v34  ;;  %v5567_v53 = vld [vmem:[#allocation5 + $0x18] sm:$0xff]  ;;  %v2415_v31 = vld [vmem:[#allocation6 + $0x1b0] sm:$0xff]  ;;  %v2413_v55 = vld [vmem:[#allocation6 + $0x1a0] sm:$0xff]  ;;  %p3788_p6 = pnand %p3787_p5, %p3972_p3  ;;  %p3793_p11 = por %p3792_p10, %p3791_p9 }
 0x352   : > { %2526 = vmatpush.msra.mxu2 %v2436_v58  ;;  %v2431_v37 = vld [vmem:[#allocation6 + $0x230] sm:$0xff]  ;;  %v2414_v17 = vld [vmem:[#allocation6 + $0x1a8] sm:$0xff]  ;;  %v2429_v15 = vld [vmem:[#allocation6 + $0x220] sm:$0xff] }
 0x353   : > { %2591 = vmatpush.msrb.mxu3 %v2452_v10  ;;  %2462 = vmatpush.msra.mxu1 %v2419_v3  ;;  %v5569_v38 = vld [vmem:[#allocation5 + $0x19] sm:$0xff]  ;;  %v5575_v61 = vld [vmem:[#allocation5 + $0x21] sm:$0xff]  ;;  %v2445_v57 = vld [vmem:[#allocation6 + $0x2a0] sm:$0xff]  ;;  %p3789_p7 = pneg %p3788_p6 }
 0x354   : > { %2527 = vmatpush.msra.mxu2 %v2435_v50  ;;  %v2447_v51 = vld [vmem:[#allocation6 + $0x2b0] sm:$0xff]  ;;  %v2430_v35 = vld [vmem:[#allocation6 + $0x228] sm:$0xff]  ;;  %v5579_v29 = vld [vmem:[#allocation5 + $0x30] sm:$0xff] }
 0x355   : > { %2592 = vmatpush.msrb.mxu3 %v2451_v0  ;;  %2463 = vmatpush.msra.mxu1 %v2418_v54  ;;  %v5571_v43 = vld [vmem:[#allocation5 + $0x1a] sm:$0xff]  ;;  %v5577_v4 = vld [vmem:[#allocation5 + $0x22] sm:$0xff]  ;;  %2283 = vst [vmem:[#allocation4 + $0xa8] sm:$0xff] %v5579_v29  ;;  %v5582_v18 = vld [vmem:[#allocation5 + $0x31] sm:$0xff]  ;;  %p3794_p12 = pnand %p3793_p11, %p3789_p7 }
 0x356   : > { %2528 = vmatpush.msra.mxu2 %v2434_v28  ;;  %v5573_v32 = vld [vmem:[#allocation5 + $0x20] sm:$0xff]  ;;  %v2446_v9 = vld [vmem:[#allocation6 + $0x2a8] sm:$0xff]  ;;  %v2412_v42 = vld [vmem:[#allocation6 + $0x198] sm:$0xff]  ;;  %2315 = vst [vmem:[#allocation4 + $0x2d0] sm:$0xff] %v5582_v18 }
 0x357   : > { %2593 = vmatpush.msrb.mxu3 %v2450_v16  ;;  %2464 = vmatpush.msra.mxu1 %v2417_v40  ;;  %v2428_v63 = vld [vmem:[#allocation6 + $0x218] sm:$0xff]  ;;  %v5585_v13 = vld [vmem:[#allocation5 + $0x32] sm:$0xff]  ;;  %v2411_v14 = vld [vmem:[#allocation6 + $0x190] sm:$0xff]  ;;  %2864 = vst [vmem:[#allocation4 + $0x278] sm:$0xff] %v5579_v29 }
 0x358   : > { %2529 = vmatpush.msra.mxu2 %v2433_v5  ;;  %v2444_v8 = vld [vmem:[#allocation6 + $0x298] sm:$0xff]  ;;  %v2427_v21 = vld [vmem:[#allocation6 + $0x210] sm:$0xff]  ;;  %2347 = vst [vmem:[#allocation4 + $0x30] sm:$0xff] %v5585_v13  ;;  %v5588_v27 = vld [vmem:[#allocation5 + $0x38] sm:$0xff] }
 0x359   : > { %2594 = vmatpush.msrb.mxu3 %v2449_v6  ;;  %2465 = vmatpush.msra.mxu1 %v2416_v45  ;;  %v2443_v26 = vld [vmem:[#allocation6 + $0x290] sm:$0xff]  ;;  %2284 = vst [vmem:[#allocation4 + $0x2d8] sm:$0xff] %v5588_v27  ;;  %v2410_v41 = vld [vmem:[#allocation6 + $0x188] sm:$0xff]  ;;  %v5597_v1 = vld [vmem:[#allocation5 + $0x48] sm:$0xff] }
 0x35a   : > { %2530 = vmatpush.msra.mxu2 %v2432_v20  ;;  %v5591_v52 = vld [vmem:[#allocation5 + $0x39] sm:$0xff]  ;;  %v2409_v19 = vld [vmem:[#allocation6 + $0x180] sm:$0xff]  ;;  %2285 = vst [vmem:[#allocation4 + $0x90] sm:$0xff] %v5597_v1  ;;  %v2247_v59 = vld [vmem:[#allocation6 + $0xf8] sm:$0xff] }
 0x35b   : > { %2595 = vmatpush.msrb.mxu3 %v2448_v7  ;;  %2466 = vmatpush.msra.mxu1 %v2415_v31  ;;  %v2426_v33 = vld [vmem:[#allocation6 + $0x208] sm:$0xff]  ;;  %2316 = vst [vmem:[#allocation4 + $0x230] sm:$0xff] %v5591_v52  ;;  %v2425_v22 = vld [vmem:[#allocation6 + $0x200] sm:$0xff]  ;;  %v2231_v62 = vld [vmem:[#allocation6 + $0x78] sm:$0xff] }
 0x35c   : > { %2531 = vmatpush.msra.mxu2 %v2431_v37  ;;  %v5594_v47 = vld [vmem:[#allocation5 + $0x3a] sm:$0xff]  ;;  %v2441_v2 = vld [vmem:[#allocation6 + $0x280] sm:$0xff]  ;;  %2865 = vst [vmem:[#allocation4 + $0x3a0] sm:$0xff] %v5588_v27  ;;  %v2243_v56 = vld [vmem:[#allocation6 + $0xd8] sm:$0xff] }
 0x35d   : > { %2596 = vmatpush.msrb.mxu3 %v2447_v51  ;;  %2467 = vmatpush.msra.mxu1 %v2414_v17  ;;  %v2442_v60 = vld [vmem:[#allocation6 + $0x288] sm:$0xff]  ;;  %2348 = vst [vmem:[#allocation4 + $0x378] sm:$0xff] %v5594_v47  ;;  %v5601_v48 = vld [vmem:[#allocation5 + $0x49] sm:$0xff]  ;;  %v2246_v11 = vld [vmem:[#allocation6 + $0xf0] sm:$0xff] }
 0x35e   : > { %2532 = vmatpush.msra.mxu2 %v2430_v35  ;;  %2317 = vst [vmem:[#allocation4 + $0x3b0] sm:$0xff] %v5601_v48  ;;  %v5606_v25 = vld [vmem:[#allocation5 + $0x4a] sm:$0xff]  ;;  %v2230_v12 = vld [vmem:[#allocation6 + $0x70] sm:$0xff]  ;;  %v2245_v30 = vld [vmem:[#allocation6 + $0xe8] sm:$0xff] }
 0x35f   : > { %2597 = vmatpush.msrb.mxu3 %v2446_v9  ;;  %2468 = vmatpush.msra.mxu1 %v2413_v55  ;;  %2349 = vst [vmem:[#allocation4 + $0x318] sm:$0xff] %v5606_v25  ;;  %v5610_v39 = vld [vmem:[#allocation5 + $0x50] sm:$0xff]  ;;  %v2229_v23 = vld [vmem:[#allocation6 + $0x68] sm:$0xff]  ;;  %v2227_v44 = vld [vmem:[#allocation6 + $0x58] sm:$0xff] }
 0x360   : > { %2533 = vmatpush.msra.mxu2 %v2429_v15  ;;  %v2244_v46 = vld [vmem:[#allocation6 + $0xe0] sm:$0xff]  ;;  %2866 = vst [vmem:[#allocation4 + $0xb0] sm:$0xff] %v5597_v1  ;;  %v2242_v24 = vld [vmem:[#allocation6 + $0xd0] sm:$0xff]  ;;  %v2241_v50 = vld [vmem:[#allocation6 + $0xc8] sm:$0xff] }
 0x361   : > { %2598 = vmatpush.msrb.mxu3 %v2445_v57  ;;  %2469 = vmatpush.msra.mxu1 %v2412_v42  ;;  %v2228_v49 = vld [vmem:[#allocation6 + $0x60] sm:$0xff]  ;;  %2898 = vst [vmem:[#allocation4 + $0x178] sm:$0xff] %v5601_v48  ;;  %v2226_v58 = vld [vmem:[#allocation6 + $0x50] sm:$0xff]  ;;  %v2225_v54 = vld [vmem:[#allocation6 + $0x48] sm:$0xff] }
 0x362   : > { %2534 = vmatpush.msra.mxu2 %v2428_v63  ;;  %v5614_v36 = vld [vmem:[#allocation5 + $0x51] sm:$0xff]  ;;  %v5623_v10 = vld [vmem:[#allocation5 + $0x60] sm:$0xff]  ;;  %2867 = vst [vmem:[#allocation4 + $0x48] sm:$0xff] %v5610_v39  ;;  %v5636_v28 = vld [vmem:[#allocation5 + $0x68] sm:$0xff] }
 0x363   : > { %2599 = vmatpush.msrb.mxu3 %v2444_v8  ;;  %2470 = vmatpush.msra.mxu1 %v2411_v14  ;;  %2318 = vst [vmem:[#allocation4 + $0x70] sm:$0xff] %v5614_v36  ;;  %v5620_v34 = vld [vmem:[#allocation5 + $0x52] sm:$0xff]  ;;  %v5627_v3 = vld [vmem:[#allocation5 + $0x61] sm:$0xff]  ;;  %v5640_v16 = vld [vmem:[#allocation5 + $0x69] sm:$0xff] }
 0x364   : > { %2535 = vmatpush.msra.mxu2 %v2427_v21  ;;  %2899 = vst [vmem:[#allocation4 + $0x88] sm:$0xff] %v5614_v36  ;;  %v5633_v0 = vld [vmem:[#allocation5 + $0x62] sm:$0xff]  ;;  %v2240_v40 = vld [vmem:[#allocation6 + $0xc0] sm:$0xff]  ;;  %v5649_v45 = vld [vmem:[#allocation5 + $0x78] sm:$0xff] }
 0x365   : > { %2600 = vmatpush.msrb.mxu3 %v2443_v26  ;;  %2471 = vmatpush.msra.mxu1 %v2410_v41  ;;  %2868 = vst [vmem:[#allocation4 + $0xf0] sm:$0xff] %v5623_v10  ;;  %v5645_v5 = vld [vmem:[#allocation5 + $0x6a] sm:$0xff]  ;;  %v5653_v20 = vld [vmem:[#allocation5 + $0x79] sm:$0xff]  ;;  %v5666_v17 = vld [vmem:[#allocation5 + $0x81] sm:$0xff] }
 0x366   : > { %2536 = vmatpush.msra.mxu2 %v2426_v33  ;;  %2319 = vst [vmem:[#allocation4 + $0x198] sm:$0xff] %v5627_v3  ;;  %v2224_v6 = vld [vmem:[#allocation6 + $0x40] sm:$0xff]  ;;  %v2239_v7 = vld [vmem:[#allocation6 + $0xb8] sm:$0xff]  ;;  %v5658_v31 = vld [vmem:[#allocation5 + $0x7a] sm:$0xff] }
 0x367   : > { %2601 = vmatpush.msrb.mxu3 %v2442_v60  ;;  %2472 = vmatpush.msra.mxu1 %v2409_v19  ;;  %2900 = vst [vmem:[#allocation4 + $0x338] sm:$0xff] %v5627_v3  ;;  %v2223_v37 = vld [vmem:[#allocation6 + $0x38] sm:$0xff]  ;;  %v5662_v51 = vld [vmem:[#allocation5 + $0x80] sm:$0xff]  ;;  %v5675_v15 = vld [vmem:[#allocation5 + $0x90] sm:$0xff] }
 0x368   : > { %2537 = vmatpush.msra.mxu2 %v2425_v22  ;;  %2473 = vmatmul.f32.vlgmr.msra.gmra.mxu1 %v5567_v53  ;;  %2869 = vst [vmem:[#allocation4 + $0x2c8] sm:$0xff] %v5636_v28  ;;  %v2238_v35 = vld [vmem:[#allocation6 + $0xb0] sm:$0xff]  ;;  %v5679_v57 = vld [vmem:[#allocation5 + $0x91] sm:$0xff]  ;;  %v5701_v60 = vld [vmem:[#allocation5 + $0xa8] sm:$0xff] }
 0x369   : > { %2538 = vmatmul.f32.vlgmr.msra.gmra.mxu2 %v5569_v38  ;;  %2602 = vmatpush.msrb.mxu3 %v2441_v2  ;;  %2320 = vst [vmem:[#allocation4 + $0x78] sm:$0xff] %v5640_v16  ;;  %v5671_v55 = vld [vmem:[#allocation5 + $0x82] sm:$0xff]  ;;  %v2237_v42 = vld [vmem:[#allocation6 + $0xa8] sm:$0xff]  ;;  %v2236_v26 = vld [vmem:[#allocation6 + $0xa0] sm:$0xff] }
 0x36a   : > { %2717 = vmatpush.msrb.mxu2 %v2247_v59  ;;  %2603 = vmatmul.f32.vlgmr.msrb.gmra.mxu3 %v5571_v43  ;;  %2352 = vst [vmem:[#allocation4 + $0x288] sm:$0xff] %v5645_v5  ;;  %v2222_v9 = vld [vmem:[#allocation6 + $0x30] sm:$0xff]  ;;  %v5684_v63 = vld [vmem:[#allocation5 + $0x92] sm:$0xff]  ;;  %v5706_v19 = vld [vmem:[#allocation5 + $0xa9] sm:$0xff] }
 0x36b   : > { %2652 = vmatpush.msrb.mxu1 %v2231_v62  ;;  %2901 = vst [vmem:[#allocation4 + $0x200] sm:$0xff] %v5640_v16  ;;  %v2221_v8 = vld [vmem:[#allocation6 + $0x28] sm:$0xff]  ;;  %v2220_v33 = vld [vmem:[#allocation6 + $0x20] sm:$0xff]  ;;  %v2235_v22 = vld [vmem:[#allocation6 + $0x98] sm:$0xff] }
 0x36c   : > { %2718 = vmatpush.msrb.mxu2 %v2246_v11  ;;  %2870 = vst [vmem:[#allocation4 + $0x220] sm:$0xff] %v5649_v45  ;;  %v5688_v14 = vld [vmem:[#allocation5 + $0x98] sm:$0xff]  ;;  %v5711_v59 = vld [vmem:[#allocation5 + $0xaa] sm:$0xff]  ;;  %v2262_v11 = vld [vmem:[#allocation6 + $0x170] sm:$0xff] }
 0x36d   : > { %2653 = vmatpush.msrb.mxu1 %v2230_v12  ;;  %2321 = vst [vmem:[#allocation4 + $0x188] sm:$0xff] %v5653_v20  ;;  %v5692_v21 = vld [vmem:[#allocation5 + $0x99] sm:$0xff]  ;;  %v2263_v2 = vld [vmem:[#allocation6 + $0x178] sm:$0xff]  ;;  %v5716_v12 = vld [vmem:[#allocation5 + $0xb0] sm:$0xff] }
 0x36e   : > { %2719 = vmatpush.msrb.mxu2 %v2245_v30  ;;  %2353 = vst [vmem:[#allocation4 + $0x118] sm:$0xff] %v5658_v31  ;;  %v5697_v41 = vld [vmem:[#allocation5 + $0x9a] sm:$0xff]  ;;  %v2219_v62 = vld [vmem:[#allocation6 + $0x18] sm:$0xff]  ;;  %2782 = vmatpush.msra.mxu3 %v2263_v2  ;;  %v2252_v2 = vld [vmem:[#allocation6 + $0x120] sm:$0xff] }
 0x36f   : > { %2654 = vmatpush.msrb.mxu1 %v2229_v23  ;;  %2902 = vst [vmem:[#allocation4 + $0x2b0] sm:$0xff] %v5653_v20  ;;  %v2261_v30 = vld [vmem:[#allocation6 + $0x168] sm:$0xff] }
 0x370   : > { %2720 = vmatpush.msrb.mxu2 %v2244_v46  ;;  %2476 = vmatmul.f32.gmra.mxu1 %v5573_v32  ;;  %2871 = vst [vmem:[#allocation4 + $0xd8] sm:$0xff] %v5662_v51  ;;  %v5720_v23 = vld [vmem:[#allocation5 + $0xb1] sm:$0xff]  ;;  %v2234_v46 = vld [vmem:[#allocation6 + $0x90] sm:$0xff] }
 0x371   : > { %2541 = vmatmul.f32.gmra.mxu2 %v5575_v61  ;;  %2655 = vmatpush.msrb.mxu1 %v2228_v49  ;;  %2322 = vst [vmem:[#allocation4 + $0x10] sm:$0xff] %v5666_v17  ;;  %v2260_v49 = vld [vmem:[#allocation6 + $0x160] sm:$0xff] }
 0x372   : > { %2721 = vmatpush.msrb.mxu2 %v2243_v56  ;;  %2606 = vmatmul.f32.gmra.mxu3 %v5577_v4  ;;  %2354 = vst [vmem:[#allocation4 + $0x260] sm:$0xff] %v5671_v55  ;;  %v5725_v56 = vld [vmem:[#allocation5 + $0xb2] sm:$0xff] }
 0x373   : > { %2656 = vmatpush.msrb.mxu1 %v2227_v44  ;;  %2903 = vst [vmem:[#allocation4 + $0x1b8] sm:$0xff] %v5666_v17  ;;  %2783 = vmatpush.msra.mxu3 %v2262_v11  ;;  %v2259_v44 = vld [vmem:[#allocation6 + $0x158] sm:$0xff] }
 0x374   : > { %2722 = vmatpush.msrb.mxu2 %v2242_v24  ;;  %2872 = vst [vmem:[#allocation4 + $0x310] sm:$0xff] %v5675_v15  ;;  %v2218_v24 = vld [vmem:[#allocation6 + $0x10] sm:$0xff]  ;;  %v2251_v11 = vld [vmem:[#allocation6 + $0x118] sm:$0xff] }
 0x375   : > { %2657 = vmatpush.msrb.mxu1 %v2226_v58  ;;  %2323 = vst [vmem:[#allocation4 + $0x138] sm:$0xff] %v5679_v57  ;;  %2784 = vmatpush.msra.mxu3 %v2261_v30  ;;  %v2258_v58 = vld [vmem:[#allocation6 + $0x150] sm:$0xff]  ;;  %v2216_v30 = vld [vmem:[#allocation6] sm:$0xff] }
 0x376   : > { %2723 = vmatpush.msrb.mxu2 %v2241_v50  ;;  %2355 = vst [vmem:[#allocation4 + $0x80] sm:$0xff] %v5684_v63  ;;  %v5730_v50 = vld [vmem:[#allocation5 + $0xc0] sm:$0xff] }
 0x377   : > { %2658 = vmatpush.msrb.mxu1 %v2225_v54  ;;  %2904 = vst [vmem:[#allocation4 + $0x160] sm:$0xff] %v5679_v57  ;;  %2785 = vmatpush.msra.mxu3 %v2260_v49  ;;  %v2257_v54 = vld [vmem:[#allocation6 + $0x148] sm:$0xff] }
 0x378   : > { %2479 = vmatmul.f32.gmra.mxu1 %v5579_v29  ;;  %2724 = vmatpush.msrb.mxu2 %v2240_v40  ;;  %2873 = vst [vmem:[#allocation4 + $0x158] sm:$0xff] %v5688_v14  ;;  %v5735_v40 = vld [vmem:[#allocation5 + $0xc1] sm:$0xff]  ;;  %v2249_v49 = vld [vmem:[#allocation6 + $0x108] sm:$0xff] }
 0x379   : > { %2544 = vmatmul.f32.gmra.mxu2 %v5582_v18  ;;  %2659 = vmatpush.msrb.mxu1 %v2224_v6  ;;  %2324 = vst [vmem:[#allocation4 + $0x98] sm:$0xff] %v5692_v21  ;;  %v2233_v6 = vld [vmem:[#allocation6 + $0x88] sm:$0xff] }
 0x37a   : > { %2609 = vmatmul.f32.gmra.mxu3 %v5585_v13  ;;  %2725 = vmatpush.msrb.mxu2 %v2239_v7  ;;  %2356 = vst [vmem:[#allocation4 + $0x3b8] sm:$0xff] %v5697_v41  ;;  %v2256_v7 = vld [vmem:[#allocation6 + $0x140] sm:$0xff] }
 0x37b   : > { %2660 = vmatpush.msrb.mxu1 %v2223_v37  ;;  %2905 = vst [vmem:[#allocation4 + $0x390] sm:$0xff] %v5692_v21  ;;  %2786 = vmatpush.msra.mxu3 %v2259_v44  ;;  %v5740_v37 = vld [vmem:[#allocation5 + $0xc2] sm:$0xff] }
 0x37c   : > { %2726 = vmatpush.msrb.mxu2 %v2238_v35  ;;  %2937 = vst [vmem:[#allocation4 + $0x2a8] sm:$0xff] %v5697_v41  ;;  %v2255_v35 = vld [vmem:[#allocation6 + $0x138] sm:$0xff] }
 0x37d   : > { %2661 = vmatpush.msrb.mxu1 %v2222_v9  ;;  %2874 = vst [vmem:[#allocation4 + $0x170] sm:$0xff] %v5701_v60  ;;  %2787 = vmatpush.msra.mxu3 %v2258_v58  ;;  %v2217_v9 = vld [vmem:[#allocation6 + $0x8] sm:$0xff]  ;;  %v3039_v44 = vld [vmem:[#allocation6 + $0x478] sm:$0xff] }
 0x37e   : > { %2727 = vmatpush.msrb.mxu2 %v2237_v42  ;;  %2325 = vst [vmem:[#allocation4 + $0xd0] sm:$0xff] %v5706_v19  ;;  %v2254_v42 = vld [vmem:[#allocation6 + $0x130] sm:$0xff]  ;;  %v3023_v58 = vld [vmem:[#allocation6 + $0x3f8] sm:$0xff] }
 0x37f   : > { %2662 = vmatpush.msrb.mxu1 %v2221_v8  ;;  %2357 = vst [vmem:[#allocation4 + $0x300] sm:$0xff] %v5711_v59  ;;  %2788 = vmatpush.msra.mxu3 %v2257_v54  ;;  %v5745_v8 = vld [vmem:[#allocation5 + $0xc8] sm:$0xff]  ;;  %v3038_v54 = vld [vmem:[#allocation6 + $0x470] sm:$0xff] }
 0x380   : > { %2482 = vmatmul.f32.gmra.mxu1 %v5588_v27  ;;  %2728 = vmatpush.msrb.mxu2 %v2236_v26  ;;  %2906 = vst [vmem:[#allocation4 + $0xf8] sm:$0xff] %v5706_v19  ;;  %v2253_v26 = vld [vmem:[#allocation6 + $0x128] sm:$0xff] }
 0x381   : > { %2547 = vmatmul.f32.gmra.mxu2 %v5591_v52  ;;  %2663 = vmatpush.msrb.mxu1 %v2220_v33  ;;  %2938 = vst [vmem:[#allocation4 + $0x208] sm:$0xff] %v5711_v59  ;;  %v5749_v33 = vld [vmem:[#allocation5 + $0xc9] sm:$0xff] }
 0x382   : > { %2612 = vmatmul.f32.gmra.mxu3 %v5594_v47  ;;  %2729 = vmatpush.msrb.mxu2 %v2235_v22  ;;  %2875 = vst [vmem:[#allocation4 + $0x1c8] sm:$0xff] %v5716_v12  ;;  %v2232_v22 = vld [vmem:[#allocation6 + $0x80] sm:$0xff] }
 0x383   : > { %2664 = vmatpush.msrb.mxu1 %v2219_v62  ;;  %2326 = vst [vmem:[#allocation4 + $0x2f8] sm:$0xff] %v5720_v23  ;;  %2789 = vmatpush.msra.mxu3 %v2256_v7  ;;  %v5754_v62 = vld [vmem:[#allocation5 + $0xca] sm:$0xff]  ;;  %v3037_v7 = vld [vmem:[#allocation6 + $0x468] sm:$0xff] }
 0x384   : > { %2730 = vmatpush.msrb.mxu2 %v2234_v46  ;;  %2358 = vst [vmem:[#allocation4 + $0xb8] sm:$0xff] %v5725_v56  ;;  %v2250_v46 = vld [vmem:[#allocation6 + $0x110] sm:$0xff] }
 0x385   : > { %2907 = vst [vmem:[#allocation4 + $0x18] sm:$0xff] %v5720_v23  ;;  %2665 = vmatpush.msrb.mxu1 %v2218_v24  ;;  %2790 = vmatpush.msra.mxu3 %v2255_v35  ;;  %v2248_v24 = vld [vmem:[#allocation6 + $0x100] sm:$0xff]  ;;  %v3021_v35 = vld [vmem:[#allocation6 + $0x3e8] sm:$0xff] }
 0x386   : > { %2939 = vst [vmem:[#allocation4 + $0x2e8] sm:$0xff] %v5725_v56  ;;  %2731 = vmatpush.msrb.mxu2 %v2233_v6  ;;  %v3022_v6 = vld [vmem:[#allocation6 + $0x3f0] sm:$0xff] }
 0x387   : > { %2295 = vst [vmem:[#allocation4 + $0x50] sm:$0xff] %v5730_v50  ;;  %2666 = vmatpush.msrb.mxu1 %v2217_v9  ;;  %2791 = vmatpush.msra.mxu3 %v2254_v42  ;;  %v3036_v9 = vld [vmem:[#allocation6 + $0x460] sm:$0xff] }
 0x388   : > { %2485 = vmatmul.f32.gmra.mxu1 %v5597_v1  ;;  %2876 = vst [vmem:[#allocation4 + $0x1f0] sm:$0xff] %v5730_v50  ;;  %2732 = vmatpush.msrb.mxu2 %v2232_v22  ;;  %v3020_v42 = vld [vmem:[#allocation6 + $0x3e0] sm:$0xff]  ;;  %v2072_v22 = vld [vmem:[#allocation5] sm:$0xff] }
 0x389   : > { %2550 = vmatmul.f32.gmra.mxu2 %v5601_v48  ;;  %2327 = vst [vmem:[#allocation4 + $0x348] sm:$0xff] %v5735_v40  ;;  %2792 = vmatpush.msra.mxu3 %v2253_v26 }
 0x38a   : > { %2615 = vmatmul.f32.gmra.mxu3 %v5606_v25  ;;  %2359 = vst [vmem:[#allocation4 + $0x38] sm:$0xff] %v5740_v37  ;;  %2667 = vmatpush.msrb.mxu1 %v2216_v30  ;;  %v3035_v30 = vld [vmem:[#allocation6 + $0x458] sm:$0xff] }
 0x38b   : > { %2908 = vst [vmem:[#allocation4 + $0x28] sm:$0xff] %v5735_v40  ;;  %2793 = vmatpush.msra.mxu3 %v2252_v2  ;;  %3170 = vmatpush.msra.mxu2 %v3039_v44  ;;  %v2104_v2 = vld [vmem:[#allocation5 + $0x1] sm:$0xff] }
 0x38c   : > { %2940 = vst [vmem:[#allocation4 + $0x168] sm:$0xff] %v5740_v37  ;;  %3105 = vmatpush.msra.mxu1 %v3023_v58  ;;  %v3019_v44 = vld [vmem:[#allocation6 + $0x3d8] sm:$0xff] }
 0x38d   : > { %2877 = vst [vmem:[#allocation4 + $0x40] sm:$0xff] %v5745_v8  ;;  %2794 = vmatpush.msra.mxu3 %v2251_v11  ;;  %3171 = vmatpush.msra.mxu2 %v3038_v54  ;;  %v2136_v11 = vld [vmem:[#allocation5 + $0x2] sm:$0xff] }
 0x38e   : > { %2328 = vst [vmem:[#allocation4 + $0x2a0] sm:$0xff] %v5749_v33  ;;  %3106 = vmatpush.msra.mxu1 %v3022_v6  ;;  %v2073_v54 = vld [vmem:[#allocation5 + $0x8] sm:$0xff] }
 0x38f   : > { %2360 = vst [vmem:[#allocation4 + $0x358] sm:$0xff] %v5754_v62  ;;  %2795 = vmatpush.msra.mxu3 %v2250_v46  ;;  %3172 = vmatpush.msra.mxu2 %v3037_v7  ;;  %v2105_v6 = vld [vmem:[#allocation5 + $0x9] sm:$0xff] }
 0x390   : > { %2488 = vmatmul.f32.gmra.mxu1 %v5610_v39  ;;  %2909 = vst [vmem:[#allocation4 + $0x240] sm:$0xff] %v5749_v33 }
 0x391   : > { %2553 = vmatmul.f32.gmra.mxu2 %v5614_v36  ;;  %2941 = vst [vmem:[#allocation4 + $0x58] sm:$0xff] %v5754_v62  ;;  %2796 = vmatpush.msra.mxu3 %v2249_v49 }
 0x392   : > { %2618 = vmatmul.f32.gmra.mxu3 %v5620_v34  ;;  %3107 = vmatpush.msra.mxu1 %v3021_v35  ;;  %v2137_v35 = vld [vmem:[#allocation5 + $0xa] sm:$0xff] }
 0x393   : > { %2797 = vmatpush.msra.mxu3 %v2248_v24  ;;  %3173 = vmatpush.msra.mxu2 %v3036_v9  ;;  %v3034_v9 = vld [vmem:[#allocation6 + $0x450] sm:$0xff] }
 0x394   : > { %3108 = vmatpush.msra.mxu1 %v3020_v42 }
 0x395   : > { %3174 = vmatpush.msra.mxu2 %v3035_v30 }
 0x396   : > { %3109 = vmatpush.msra.mxu1 %v3019_v44 }
 0x397   : > { %3175 = vmatpush.msra.mxu2 %v3034_v9  ;;  %v3016_v9 = vld [vmem:[#allocation6 + $0x3c0] sm:$0xff] }
 0x398   : > { %2491 = vmatmul.f32.gmra.mxu1 %v5623_v10 }
 0x399   : > { %2556 = vmatmul.f32.gmra.mxu2 %v5627_v3 }
 0x39a   : > { %2621 = vmatmul.f32.gmra.mxu3 %v5633_v0 }
 0x3a0   : > { %2494 = vmatmul.f32.gmra.mxu1 %v5636_v28 }
 0x3a1   : > { %2559 = vmatmul.f32.gmra.mxu2 %v5640_v16 }
 0x3a2   : > { %2624 = vmatmul.f32.gmra.mxu3 %v5645_v5 }
 0x3a8   : > { %2497 = vmatmul.f32.gmra.mxu1 %v5649_v45 }
 0x3a9   : > { %2562 = vmatmul.f32.gmra.mxu2 %v5653_v20 }
 0x3aa   : > { %2627 = vmatmul.f32.gmra.mxu3 %v5658_v31 }
 0x3b0   : > { %2500 = vmatmul.f32.gmra.mxu1 %v5662_v51 }
 0x3b1   : > { %2565 = vmatmul.f32.gmra.mxu2 %v5666_v17 }
 0x3b2   : > { %2630 = vmatmul.f32.gmra.mxu3 %v5671_v55 }
 0x3b8   : > { %2503 = vmatmul.f32.gmra.mxu1 %v5675_v15 }
 0x3b9   : > { %2568 = vmatmul.f32.gmra.mxu2 %v5679_v57 }
 0x3ba   : > { %2633 = vmatmul.f32.gmra.mxu3 %v5684_v63 }
 0x3c0   : > { %2506 = vmatmul.f32.gmra.mxu1 %v5688_v14 }
 0x3c1   : > { %2571 = vmatmul.f32.gmra.mxu2 %v5692_v21 }
 0x3c2   : > { %2636 = vmatmul.f32.gmra.mxu3 %v5697_v41 }
 0x3c8   : > { %2509 = vmatmul.f32.gmra.mxu1 %v5701_v60 }
 0x3c9   : > { %2574 = vmatmul.f32.gmra.mxu2 %v5706_v19 }
 0x3ca   : > { %2639 = vmatmul.f32.gmra.mxu3 %v5711_v59 }
 0x3d0   : > { %2512 = vmatmul.f32.gmra.mxu1 %v5716_v12 }
 0x3d1   : > { %2577 = vmatmul.f32.gmra.mxu2 %v5720_v23 }
 0x3d2   : > { %2642 = vmatmul.f32.gmra.mxu3 %v5725_v56 }
 0x3d8   : > { %2515 = vmatmul.f32.gmra.mxu1 %v5730_v50 }
 0x3d9   : > { %2580 = vmatmul.f32.gmra.mxu2 %v5735_v40 }
 0x3da   : > { %2645 = vmatmul.f32.gmra.mxu3 %v5740_v37 }
 0x3e0   : > { %2518 = vmatmul.f32.gmra.mxu1 %v5745_v8 }
 0x3e1   : > { %2583 = vmatmul.f32.gmra.mxu2 %v5749_v33 }
 0x3e2   : > { %2648 = vmatmul.f32.gmra.mxu3 %v5754_v62 }
 0x3e5   : > { %v2474_v26 = vpop.f32.mrf.mxu1 }
 0x3e8   : > { %2668 = vmatmul.f32.vlgmr.msrb.gmra.mxu1 %v2072_v22 }
 0x3e9   : > { %2733 = vmatmul.f32.vlgmr.msrb.gmra.mxu2 %v2104_v2  ;;  %v3018_v2 = vld [vmem:[#allocation6 + $0x3d0] sm:$0xff] }
 0x3ea   : > { %2798 = vmatmul.f32.vlgmr.msra.gmra.mxu3 %v2136_v11  ;;  %3110 = vmatpush.msra.mxu1 %v3018_v2  ;;  %v3031_v2 = vld [vmem:[#allocation6 + $0x438] sm:$0xff] }
 0x3ec   : > { %v2539_v46 = vpop.f32.mrf.mxu2 }
 0x3ed   : > { %v2540_v49 = vadd.f32 %v2539_v46, %v2474_v26  ;;  %v2477_v24 = vpop.f32.mrf.mxu1  ;;  %v2604_v58 = vpop.f32.mrf.mxu3  ;;  %v3033_v46 = vld [vmem:[#allocation6 + $0x448] sm:$0xff] }
 0x3ee   : > { %3176 = vmatpush.msra.mxu2 %v3033_v46 }
 0x3ef   : > { %v5772_v7 = vadd.f32 %v2604_v58, %v2540_v49  ;;  %v3017_v58 = vld [vmem:[#allocation6 + $0x3c8] sm:$0xff] }
 0x3f0   : > { %2671 = vmatmul.f32.gmra.mxu1 %v2073_v54 }
 0x3f1   : > { %2736 = vmatmul.f32.gmra.mxu2 %v2105_v6  ;;  %3111 = vmatpush.msra.mxu1 %v3017_v58 }
 0x3f2   : > { %2801 = vmatmul.f32.gmra.mxu3 %v2137_v35  ;;  %v3032_v35 = vld [vmem:[#allocation6 + $0x440] sm:$0xff] }
 0x3f3   : > { %3177 = vmatpush.msra.mxu2 %v3032_v35  ;;  %3112 = vmatpush.msra.mxu1 %v3016_v9  ;;  %v3013_v35 = vld [vmem:[#allocation6 + $0x3a8] sm:$0xff]  ;;  %v3028_v9 = vld [vmem:[#allocation6 + $0x420] sm:$0xff] }
 0x3f4   : > { %v2542_v42 = vpop.f32.mrf.mxu2 }
 0x3f5   : > { %v2543_v22 = vadd.f32 %v2542_v42, %v2477_v24  ;;  %v2480_v11 = vpop.f32.mrf.mxu1  ;;  %v2607_v30 = vpop.f32.mrf.mxu3  ;;  %3178 = vmatpush.msra.mxu2 %v3031_v2 }
 0x3f7   : > { %v5774_v26 = vadd.f32 %v2607_v30, %v2543_v22 }
 0x3f8   : > { %2674 = vmatmul.f32.gmra.mxu1 %v5567_v53 }
 0x3f9   : > { %2739 = vmatmul.f32.gmra.mxu2 %v5569_v38 }
 0x3fa   : > { %2804 = vmatmul.f32.gmra.mxu3 %v5571_v43 }
 0x3fc   : > { %v2545_v49 = vpop.f32.mrf.mxu2 }
 0x3fd   : > { %v2546_v44 = vadd.f32 %v2545_v49, %v2480_v11  ;;  %v2483_v54 = vpop.f32.mrf.mxu1  ;;  %v2610_v6 = vpop.f32.mrf.mxu3  ;;  %v3015_v11 = vld [vmem:[#allocation6 + $0x3b8] sm:$0xff]  ;;  %v3030_v49 = vld [vmem:[#allocation6 + $0x430] sm:$0xff] }
 0x3fe   : > { %3113 = vmatpush.msra.mxu1 %v3015_v11  ;;  %3179 = vmatpush.msra.mxu2 %v3030_v49 }
 0x3ff   : > { %v5779_v24 = vadd.f32 %v2610_v6, %v2546_v44  ;;  %v3014_v44 = vld [vmem:[#allocation6 + $0x3b0] sm:$0xff]  ;;  %v3029_v6 = vld [vmem:[#allocation6 + $0x428] sm:$0xff] }
 0x400   : > { %2677 = vmatmul.f32.gmra.mxu1 %v5573_v32  ;;  %3180 = vmatpush.msra.mxu2 %v3029_v6  ;;  %v3004_v6 = vld [vmem:[#allocation6 + $0x360] sm:$0xff] }
 0x401   : > { %2742 = vmatmul.f32.gmra.mxu2 %v5575_v61  ;;  %3114 = vmatpush.msra.mxu1 %v3014_v44  ;;  %v3006_v44 = vld [vmem:[#allocation6 + $0x370] sm:$0xff] }
 0x402   : > { %2807 = vmatmul.f32.gmra.mxu3 %v5577_v4  ;;  %3181 = vmatpush.msra.mxu2 %v3028_v9 }
 0x403   : > { %3115 = vmatpush.msra.mxu1 %v3013_v35  ;;  %v3010_v35 = vld [vmem:[#allocation6 + $0x390] sm:$0xff] }
 0x404   : > { %v2548_v53 = vpop.f32.mrf.mxu2 }
 0x405   : > { %v2549_v38 = vadd.f32 %v2548_v53, %v2483_v54  ;;  %v2486_v43 = vpop.f32.mrf.mxu1  ;;  %v2613_v42 = vpop.f32.mrf.mxu3 }
 0x407   : > { %v5784_v22 = vadd.f32 %v2613_v42, %v2549_v38 }
 0x408   : > { %2680 = vmatmul.f32.gmra.mxu1 %v5579_v29 }
 0x409   : > { %2745 = vmatmul.f32.gmra.mxu2 %v5582_v18 }
 0x40a   : > { %2810 = vmatmul.f32.gmra.mxu3 %v5585_v13 }
 0x40c   : > { %v2551_v32 = vpop.f32.mrf.mxu2 }
 0x40d   : > { %v2552_v61 = vadd.f32 %v2551_v32, %v2486_v43  ;;  %v2489_v4 = vpop.f32.mrf.mxu1  ;;  %v2616_v30 = vpop.f32.mrf.mxu3  ;;  %v3012_v43 = vld [vmem:[#allocation6 + $0x3a0] sm:$0xff]  ;;  %v3027_v32 = vld [vmem:[#allocation6 + $0x418] sm:$0xff] }
 0x40e   : > { %3116 = vmatpush.msra.mxu1 %v3012_v43  ;;  %3182 = vmatpush.msra.mxu2 %v3027_v32  ;;  %v5818_v43 = vld [vmem:[#allocation5 + $0xd8] sm:$0xff] }
 0x40f   : > { %v5789_v46 = vadd.f32 %v2616_v30, %v2552_v61  ;;  %v3007_v30 = vld [vmem:[#allocation6 + $0x378] sm:$0xff]  ;;  %2878 = vst [vmem:[#allocation4 + $0x140] sm:$0xff] %v5818_v43  ;;  %v3001_v32 = vld [vmem:[#allocation6 + $0x348] sm:$0xff] }
 0x410   : > { %2683 = vmatmul.f32.gmra.mxu1 %v5588_v27  ;;  %3040 = vmatpush.msra.mxu0 %v3007_v30 }
 0x411   : > { %2748 = vmatmul.f32.gmra.mxu2 %v5591_v52  ;;  %3590 = vmatpush.msrb.mxu3 %v3007_v30 }
 0x412   : > { %2813 = vmatmul.f32.gmra.mxu3 %v5594_v47  ;;  %3041 = vmatpush.msra.mxu0 %v3006_v44 }
 0x413   : > { %3591 = vmatpush.msrb.mxu3 %v3006_v44 }
 0x414   : > { %v2554_v29 = vpop.f32.mrf.mxu2 }
 0x415   : > { %v2555_v18 = vadd.f32 %v2554_v29, %v2489_v4  ;;  %v2492_v13 = vpop.f32.mrf.mxu1  ;;  %v2619_v58 = vpop.f32.mrf.mxu3  ;;  %v3011_v4 = vld [vmem:[#allocation6 + $0x398] sm:$0xff] }
 0x416   : > { %3117 = vmatpush.msra.mxu1 %v3011_v4 }
 0x417   : > { %v5794_v54 = vadd.f32 %v2619_v58, %v2555_v18  ;;  %v3005_v58 = vld [vmem:[#allocation6 + $0x368] sm:$0xff] }
 0x418   : > { %2686 = vmatmul.f32.gmra.mxu1 %v5597_v1  ;;  %3042 = vmatpush.msra.mxu0 %v3005_v58 }
 0x419   : > { %2751 = vmatmul.f32.gmra.mxu2 %v5601_v48  ;;  %3118 = vmatpush.msra.mxu1 %v3010_v35  ;;  %v5835_v35 = vld [vmem:[#allocation5 + $0xe1] sm:$0xff] }
 0x41a   : > { %2816 = vmatmul.f32.gmra.mxu3 %v5606_v25  ;;  %3043 = vmatpush.msra.mxu0 %v3004_v6  ;;  %6247 = vst [vmem:[#allocation46_spill] sm:$0xff] %v5835_v35 }
 0x41b   : > { %3592 = vmatpush.msrb.mxu3 %v3005_v58  ;;  %2911 = vst [vmem:[#allocation4 + $0x3a8] sm:$0xff] %v5835_v35  ;;  %v2993_v35 = vld [vmem:[#allocation6 + $0x308] sm:$0xff] }
 0x41c   : > { %v2557_v27 = vpop.f32.mrf.mxu2 }
 0x41d   : > { %v2558_v52 = vadd.f32 %v2557_v27, %v2492_v13  ;;  %v2495_v47 = vpop.f32.mrf.mxu1  ;;  %v2622_v53 = vpop.f32.mrf.mxu3  ;;  %v3026_v13 = vld [vmem:[#allocation6 + $0x410] sm:$0xff]  ;;  %3593 = vmatpush.msrb.mxu3 %v3004_v6 }
 0x41e   : > { %3183 = vmatpush.msra.mxu2 %v3026_v13  ;;  %v2998_v6 = vld [vmem:[#allocation6 + $0x330] sm:$0xff] }
 0x41f   : > { %v5799_v38 = vadd.f32 %v2622_v53, %v2558_v52 }
 0x420   : > { %2689 = vmatmul.f32.gmra.mxu1 %v5610_v39 }
 0x421   : > { %2754 = vmatmul.f32.gmra.mxu2 %v5614_v36 }
 0x422   : > { %2819 = vmatmul.f32.gmra.mxu3 %v5620_v34 }
 0x424   : > { %v2560_v1 = vpop.f32.mrf.mxu2 }
 0x425   : > { %v2561_v48 = vadd.f32 %v2560_v1, %v2495_v47  ;;  %v2498_v25 = vpop.f32.mrf.mxu1  ;;  %v2625_v42 = vpop.f32.mrf.mxu3  ;;  %v3003_v47 = vld [vmem:[#allocation6 + $0x358] sm:$0xff] }
 0x426   : > { %3044 = vmatpush.msra.mxu0 %v3003_v47  ;;  %3594 = vmatpush.msrb.mxu3 %v3003_v47  ;;  %v2997_v47 = vld [vmem:[#allocation6 + $0x328] sm:$0xff] }
 0x427   : > { %v5804_v2 = vadd.f32 %v2625_v42, %v2561_v48  ;;  %v3002_v48 = vld [vmem:[#allocation6 + $0x350] sm:$0xff] }
 0x428   : > { %2692 = vmatmul.f32.gmra.mxu1 %v5623_v10  ;;  %3045 = vmatpush.msra.mxu0 %v3002_v48  ;;  %v5821_v42 = vld [vmem:[#allocation5 + $0xd9] sm:$0xff] }
 0x429   : > { %2757 = vmatmul.f32.gmra.mxu2 %v5627_v3  ;;  %2910 = vst [vmem:[#allocation4 + $0x340] sm:$0xff] %v5821_v42  ;;  %3595 = vmatpush.msrb.mxu3 %v3002_v48 }
 0x42a   : > { %2822 = vmatmul.f32.gmra.mxu3 %v5633_v0  ;;  %3046 = vmatpush.msra.mxu0 %v3001_v32 }
 0x42b   : > { %3596 = vmatpush.msrb.mxu3 %v3001_v32  ;;  %v3008_v32 = vld [vmem:[#allocation6 + $0x380] sm:$0xff] }
 0x42c   : > { %v2563_v61 = vpop.f32.mrf.mxu2 }
 0x42d   : > { %v2564_v11 = vadd.f32 %v2563_v61, %v2498_v25  ;;  %v2501_v49 = vpop.f32.mrf.mxu1  ;;  %v2628_v29 = vpop.f32.mrf.mxu3  ;;  %v3025_v25 = vld [vmem:[#allocation6 + $0x408] sm:$0xff] }
 0x42e   : > { %3184 = vmatpush.msra.mxu2 %v3025_v25  ;;  %v5825_v61 = vld [vmem:[#allocation5 + $0xda] sm:$0xff] }
 0x42f   : > { %v5809_v18 = vadd.f32 %v2628_v29, %v2564_v11  ;;  %v3000_v11 = vld [vmem:[#allocation6 + $0x340] sm:$0xff]  ;;  %2942 = vst [vmem:[#allocation4 + $0x20] sm:$0xff] %v5825_v61  ;;  %v2999_v29 = vld [vmem:[#allocation6 + $0x338] sm:$0xff] }
 0x430   : > { %2695 = vmatmul.f32.gmra.mxu1 %v5636_v28  ;;  %3047 = vmatpush.msra.mxu0 %v3000_v11 }
 0x431   : > { %2760 = vmatmul.f32.gmra.mxu2 %v5640_v16  ;;  %3597 = vmatpush.msrb.mxu3 %v3000_v11  ;;  %v2992_v11 = vld [vmem:[#allocation6 + $0x300] sm:$0xff] }
 0x432   : > { %2825 = vmatmul.f32.gmra.mxu3 %v5645_v5  ;;  %3048 = vmatpush.msra.mxu0 %v2999_v29 }
 0x433   : > { %3598 = vmatpush.msrb.mxu3 %v2999_v29 }
 0x434   : > { %v2566_v27 = vpop.f32.mrf.mxu2  ;;  %3049 = vmatpush.msra.mxu0 %v2998_v6 }
 0x435   : > { %v2567_v52 = vadd.f32 %v2566_v27, %v2501_v49  ;;  %v2504_v53 = vpop.f32.mrf.mxu1  ;;  %v2631_v9 = vpop.f32.mrf.mxu3  ;;  %v3009_v49 = vld [vmem:[#allocation6 + $0x388] sm:$0xff]  ;;  %v5832_v27 = vld [vmem:[#allocation5 + $0xe0] sm:$0xff]  ;;  %3599 = vmatpush.msrb.mxu3 %v2998_v6 }
 0x436   : > { %3119 = vmatpush.msra.mxu1 %v3009_v49  ;;  %2879 = vst [vmem:[#allocation4 + $0x120] sm:$0xff] %v5832_v27  ;;  %3050 = vmatpush.msra.mxu0 %v2997_v47 }
 0x437   : > { %v5814_v1 = vadd.f32 %v2631_v9, %v2567_v52  ;;  %v3024_v52 = vld [vmem:[#allocation6 + $0x400] sm:$0xff]  ;;  %3600 = vmatpush.msrb.mxu3 %v2997_v47 }
 0x438   : > { %2698 = vmatmul.f32.gmra.mxu1 %v5649_v45  ;;  %3185 = vmatpush.msra.mxu2 %v3024_v52  ;;  %v2996_v9 = vld [vmem:[#allocation6 + $0x320] sm:$0xff]  ;;  %v2994_v52 = vld [vmem:[#allocation6 + $0x310] sm:$0xff] }
 0x439   : > { %2763 = vmatmul.f32.gmra.mxu2 %v5653_v20  ;;  %3051 = vmatpush.msra.mxu0 %v2996_v9 }
 0x43a   : > { %2828 = vmatmul.f32.gmra.mxu3 %v5658_v31  ;;  %3120 = vmatpush.msra.mxu1 %v3008_v32 }
 0x43b   : > { %3601 = vmatpush.msrb.mxu3 %v2996_v9  ;;  %v3732_v9 = vld [vmem:[#allocation4 + $0x2d8] sm:$0xff] }
 0x43c   : > { %v2569_v4 = vpop.f32.mrf.mxu2 }
 0x43d   : > { %v2570_v30 = vadd.f32 %v2569_v4, %v2504_v53  ;;  %v2507_v44 = vpop.f32.mrf.mxu1  ;;  %v2634_v13 = vpop.f32.mrf.mxu3  ;;  %v5839_v53 = vld [vmem:[#allocation5 + $0xe2] sm:$0xff] }
 0x43e   : > { %6248 = vst [vmem:[#allocation37_spill] sm:$0xff] %v5839_v53  ;;  %v2995_v4 = vld [vmem:[#allocation6 + $0x318] sm:$0xff] }
 0x43f   : > { %v5828_v58 = vadd.f32 %v2634_v13, %v2570_v30  ;;  %2943 = vst [vmem:[#allocation4 + $0x368] sm:$0xff] %v5839_v53  ;;  %3052 = vmatpush.msra.mxu0 %v2995_v4  ;;  %3602 = vmatpush.msrb.mxu3 %v2995_v4 }
 0x440   : > { %2701 = vmatmul.f32.gmra.mxu1 %v5662_v51 }
 0x441   : > { %2766 = vmatmul.f32.gmra.mxu2 %v5666_v17  ;;  %3053 = vmatpush.msra.mxu0 %v2994_v52 }
 0x442   : > { %2831 = vmatmul.f32.gmra.mxu3 %v5671_v55 }
 0x443   : > { %3054 = vmatpush.msra.mxu0 %v2993_v35  ;;  %3603 = vmatpush.msrb.mxu3 %v2994_v52 }
 0x444   : > { %v2572_v48 = vpop.f32.mrf.mxu2 }
 0x445   : > { %v2573_v25 = vadd.f32 %v2572_v48, %v2507_v44  ;;  %v2510_v30 = vpop.f32.mrf.mxu1  ;;  %v2637_v49 = vpop.f32.mrf.mxu3  ;;  %3055 = vmatpush.msra.mxu0 %v2992_v11  ;;  %3604 = vmatpush.msrb.mxu3 %v2993_v35  ;;  %v3733_v35 = vld [vmem:[#allocation4 + $0x90] sm:$0xff] }
 0x447   : > { %v5842_v13 = vadd.f32 %v2637_v49, %v2573_v25  ;;  %v3731_v49 = vld [vmem:[#allocation4 + $0xa8] sm:$0xff]  ;;  %3605 = vmatpush.msrb.mxu3 %v2992_v11 }
 0x448   : > { %2704 = vmatmul.f32.gmra.mxu1 %v5675_v15  ;;  %3056 = vmatmul.f32.vlgmr.msra.gmra.mxu0 %v3731_v49 }
 0x449   : > { %2769 = vmatmul.f32.gmra.mxu2 %v5679_v57 }
 0x44a   : > { %2834 = vmatmul.f32.gmra.mxu3 %v5684_v63 }
 0x44c   : > { %v2575_v44 = vpop.f32.mrf.mxu2 }
 0x44d   : > { %v2576_v48 = vadd.f32 %v2575_v44, %v2510_v30  ;;  %v2513_v32 = vpop.f32.mrf.mxu1  ;;  %v2640_v25 = vpop.f32.mrf.mxu3 }
 0x44f   : > { %v5847_v29 = vadd.f32 %v2640_v25, %v2576_v48 }
 0x450   : > { %2707 = vmatmul.f32.gmra.mxu1 %v5688_v14  ;;  %3059 = vmatmul.f32.gmra.mxu0 %v3732_v9  ;;  %v3735_v9 = vld [vmem:[#allocation4 + $0x2d0] sm:$0xff] }
 0x451   : > { %2772 = vmatmul.f32.gmra.mxu2 %v5692_v21 }
 0x452   : > { %2837 = vmatmul.f32.gmra.mxu3 %v5697_v41 }
 0x454   : > { %v2578_v6 = vpop.f32.mrf.mxu2 }
 0x455   : > { %v2579_v47 = vadd.f32 %v2578_v6, %v2513_v32  ;;  %v2516_v30 = vpop.f32.mrf.mxu1  ;;  %v2643_v44 = vpop.f32.mrf.mxu3 }
 0x457   : > { %v5852_v53 = vadd.f32 %v2643_v44, %v2579_v47 }
 0x458   : > { %2710 = vmatmul.f32.gmra.mxu1 %v5701_v60  ;;  %3062 = vmatmul.f32.gmra.mxu0 %v3733_v35 }
 0x459   : > { %2775 = vmatmul.f32.gmra.mxu2 %v5706_v19 }
 0x45a   : > { %2840 = vmatmul.f32.gmra.mxu3 %v5711_v59 }
 0x45c   : > { %v2581_v4 = vpop.f32.mrf.mxu2 }
 0x45d   : > { %v2582_v52 = vadd.f32 %v2581_v4, %v2516_v30  ;;  %v2519_v48 = vpop.f32.mrf.mxu1  ;;  %v2646_v25 = vpop.f32.mrf.mxu3  ;;  %v3734_v30 = vld [vmem:[#allocation4 + $0x30] sm:$0xff] }
 0x45f   : > { %v5857_v49 = vadd.f32 %v2646_v25, %v2582_v52 }
 0x460   : > { %2713 = vmatmul.f32.gmra.mxu1 %v5716_v12  ;;  %3065 = vmatmul.f32.gmra.mxu0 %v5610_v39 }
 0x461   : > { %2778 = vmatmul.f32.gmra.mxu2 %v5720_v23 }
 0x462   : > { %2843 = vmatmul.f32.gmra.mxu3 %v5725_v56 }
 0x464   : > { %v2584_v11 = vpop.f32.mrf.mxu2 }
 0x465   : > { %v2585_v32 = vadd.f32 %v2584_v11, %v2519_v48  ;;  %v2649_v6 = vpop.f32.mrf.mxu3  ;;  %v2669_v47 = vpop.f32.mrf.mxu1  ;;  %v3736_v48 = vld [vmem:[#allocation4 + $0x378] sm:$0xff]  ;;  %v3737_v11 = vld [vmem:[#allocation4 + $0x230] sm:$0xff] }
 0x466   : > { %v2670_v4 = vadd.f32 %v2669_v47, %v5772_v7  ;;  %v3739_v47 = vld [vmem:[#allocation4 + $0x3b0] sm:$0xff] }
 0x467   : > { %v5862_v44 = vadd.f32 %v2649_v6, %v2585_v32 }
 0x468   : > { %3121 = vmatmul.f32.vlgmr.msra.gmra.mxu1 %v3735_v9  ;;  %3068 = vmatmul.f32.gmra.mxu0 %v5623_v10 }
 0x469   : > { %3186 = vmatmul.f32.vlgmr.msra.gmra.mxu2 %v3734_v30 }
 0x46a   : > { %3098 = vmatmul.f32.vlgmr.msrb.gmra.mxu3 %v5818_v43  ;;  %v3738_v43 = vld [vmem:[#allocation4 + $0x318] sm:$0xff] }
 0x46c   : > { %v2734_v52 = vpop.f32.mrf.mxu2 }
 0x46d   : > { %v5867_v25 = vadd.f32 %v2734_v52, %v2670_v4  ;;  %v2672_v35 = vpop.f32.mrf.mxu1 }
 0x46e   : > { %v2673_v39 = vadd.f32 %v2672_v35, %v5774_v26 }
 0x470   : > { %3124 = vmatmul.f32.gmra.mxu1 %v3737_v11  ;;  %3071 = vmatmul.f32.gmra.mxu0 %v5636_v28 }
 0x471   : > { %3189 = vmatmul.f32.gmra.mxu2 %v3736_v48 }
 0x472   : > { %3101 = vmatmul.f32.gmra.mxu3 %v5832_v27 }
 0x474   : > { %v2737_v32 = vpop.f32.mrf.mxu2 }
 0x475   : > { %v5872_v6 = vadd.f32 %v2737_v32, %v2673_v39  ;;  %v2675_v7 = vpop.f32.mrf.mxu1 }
 0x476   : > { %v2676_v10 = vadd.f32 %v2675_v7, %v5779_v24 }
 0x478   : > { %3127 = vmatmul.f32.gmra.mxu1 %v3739_v47  ;;  %3074 = vmatmul.f32.gmra.mxu0 %v5649_v45 }
 0x479   : > { %3192 = vmatmul.f32.gmra.mxu2 %v3738_v43 }
 0x47c   : > { %v2740_v30 = vpop.f32.mrf.mxu2 }
 0x47d   : > { %v5876_v9 = vadd.f32 %v2740_v30, %v2676_v10  ;;  %v2678_v4 = vpop.f32.mrf.mxu1 }
 0x47e   : > { %v2679_v26 = vadd.f32 %v2678_v4, %v5784_v22 }
 0x480   : > { %3130 = vmatmul.f32.gmra.mxu1 %v5614_v36  ;;  %3077 = vmatmul.f32.gmra.mxu0 %v5662_v51 }
 0x481   : > { %3195 = vmatmul.f32.gmra.mxu2 %v5620_v34 }
 0x484   : > { %v2743_v27 = vpop.f32.mrf.mxu2 }
 0x485   : > { %v5882_v28 = vadd.f32 %v2743_v27, %v2679_v26  ;;  %v2681_v52 = vpop.f32.mrf.mxu1  ;;  %v6249_v26 = vld [vmem:[#allocation37_spill] sm:$0xff]  ;;  %v6250_v27 = vld [vmem:[#allocation46_spill] sm:$0xff] }
 0x486   : > { %v2682_v24 = vadd.f32 %v2681_v52, %v5789_v46 }
 0x488   : > { %3133 = vmatmul.f32.gmra.mxu1 %v5627_v3  ;;  %3080 = vmatmul.f32.gmra.mxu0 %v5675_v15 }
 0x489   : > { %3198 = vmatmul.f32.gmra.mxu2 %v5633_v0 }
 0x48c   : > { %v2746_v35 = vpop.f32.mrf.mxu2 }
 0x48d   : > { %v5888_v45 = vadd.f32 %v2746_v35, %v2682_v24  ;;  %v2684_v34 = vpop.f32.mrf.mxu1 }
 0x48e   : > { %v2685_v36 = vadd.f32 %v2684_v34, %v5794_v54 }
 0x490   : > { %3136 = vmatmul.f32.gmra.mxu1 %v5640_v16  ;;  %3083 = vmatmul.f32.gmra.mxu0 %v5688_v14 }
 0x491   : > { %3201 = vmatmul.f32.gmra.mxu2 %v5645_v5 }
 0x494   : > { %v2749_v22 = vpop.f32.mrf.mxu2 }
 0x495   : > { %v5894_v51 = vadd.f32 %v2749_v22, %v2685_v36  ;;  %v2687_v0 = vpop.f32.mrf.mxu1 }
 0x496   : > { %v2688_v3 = vadd.f32 %v2687_v0, %v5799_v38 }
 0x498   : > { %3139 = vmatmul.f32.gmra.mxu1 %v5653_v20  ;;  %3086 = vmatmul.f32.gmra.mxu0 %v5701_v60 }
 0x499   : > { %3204 = vmatmul.f32.gmra.mxu2 %v5658_v31 }
 0x49c   : > { %v2752_v46 = vpop.f32.mrf.mxu2 }
 0x49d   : > { %v5900_v15 = vadd.f32 %v2752_v46, %v2688_v3  ;;  %v2690_v5 = vpop.f32.mrf.mxu1  ;;  %v5962_v46 = vld [vmem:[%s6102_s6] ss:$0 sm:$0xff] }
 0x49e   : > { %v2691_v16 = vadd.f32 %v2690_v5, %v5804_v2 }
 0x4a0   : > { %3142 = vmatmul.f32.gmra.mxu1 %v5666_v17  ;;  %3089 = vmatmul.f32.gmra.mxu0 %v5716_v12  ;;  %v2799_v12 = vpop.f32.mrf.mxu3 }
 0x4a1   : > { %3207 = vmatmul.f32.gmra.mxu2 %v5671_v55  ;;  %v2800_v36 = vadd.f32 %v2799_v12, %v5867_v25 }
 0x4a4   : > { %v2755_v54 = vpop.f32.mrf.mxu2 }
 0x4a5   : > { %v5906_v14 = vadd.f32 %v2755_v54, %v2691_v16  ;;  %v2693_v31 = vpop.f32.mrf.mxu1 }
 0x4a6   : > { %v2694_v20 = vadd.f32 %v2693_v31, %v5809_v18 }
 0x4a8   : > { %3145 = vmatmul.f32.gmra.mxu1 %v5679_v57  ;;  %3092 = vmatmul.f32.gmra.mxu0 %v5730_v50 }
 0x4a9   : > { %3210 = vmatmul.f32.gmra.mxu2 %v5684_v63 }
 0x4ac   : > { %v2758_v38 = vpop.f32.mrf.mxu2 }
 0x4ad   : > { %v5912_v60 = vadd.f32 %v2758_v38, %v2694_v20  ;;  %v2696_v55 = vpop.f32.mrf.mxu1 }
 0x4ae   : > { %v2697_v17 = vadd.f32 %v2696_v55, %v5814_v1  ;;  %v6251_v55 = vld [vmem:[#allocation19_spill] sm:$0xff] }
 0x4b0   : > { %3148 = vmatmul.f32.gmra.mxu1 %v5692_v21  ;;  %3095 = vmatmul.f32.gmra.mxu0 %v5745_v8  ;;  %v2802_v21 = vpop.f32.mrf.mxu3 }
 0x4b1   : > { %3213 = vmatmul.f32.gmra.mxu2 %v5697_v41  ;;  %v2803_v38 = vadd.f32 %v2802_v21, %v5872_v6 }
 0x4b4   : > { %v2761_v2 = vpop.f32.mrf.mxu2 }
 0x4b5   : > { %v5918_v18 = vadd.f32 %v2761_v2, %v2697_v17  ;;  %v2699_v48 = vpop.f32.mrf.mxu1 }
 0x4b6   : > { %v2700_v63 = vadd.f32 %v2699_v48, %v5828_v58 }
 0x4b8   : > { %3151 = vmatmul.f32.gmra.mxu1 %v5706_v19  ;;  %v2805_v19 = vpop.f32.mrf.mxu3 }
 0x4b9   : > { %3216 = vmatmul.f32.gmra.mxu2 %v5711_v59 }
 0x4bc   : > { %v2764_v57 = vpop.f32.mrf.mxu2 }
 0x4bd   : > { %v5924_v1 = vadd.f32 %v2764_v57, %v2700_v63  ;;  %v2702_v50 = vpop.f32.mrf.mxu1 }
 0x4be   : > { %v2703_v41 = vadd.f32 %v2702_v50, %v5842_v13 }
 0x4c0   : > { %3154 = vmatmul.f32.gmra.mxu1 %v5720_v23  ;;  %v2808_v23 = vpop.f32.mrf.mxu3 }
 0x4c1   : > { %3219 = vmatmul.f32.gmra.mxu2 %v5725_v56 }
 0x4c4   : > { %v2767_v11 = vpop.f32.mrf.mxu2 }
 0x4c5   : > { %v5929_v39 = vadd.f32 %v2767_v11, %v2703_v41  ;;  %v2705_v58 = vpop.f32.mrf.mxu1  ;;  %v3057_v32 = vpop.f32.mrf.mxu0 }
 0x4c6   : > { %v2706_v8 = vadd.f32 %v2705_v58, %v5847_v29 }
 0x4c8   : > { %3157 = vmatmul.f32.gmra.mxu1 %v5735_v40 }
 0x4c9   : > { %3222 = vmatmul.f32.gmra.mxu2 %v5740_v37 }
 0x4cc   : > { %v2770_v59 = vpop.f32.mrf.mxu2 }
 0x4cd   : > { %v5934_v7 = vadd.f32 %v2770_v59, %v2706_v8  ;;  %v2708_v13 = vpop.f32.mrf.mxu1  ;;  %v3060_v37 = vpop.f32.mrf.mxu0  ;;  %v2806_v8 = vadd.f32 %v2805_v19, %v5876_v9  ;;  %v6252_v59 = vld [vmem:[#allocation21_spill] sm:$0xff] }
 0x4ce   : > { %v2709_v56 = vadd.f32 %v2708_v13, %v5852_v53  ;;  %v2811_v53 = vpop.f32.mrf.mxu3 }
 0x4d0   : > { %3160 = vmatmul.f32.gmra.mxu1 %v5749_v33 }
 0x4d1   : > { %3225 = vmatmul.f32.gmra.mxu2 %v5754_v62 }
 0x4d4   : > { %v2773_v43 = vpop.f32.mrf.mxu2 }
 0x4d5   : > { %v5939_v47 = vadd.f32 %v2773_v43, %v2709_v56  ;;  %v2711_v29 = vpop.f32.mrf.mxu1  ;;  %v3063_v33 = vpop.f32.mrf.mxu0 }
 0x4d6   : > { %v2712_v40 = vadd.f32 %v2711_v29, %v5857_v49  ;;  %v5951_v35 = vpop.f32.mrf.mxu3 }
 0x4d8   : > { %3163 = vmatmul.f32.gmra.mxu1 %v5821_v42 }
 0x4d9   : > { %3228 = vmatmul.f32.gmra.mxu2 %v5825_v61 }
 0x4dc   : > { %v2776_v10 = vpop.f32.mrf.mxu2 }
 0x4dd   : > { %v5944_v30 = vadd.f32 %v2776_v10, %v2712_v40  ;;  %v2714_v4 = vpop.f32.mrf.mxu1  ;;  %v3066_v42 = vpop.f32.mrf.mxu0 }
 0x4de   : > { %v2715_v62 = vadd.f32 %v2714_v4, %v5862_v44  ;;  %v5957_v44 = vld [vmem:[%s6101_s5] ss:$0 sm:$0xff]  ;;  %v5965_v54 = vpop.f32.mrf.mxu3  ;;  %v2809_v4 = vadd.f32 %v2808_v23, %v5882_v28 }
 0x4e0   : > { %3166 = vmatmul.f32.gmra.mxu1 %v6250_v27 }
 0x4e1   : > { %3231 = vmatmul.f32.gmra.mxu2 %v6249_v26 }
 0x4e4   : > { %v2779_v52 = vpop.f32.mrf.mxu2 }
 0x4e5   : > { %v5949_v24 = vadd.f32 %v2779_v52, %v2715_v62  ;;  %v3122_v49 = vpop.f32.mrf.mxu1  ;;  %v3069_v20 = vpop.f32.mrf.mxu0  ;;  %v6253_v62 = vld [vmem:[#allocation23_spill] sm:$0xff] }
 0x4e6   : > { %v3123_v61 = vadd.f32 %v3122_v49, %v3057_v32  ;;  %v5973_v11 = vpop.f32.mrf.mxu3 }
 0x4ec   : > { %v3187_v34 = vpop.f32.mrf.mxu2 }
 0x4ed   : > { %v3188_v22 = vadd.f32 %v3187_v34, %v3123_v61  ;;  %v3125_v0 = vpop.f32.mrf.mxu1  ;;  %v3072_v13 = vpop.f32.mrf.mxu0 }
 0x4ee   : > { %v3126_v16 = vadd.f32 %v3125_v0, %v3060_v37  ;;  %v2823_v19 = vpop.f32.mrf.mxu3  ;;  %v6254_v0 = vld [vmem:[#allocation25_spill] sm:$0xff] }
 0x4ef   : > { %v3235_v3 = vadd.f32 %v3188_v22, %v2800_v36  ;;  %v2812_v22 = vadd.f32 %v2811_v53, %v5888_v45  ;;  %v6255_v45 = vld [vmem:[#allocation26_spill] sm:$0xff] }
 0x4f1   : > { %v3255_v5 = vmul.f32 %v5957_v44, %v3235_v3 }
 0x4f3   : > { %v3275_v25 = vadd.f32 %v5962_v46, %v3255_v5 }
 0x4f4   : > { %v3190_v31 = vpop.f32.mrf.mxu2 }
 0x4f5   : > { %v3291_v17 = vadd.f32 %v3275_v25, %v6251_v55  ;;  %v3191_v2 = vadd.f32 %v3190_v31, %v3126_v16  ;;  %v3128_v12 = vpop.f32.mrf.mxu1  ;;  %v3075_v49 = vpop.f32.mrf.mxu0 }
 0x4f6   : > { %v3129_v50 = vadd.f32 %v3128_v12, %v3063_v33  ;;  %v2826_v25 = vpop.f32.mrf.mxu3 }
 0x4f7   : > { %v3307_v48 = vmax.f32 %v3291_v17, 0.0  ;;  %v3236_v63 = vadd.f32 %v3191_v2, %v2803_v38  ;;  %v2815_v2 = vadd.f32 %v5951_v35, %v5894_v51  ;;  %v6256_v51 = vld [vmem:[#allocation27_spill] sm:$0xff] }
 0x4f9   : > { %3323 = vst [vmem:[%s4018_s14] sm:$0xff] %v3307_v48  ;;  %v3256_v57 = vmul.f32 %v5957_v44, %v3236_v63 }
 0x4fb   : > { %v3276_v41 = vadd.f32 %v5962_v46, %v3256_v57 }
 0x4fc   : > { %v3193_v58 = vpop.f32.mrf.mxu2 }
 0x4fd   : > { %v3292_v6 = vadd.f32 %v3276_v41, %v6252_v59  ;;  %v3194_v21 = vadd.f32 %v3193_v58, %v3129_v50  ;;  %v3131_v32 = vpop.f32.mrf.mxu1  ;;  %v3078_v55 = vpop.f32.mrf.mxu0 }
 0x4fe   : > { %v3132_v37 = vadd.f32 %v3131_v32, %v3066_v42  ;;  %v2829_v58 = vpop.f32.mrf.mxu3 }
 0x4ff   : > { %v3308_v56 = vmax.f32 %v3292_v6, 0.0  ;;  %v3237_v43 = vadd.f32 %v3194_v21, %v2806_v8  ;;  %v2818_v21 = vadd.f32 %v5965_v54, %v5900_v15 }
 0x501   : > { %3324 = vst [vmem:[%s4018_s14 + $0x8] sm:$0xff] %v3308_v56  ;;  %v3257_v29 = vmul.f32 %v5957_v44, %v3237_v43 }
 0x503   : > { %v3277_v40 = vadd.f32 %v5962_v46, %v3257_v29 }
 0x504   : > { %v3196_v10 = vpop.f32.mrf.mxu2 }
 0x505   : > { %v3293_v33 = vadd.f32 %v3277_v40, %v6253_v62  ;;  %v3197_v9 = vadd.f32 %v3196_v10, %v3132_v37  ;;  %v3134_v26 = vpop.f32.mrf.mxu1  ;;  %v3081_v6 = vpop.f32.mrf.mxu0  ;;  %v2821_v62 = vadd.f32 %v5973_v11, %v5906_v14 }
 0x506   : > { %v3135_v34 = vadd.f32 %v3134_v26, %v3069_v20  ;;  %v2832_v10 = vpop.f32.mrf.mxu3 }
 0x507   : > { %v3309_v27 = vmax.f32 %v3293_v33, 0.0  ;;  %v3238_v52 = vadd.f32 %v3197_v9, %v2809_v4  ;;  %v6257_v33 = vld [vmem:[#allocation28_spill] sm:$0xff] }
 0x509   : > { %3325 = vst [vmem:[%s4018_s14 + $0x10] sm:$0xff] %v3309_v27  ;;  %v3258_v61 = vmul.f32 %v5957_v44, %v3238_v52 }
 0x50b   : > { %v3278_v42 = vadd.f32 %v5962_v46, %v3258_v61 }
 0x50c   : > { %v3199_v36 = vpop.f32.mrf.mxu2 }
 0x50d   : > { %v3294_v28 = vadd.f32 %v3278_v42, %v6254_v0  ;;  %v3200_v23 = vadd.f32 %v3199_v36, %v3135_v34  ;;  %v3137_v3 = vpop.f32.mrf.mxu1  ;;  %v3084_v26 = vpop.f32.mrf.mxu0  ;;  %v2824_v36 = vadd.f32 %v2823_v19, %v5912_v60 }
 0x50e   : > { %v3138_v38 = vadd.f32 %v3137_v3, %v3072_v13  ;;  %v2835_v11 = vpop.f32.mrf.mxu3 }
 0x50f   : > { %v3310_v5 = vmax.f32 %v3294_v28, 0.0  ;;  %v3239_v16 = vadd.f32 %v3200_v23, %v2812_v22  ;;  %v6258_v22 = vld [vmem:[#allocation29_spill] sm:$0xff] }
 0x511   : > { %3326 = vst [vmem:[%s4018_s14 + $0x18] sm:$0xff] %v3310_v5  ;;  %v3259_v31 = vmul.f32 %v5957_v44, %v3239_v16 }
 0x513   : > { %v3279_v20 = vadd.f32 %v5962_v46, %v3259_v31 }
 0x514   : > { %v3202_v17 = vpop.f32.mrf.mxu2 }
 0x515   : > { %v3295_v53 = vadd.f32 %v3279_v20, %v6255_v45  ;;  %v3203_v12 = vadd.f32 %v3202_v17, %v3138_v38  ;;  %v3140_v48 = vpop.f32.mrf.mxu1  ;;  %v3087_v5 = vpop.f32.mrf.mxu0  ;;  %v2827_v20 = vadd.f32 %v2826_v25, %v5918_v18  ;;  %v6259_v17 = vld [vmem:[#allocation30_spill] sm:$0xff] }
 0x516   : > { %v3141_v41 = vadd.f32 %v3140_v48, %v3075_v49 }
 0x517   : > { %v3311_v63 = vmax.f32 %v3295_v53, 0.0  ;;  %v3240_v57 = vadd.f32 %v3203_v12, %v2815_v2  ;;  %v2838_v12 = vpop.f32.mrf.mxu3 }
 0x519   : > { %3327 = vst [vmem:[%s4018_s14 + $0x20] sm:$0xff] %v3311_v63  ;;  %v3260_v50 = vmul.f32 %v5957_v44, %v3240_v57 }
 0x51b   : > { %v3280_v8 = vadd.f32 %v5962_v46, %v3260_v50 }
 0x51c   : > { %v3205_v59 = vpop.f32.mrf.mxu2 }
 0x51d   : > { %v3296_v35 = vadd.f32 %v3280_v8, %v6256_v51  ;;  %v3206_v32 = vadd.f32 %v3205_v59, %v3141_v41  ;;  %v3143_v13 = vpop.f32.mrf.mxu1  ;;  %v3090_v57 = vpop.f32.mrf.mxu0  ;;  %v2830_v8 = vadd.f32 %v2829_v58, %v5924_v1  ;;  %v6260_v59 = vld [vmem:[#allocation31_spill] sm:$0xff] }
 0x51e   : > { %v3144_v37 = vadd.f32 %v3143_v13, %v3078_v55 }
 0x51f   : > { %v3312_v56 = vmax.f32 %v3296_v35, 0.0  ;;  %v3241_v43 = vadd.f32 %v3206_v32, %v2818_v21  ;;  %v2841_v13 = vpop.f32.mrf.mxu3 }
 0x521   : > { %3328 = vst [vmem:[%s4018_s14 + $0x28] sm:$0xff] %v3312_v56  ;;  %v3261_v29 = vmul.f32 %v5957_v44, %v3241_v43 }
 0x523   : > { %v3281_v40 = vadd.f32 %v5962_v46, %v3261_v29 }
 0x524   : > { %v3208_v4 = vpop.f32.mrf.mxu2 }
 0x525   : > { %v3297_v15 = vadd.f32 %v3281_v40, %v6257_v33  ;;  %v3209_v54 = vadd.f32 %v3208_v4, %v3144_v37  ;;  %v3146_v9 = vpop.f32.mrf.mxu1  ;;  %v3093_v29 = vpop.f32.mrf.mxu0  ;;  %v2833_v37 = vadd.f32 %v2832_v10, %v5929_v39  ;;  %v6261_v40 = vld [vmem:[#allocation32_spill] sm:$0xff] }
 0x526   : > { %v3147_v61 = vadd.f32 %v3146_v9, %v3081_v6 }
 0x527   : > { %v3313_v27 = vmax.f32 %v3297_v15, 0.0  ;;  %v3242_v52 = vadd.f32 %v3209_v54, %v2821_v62 }
 0x529   : > { %3329 = vst [vmem:[%s4018_s14 + $0x30] sm:$0xff] %v3313_v27  ;;  %v3262_v49 = vmul.f32 %v5957_v44, %v3242_v52  ;;  %v2836_v52 = vadd.f32 %v2835_v11, %v5934_v7 }
 0x52b   : > { %v3282_v34 = vadd.f32 %v5962_v46, %v3262_v49  ;;  %v6262_v49 = vld [vmem:[#allocation17_spill] sm:$0xff] }
 0x52c   : > { %v3211_v42 = vpop.f32.mrf.mxu2 }
 0x52d   : > { %v3298_v0 = vadd.f32 %v3282_v34, %v6258_v22  ;;  %v3212_v14 = vadd.f32 %v3211_v42, %v3147_v61  ;;  %v3149_v28 = vpop.f32.mrf.mxu1  ;;  %v3096_v10 = vpop.f32.mrf.mxu0 }
 0x52e   : > { %v3150_v31 = vadd.f32 %v3149_v28, %v3084_v26  ;;  %v2844_v26 = vpop.f32.mrf.mxu3 }
 0x52f   : > { %v3314_v23 = vmax.f32 %v3298_v0, 0.0  ;;  %v3243_v3 = vadd.f32 %v3212_v14, %v2824_v36 }
 0x531   : > { %3330 = vst [vmem:[%s4018_s14 + $0x38] sm:$0xff] %v3314_v23  ;;  %v3263_v16 = vmul.f32 %v5957_v44, %v3243_v3  ;;  %v2839_v3 = vadd.f32 %v2838_v12, %v5939_v47 }
 0x533   : > { %v3283_v38 = vadd.f32 %v5962_v46, %v3263_v16 }
 0x534   : > { %v3214_v55 = vpop.f32.mrf.mxu2 }
 0x535   : > { %v3299_v60 = vadd.f32 %v3283_v38, %v6259_v17  ;;  %v3215_v19 = vadd.f32 %v3214_v55, %v3150_v31  ;;  %v3152_v2 = vpop.f32.mrf.mxu1 }
 0x536   : > { %v3153_v63 = vadd.f32 %v3152_v2, %v3087_v5  ;;  %v3099_v23 = vpop.f32.mrf.mxu3  ;;  %v6263_v5 = vld [vmem:[#allocation18_spill] sm:$0xff]  ;;  %v6264_v2 = vld [vmem:[#allocation20_spill] sm:$0xff] }
 0x537   : > { %v3315_v45 = vmax.f32 %v3299_v60, 0.0  ;;  %v3244_v53 = vadd.f32 %v3215_v19, %v2827_v20  ;;  %v2842_v19 = vadd.f32 %v2841_v13, %v5944_v30  ;;  %v2845_v30 = vadd.f32 %v2844_v26, %v5949_v24  ;;  %v6266_v24 = vld [vmem:[#allocation24_spill] sm:$0xff] }
 0x539   : > { %3331 = vst [vmem:[%s4018_s14 + $0x40] sm:$0xff] %v3315_v45  ;;  %v3264_v48 = vmul.f32 %v5957_v44, %v3244_v53 }
 0x53b   : > { %v3284_v50 = vadd.f32 %v5962_v46, %v3264_v48 }
 0x53c   : > { %v3217_v41 = vpop.f32.mrf.mxu2 }
 0x53d   : > { %v3300_v18 = vadd.f32 %v3284_v50, %v6260_v59  ;;  %v3218_v25 = vadd.f32 %v3217_v41, %v3153_v63  ;;  %v3155_v6 = vpop.f32.mrf.mxu1  ;;  %v6265_v59 = vld [vmem:[#allocation22_spill] sm:$0xff] }
 0x53e   : > { %v3156_v32 = vadd.f32 %v3155_v6, %v3090_v57  ;;  %v3102_v53 = vpop.f32.mrf.mxu3 }
 0x53f   : > { %v3316_v21 = vmax.f32 %v3300_v18, 0.0  ;;  %v3245_v51 = vadd.f32 %v3218_v25, %v2830_v8 }
 0x541   : > { %3332 = vst [vmem:[%s4018_s14 + $0x48] sm:$0xff] %v3316_v21  ;;  %v3265_v35 = vmul.f32 %v5957_v44, %v3245_v51 }
 0x543   : > { %v3285_v56 = vadd.f32 %v5962_v46, %v3265_v35 }
 0x544   : > { %v3220_v43 = vpop.f32.mrf.mxu2 }
 0x545   : > { %v3301_v1 = vadd.f32 %v3285_v56, %v6261_v40  ;;  %v3221_v58 = vadd.f32 %v3220_v43, %v3156_v32  ;;  %v3158_v4 = vpop.f32.mrf.mxu1 }
 0x546   : > { %v3159_v54 = vadd.f32 %v3158_v4, %v3093_v29 }
 0x547   : > { %v3317_v62 = vmax.f32 %v3301_v1, 0.0  ;;  %v3246_v33 = vadd.f32 %v3221_v58, %v2833_v37 }
 0x549   : > { %3333 = vst [vmem:[%s4018_s14 + $0x50] sm:$0xff] %v3317_v62  ;;  %v3266_v15 = vmul.f32 %v5957_v44, %v3246_v33 }
 0x54b   : > { %v3286_v9 = vadd.f32 %v5962_v46, %v3266_v15 }
 0x54c   : > { %v3223_v27 = vpop.f32.mrf.mxu2 }
 0x54d   : > { %v3302_v61 = vadd.f32 %v3286_v9, %v6262_v49  ;;  %v3224_v39 = vadd.f32 %v3223_v27, %v3159_v54  ;;  %v3161_v34 = vpop.f32.mrf.mxu1 }
 0x54e   : > { %v3162_v0 = vadd.f32 %v3161_v34, %v3096_v10 }
 0x54f   : > { %v3318_v42 = vmax.f32 %v3302_v61, 0.0  ;;  %v3247_v36 = vadd.f32 %v3224_v39, %v2836_v52 }
 0x551   : > { %3334 = vst [vmem:[%s4018_s14 + $0x58] sm:$0xff] %v3318_v42  ;;  %v3267_v22 = vmul.f32 %v5957_v44, %v3247_v36 }
 0x553   : > { %v3287_v14 = vadd.f32 %v5962_v46, %v3267_v22 }
 0x554   : > { %v3226_v28 = vpop.f32.mrf.mxu2 }
 0x555   : > { %v3303_v7 = vadd.f32 %v3287_v14, %v6263_v5  ;;  %v3227_v11 = vadd.f32 %v3226_v28, %v3162_v0  ;;  %v3164_v16 = vpop.f32.mrf.mxu1 }
 0x556   : > { %v3165_v20 = vadd.f32 %v3164_v16, %v3099_v23 }
 0x557   : > { %v3319_v31 = vmax.f32 %v3303_v7, 0.0  ;;  %v3248_v38 = vadd.f32 %v3227_v11, %v2839_v3 }
 0x559   : > { %3335 = vst [vmem:[%s4018_s14 + $0x60] sm:$0xff] %v3319_v31  ;;  %v3268_v55 = vmul.f32 %v5957_v44, %v3248_v38 }
 0x55b   : > { %v3288_v17 = vadd.f32 %v5962_v46, %v3268_v55 }
 0x55c   : > { %v3229_v60 = vpop.f32.mrf.mxu2 }
 0x55d   : > { %v3304_v47 = vadd.f32 %v3288_v17, %v6264_v2  ;;  %v3230_v45 = vadd.f32 %v3229_v60, %v3165_v20  ;;  %v3167_v12 = vpop.f32.mrf.mxu1 }
 0x55e   : > { %v3168_v50 = vadd.f32 %v3167_v12, %v3102_v53 }
 0x55f   : > { %v3320_v48 = vmax.f32 %v3304_v47, 0.0  ;;  %v3249_v63 = vadd.f32 %v3230_v45, %v2842_v19 }
 0x561   : > { %3336 = vst [vmem:[%s4018_s14 + $0x68] sm:$0xff] %v3320_v48  ;;  %v3269_v57 = vmul.f32 %v5957_v44, %v3249_v63 }
 0x563   : > { %v3289_v41 = vadd.f32 %v5962_v46, %v3269_v57 }
 0x564   : > { %v3232_v8 = vpop.f32.mrf.mxu2 }
 0x565   : > { %v3305_v18 = vadd.f32 %v3289_v41, %v6265_v59  ;;  %v3233_v25 = vadd.f32 %v3232_v8, %v3168_v50 }
 0x567   : > { %v3321_v6 = vmax.f32 %v3305_v18, 0.0  ;;  %v3250_v21 = vadd.f32 %v3233_v25, %v2845_v30 }
 0x569   : > { %3337 = vst [vmem:[%s4018_s14 + $0x70] sm:$0xff] %v3321_v6  ;;  %v3270_v51 = vmul.f32 %v5957_v44, %v3250_v21 }
 0x56b   : > { %v3290_v35 = vadd.f32 %v5962_v46, %v3270_v51 }
 0x56d   : > { %v3306_v32 = vadd.f32 %v3290_v35, %v6266_v24 }
 0x56f   : > { %v3322_v13 = vmax.f32 %v3306_v32, 0.0 }
 0x571   : > { %3338 = vst [vmem:[%s4018_s14 + $0x78] sm:$0xff] %v3322_v13 }
 0x572   : > { %3797 = shalt.err (!%p3794_p12)
}
 0x573   : > { %s3878_s14 = smov 128   ;;  %s3879_s27 = smov 8  }
 0x574   : > { %3610 = dma.vmem_to_hbm [thread:$0]  (%p3972_p3), %s3356_s19, 2048, %s3358_s20, %s3340_s18, %s3878_s14, %s3878_s14, %s3879_s27  }
 0x575 PF: > { %p3622_p13 = scmp.ge.s32.totalorder %s3870_s8, 2  ;;  %s3372_s28 = sand.u32 1, %s3842_s24  }
 0x576   : > { %s3373_s9 = scalar_lea.sflag [#allocation8], %s3372_s28 }
 0x577   : > { %p3617_p0 = pnand %p3622_p13, %p3981_p8 }
 0x579   : > { %p3618_p1 = pneg %p3617_p0 }
 0x57b   : > { %3837 = dma.done.wait (%p3618_p1), %s3373_s9, 2048  }
 0x57c   : > { %3839 = vsyncadd (%p3618_p1), %s3373_s9, 4294965248  ;;  %s21_s8 = sadd.s32 1, %s3870_s8   ;;  %s6268_s15 = sld [smem:[#allocation15_spill]] }
 0x57d   : > { %p18_p2 = scmp.ge.s32.totalorder %s21_s8, 6   ;;  %s6269_s19 = sld [smem:[#allocation16_spill]] }
 0x57e   : > { %s6270_s24 = smov %s3846_s25  ;;  %s6271_s25 = smov %s3850_s26 }
 0x57f   : > { %s6272_s26 = smov %s4002_s10  ;;  %s6273_s27 = smov %s3862_s29 }
 0x580   : > { %s6274_s28 = smov %s3866_s30  ;;  %20 = sbr.rel (!%p18_p2) target bundleno = 8 (0x8), region = 172 }
 0x582   : > { %s6275_s29 = smov %s6268_s15 }
 0x583   : > { %s6276_s30 = smov %s6269_s19 }
 0x585   :  { %3379 = vsyncpa [#allocation7], 1 }
 0x586   :  { %3381 = vsyncpa [#allocation7 + $0x1], 1 }
 0x587   :  { %3382 = vsyncpa [#allocation8], 1 }
 0x588   :  { %3384 = vsyncpa [#allocation8 + $0x1], 1 }
 0x589   :  { %3385 = vsyncmov [#allocation3] }
 0x58c   :  { %s3386_s16 = vpop.sfrf %3385 }
 0x58d   :  { %p3555_p3 = scmp.ne.s32.totalorder %s3386_s16, 0 }
 0x58f   :  { %3390 = shalt.err (%p3555_p3)  }
 0x590   :  { %3392 = vsyncmov [#allocation3 + $0x1] }
 0x593   :  { %s3393_s10 = vpop.sfrf %3392 }
 0x594   :  { %p3556_p8 = scmp.ne.s32.totalorder %s3393_s10, 0 }
 0x596   :  { %3397 = shalt.err (%p3556_p8)  }

</bundles_post_ra>
